<compile_context>
chip_gen: v7x
topology: tpu7x:2x2x1
jax: 0.10.0
libtpu: 0.0.40
codegen_flags: <defaults>
</compile_context>

<pallas_src>
import functools

import jax
import jax.numpy as jnp
from jax.experimental import pallas as pl
from jax.experimental.pallas import tpu as pltpu

BETA = 100.0       # matches MySoftArgmax2D(beta=100)
NUM_CH = 11        # the reference forward is hard-coded to 11 channels
_LANES = 128       # lane width of a TPU vreg


def _plane_expectations(ex, col_f, row_f, rows):
    """E[x], E[y] of the (unnormalized, nonnegative) weight plane `ex` (R, C).

    The three reductions (sum ex, sum ex*x, sum ex*y) are fused: one cross-lane
    pass over a stacked (3R, C) slab, then three tiny (R, 1) sublane sums.
    True divides (not reciprocal+mul) keep the normalization bit-faithful since
    E[y] feeds threshold-based band decisions.  Returns two (1, 1) f32 arrays.
    """
    stacked = jnp.concatenate([ex, ex * col_f, ex * row_f], axis=0)   # (3R, C)
    row_sums = jnp.sum(stacked, axis=-1, keepdims=True)               # (3R, 1) one lane-reduce
    denom = jnp.sum(row_sums[0:rows], keepdims=True)                  # (1, 1)
    sum_x = jnp.sum(row_sums[rows:2 * rows], keepdims=True)
    sum_y = jnp.sum(row_sums[2 * rows:3 * rows], keepdims=True)
    return sum_x / denom, sum_y / denom


def _fused_softargmax_kernel(hm_ref, out_ref, *, height, width, valid_len):
    """Full MySoftArgmax2D forward for one (11, R, C) heatmap stack.

    hm_ref : VMEM [11, R, C]; each channel is the row-major flattening of its
             (H, W) plane padded to R*C elements (C == 128 -> lane dense).
    out_ref: VMEM f32[11, 2]; out[c] = [E[x], E[y]] of channel c.
    """
    _, R, C = hm_ref.shape
    needs_valid = (R * C != valid_len)
    hf = float(height)

    # ---- hoisted coordinate grids: computed once, reused by all 11 channels.
    flat_i = (jax.lax.broadcasted_iota(jnp.int32, (R, C), 0) * C
              + jax.lax.broadcasted_iota(jnp.int32, (R, C), 1))
    if (width & (width - 1)) == 0:                 # power-of-two W: shift / mask (exact)
        row_i = flat_i >> (width.bit_length() - 1)
        col_i = flat_i & (width - 1)
    else:                                          # exact constant-divisor integer division
        row_i = flat_i // width
        col_i = flat_i - row_i * width
    row_f = row_i.astype(jnp.float32)              # yy
    col_f = col_i.astype(jnp.float32)              # xx
    valid = (flat_i < valid_len) if needs_valid else None

    # ---- init: channels 9 & 10 as ONE (2, R, C) slab (single *beta / exp).
    h2 = hm_ref[pl.ds(9, 2), :, :].astype(jnp.float32) * BETA
    if needs_valid:
        h2 = jnp.where(valid[None], h2, -jnp.inf)  # padded lanes never contribute
    m2 = jnp.max(jnp.max(h2, axis=-1, keepdims=True), axis=-2, keepdims=True)
    ex2 = jnp.exp(h2 - m2)                         # (2, R, C) batched exp

    x9, y9 = _plane_expectations(ex2[0], col_f, row_f, R)
    out_ref[9:10, :] = jnp.concatenate([x9, y9], axis=1)        # immediate writeback
    x10, y10 = _plane_expectations(ex2[1], col_f, row_f, R)
    out_ref[10:11, :] = jnp.concatenate([x10, y10], axis=1)     # immediate writeback

    # ---- sequential band bookkeeping + masked soft-argmax, channels 8 .. 0.
    # Only ys[i+1] / ys[i+2] are ever re-read -> keep a rolling pair (short live ranges).
    dis_sum = jnp.zeros((1, 1), jnp.float32)
    dis_num = jnp.zeros((1, 1), jnp.float32)
    dis = y10 - y9
    y_p1, y_p2 = y9, y10                           # ys[i+1], ys[i+2]

    for i in range(8, -1, -1):                     # unrolled at trace time (inherently serial)
        last_y = jnp.floor(y_p1)                   # .long(); E[y] >= 0 so trunc == floor
        tmp_dis = jnp.ceil(y_p2 - y_p1)
        cond = jnp.abs(tmp_dis - dis) > 0.35 * dis  # data-dependent `if` -> predication
        dis_sum = jnp.where(cond, dis_sum + tmp_dis, dis_sum)
        dis_num = jnp.where(cond, dis_num + 1.0, dis_num)
        # on the taken branch dis_num >= 1; max() only guards the untaken lane against 0/0.
        dis = jnp.where(cond, dis_sum / jnp.maximum(dis_num, 1.0), dis)

        d18 = 1.8 * dis                            # shared so start/end see the identical f32 value
        start_y_f = last_y - d18
        end_y = jnp.round(start_y_f + d18)         # round(start_y + 0.9*2*dis), pre-round start_y
        start_y = jnp.round(start_y_f)

        # python slice semantics of mask[start_y : end_y + 1, :] = 1
        s = jnp.where(start_y < 0, start_y + hf, start_y)
        s = jnp.clip(s, 0.0, hf)
        e = end_y + 1.0
        e = jnp.where(e < 0, e + hf, e)
        e = jnp.clip(e, 0.0, hf)

        h = hm_ref[i].astype(jnp.float32) * BETA   # heatmap.mul(beta)
        keep = (row_f >= s) & (row_f < e)
        h = jnp.where(keep, h, 0.0)                # heatmap.mul(mask): zeros still in the softmax
        if needs_valid:
            h = jnp.where(valid, h, -jnp.inf)      # padded lanes fully excluded
        m = jnp.max(h, keepdims=True)              # (1, 1)
        ex = jnp.exp(h - m)

        xi, yi = _plane_expectations(ex, col_f, row_f, R)
        out_ref[i:i + 1, :] = jnp.concatenate([xi, yi], axis=1)  # immediate writeback

        y_p1, y_p2 = yi, y_p1


def _vmem_limit_bytes(resident_bytes):
    """Scoped-VMEM limit: sized from resident buffers, capped below physical VMEM."""
    try:
        phys = int(pltpu.get_tpu_info().vmem_capacity_bytes)
    except Exception:          # not a TPU / query unavailable: assume smallest (v7x, 64 MiB)
        phys = 64 << 20
    # ~52 MiB on 64-MiB (v7x) parts, ~110 MiB on 128-MiB (v5e/v6e) parts.
    cap = max(min(phys - (12 << 20), 110 << 20), 16 << 20)
    need = 2 * resident_bytes + (4 << 20)
    return int(min(max(need, 8 << 20), cap))


def soft_argmax_2d(heatmap):
    """Replicates MySoftArgmax2D.forward for heatmap of shape (1, 11, H, W)."""
    b, n, H, W = heatmap.shape
    assert b == 1 and n == NUM_CH, "reference forward is only defined for B=1, N=11"
    assert H * W < 2 ** 24, "int32/f32 coordinate math assumes H*W < 2**24"

    # Lane-dense layout: row-major flatten each plane and pad to a multiple of
    # 128 lanes; padded positions are excluded inside the kernel.
    L = H * W
    R = pl.cdiv(L, _LANES)
    Lp = R * _LANES
    hm = heatmap[0].reshape(NUM_CH, L)
    if Lp != L:
        hm = jnp.pad(hm, ((0, 0), (0, Lp - L)))
    hm = hm.reshape(NUM_CH, R, _LANES)    # dtype cast happens in-kernel (bf16 stays bf16 in HBM)

    pad_r = -(-R // 8) * 8                # VMEM pads the last two dims to the (8, 128) tile grid
    resident = NUM_CH * pad_r * _LANES * jnp.dtype(hm.dtype).itemsize
    # TODO(synk): once `resident` exceeds ~40 MiB on 64-MiB-VMEM parts, keep the stack in HBM
    # (memory_space=pl.ANY) and double-buffer one channel at a time with pltpu.make_async_copy;
    # at this module's target sizes the whole stack always fits VMEM.

    out = pl.pallas_call(
        functools.partial(_fused_softargmax_kernel, height=H, width=W, valid_len=L),
        out_shape=jax.ShapeDtypeStruct((NUM_CH, 2), jnp.float32),
        in_specs=[pl.BlockSpec(memory_space=pltpu.MemorySpace.VMEM)],
        out_specs=pl.BlockSpec(memory_space=pltpu.MemorySpace.VMEM),
        compiler_params=pltpu.CompilerParams(vmem_limit_bytes=_vmem_limit_bytes(resident)),
    )(hm)
    return out[None]                      # (1, 11, 2)


if __name__ == "__main__":
    key = jax.random.PRNGKey(0)
    B, N, H, W = 1, 11, 16, 16            # shapes implied by the forward (B=1, N=11)
    heatmap = jax.random.normal(key, (B, N, H, W), dtype=jnp.float32)

    fwd = jax.jit(soft_argmax_2d)
    out = jax.block_until_ready(fwd(heatmap))

    assert out.shape == (1, NUM_CH, 2), out.shape
    assert out.dtype == jnp.float32
    assert bool(jnp.all(jnp.isfinite(out)))
    print("KERNEL_OK")
</pallas_src>

<mosaic_0001>
module attributes {stable_mosaic.version = 11 : i64} {
  func.func @_fused_softargmax_kernel(%arg0: memref<11x2x128xf32, #tpu.memory_space<vmem>>, %arg1: memref<11x2xf32, #tpu.memory_space<vmem>>) attributes {dimension_semantics = [], scalar_prefetch = 0 : i64, scratch_operands = 0 : i64, tpu.core_type = #tpu.core_type<tc>} {
    %0 = tpu.iota {dimensions = array<i32: 0>} : vector<2x128xi32>
    %c128_i32 = arith.constant 128 : i32
    %1 = vector.broadcast %c128_i32 : i32 to vector<2x128xi32>
    %2 = arith.muli %0, %1 : vector<2x128xi32>
    %3 = tpu.iota {dimensions = array<i32: 1>} : vector<2x128xi32>
    %4 = arith.addi %2, %3 : vector<2x128xi32>
    %c4_i32 = arith.constant 4 : i32
    %5 = vector.broadcast %c4_i32 : i32 to vector<2x128xi32>
    %6 = arith.shrsi %4, %5 : vector<2x128xi32>
    %c15_i32 = arith.constant 15 : i32
    %7 = vector.broadcast %c15_i32 : i32 to vector<2x128xi32>
    %8 = arith.andi %4, %7 : vector<2x128xi32>
    %9 = arith.sitofp %6 : vector<2x128xi32> to vector<2x128xf32>
    %10 = arith.sitofp %8 : vector<2x128xi32> to vector<2x128xf32>
    %c9 = arith.constant 9 : index
    %c0 = arith.constant 0 : index
    %c0_0 = arith.constant 0 : index
    %11 = vector.load %arg0[%c9, %c0, %c0_0] : memref<11x2x128xf32, #tpu.memory_space<vmem>>, vector<2x2x128xf32>
    %cst = arith.constant 1.000000e+02 : f32
    %12 = vector.broadcast %cst : f32 to vector<2x2x128xf32>
    %13 = arith.mulf %11, %12 : vector<2x2x128xf32>
    %cst_1 = arith.constant dense<0xFF800000> : vector<2x2xf32>
    %14 = vector.multi_reduction <maximumf>, %13, %cst_1 [2] : vector<2x2x128xf32> to vector<2x2xf32>
    %15 = vector.shape_cast %14 : vector<2x2xf32> to vector<2x2x1xf32>
    %cst_2 = arith.constant dense<0xFF800000> : vector<2x1xf32>
    %16 = vector.multi_reduction <maximumf>, %15, %cst_2 [1] : vector<2x2x1xf32> to vector<2x1xf32>
    %17 = vector.shape_cast %16 : vector<2x1xf32> to vector<2x1x1xf32>
    %18 = vector.broadcast %17 : vector<2x1x1xf32> to vector<2x2x128xf32>
    %19 = arith.subf %13, %18 : vector<2x2x128xf32>
    %20 = math.exp %19 : vector<2x2x128xf32>
    %21 = vector.extract_strided_slice %20 {offsets = [0, 0, 0], sizes = [1, 2, 128], strides = [1, 1, 1]} : vector<2x2x128xf32> to vector<1x2x128xf32>
    %22 = vector.shape_cast %21 : vector<1x2x128xf32> to vector<2x128xf32>
    %23 = arith.mulf %22, %10 : vector<2x128xf32>
    %24 = arith.mulf %22, %9 : vector<2x128xf32>
    %25 = tpu.concatenate %22, %23, %24 in 0 : vector<2x128xf32>, vector<2x128xf32>, vector<2x128xf32> -> vector<6x128xf32>
    %cst_3 = arith.constant dense<0.000000e+00> : vector<6xf32>
    %26 = vector.multi_reduction <add>, %25, %cst_3 [1] : vector<6x128xf32> to vector<6xf32>
    %27 = vector.shape_cast %26 : vector<6xf32> to vector<6x1xf32>
    %28 = vector.extract_strided_slice %27 {offsets = [0, 0], sizes = [2, 1], strides = [1, 1]} : vector<6x1xf32> to vector<2x1xf32>
    %29 = vector.shape_cast %28 : vector<2x1xf32> to vector<1x2x1xf32>
    %cst_4 = arith.constant dense<0.000000e+00> : vector<1xf32>
    %30 = vector.multi_reduction <add>, %29, %cst_4 [1, 2] : vector<1x2x1xf32> to vector<1xf32>
    %31 = vector.shape_cast %30 : vector<1xf32> to vector<1x1x1xf32>
    %32 = vector.extract %31[0, 0, 0] : f32 from vector<1x1x1xf32>
    %33 = vector.broadcast %32 : f32 to vector<1x1xf32>
    %34 = vector.extract_strided_slice %27 {offsets = [2, 0], sizes = [2, 1], strides = [1, 1]} : vector<6x1xf32> to vector<2x1xf32>
    %35 = vector.shape_cast %34 : vector<2x1xf32> to vector<1x2x1xf32>
    %cst_5 = arith.constant dense<0.000000e+00> : vector<1xf32>
    %36 = vector.multi_reduction <add>, %35, %cst_5 [1, 2] : vector<1x2x1xf32> to vector<1xf32>
    %37 = vector.shape_cast %36 : vector<1xf32> to vector<1x1x1xf32>
    %38 = vector.extract %37[0, 0, 0] : f32 from vector<1x1x1xf32>
    %39 = vector.broadcast %38 : f32 to vector<1x1xf32>
    %40 = vector.extract_strided_slice %27 {offsets = [4, 0], sizes = [2, 1], strides = [1, 1]} : vector<6x1xf32> to vector<2x1xf32>
    %41 = vector.shape_cast %40 : vector<2x1xf32> to vector<1x2x1xf32>
    %cst_6 = arith.constant dense<0.000000e+00> : vector<1xf32>
    %42 = vector.multi_reduction <add>, %41, %cst_6 [1, 2] : vector<1x2x1xf32> to vector<1xf32>
    %43 = vector.shape_cast %42 : vector<1xf32> to vector<1x1x1xf32>
    %44 = vector.extract %43[0, 0, 0] : f32 from vector<1x1x1xf32>
    %45 = vector.broadcast %44 : f32 to vector<1x1xf32>
    %46 = arith.divf %39, %33 : vector<1x1xf32>
    %47 = arith.divf %45, %33 : vector<1x1xf32>
    %48 = tpu.concatenate %46, %47 in 1 : vector<1x1xf32>, vector<1x1xf32> -> vector<1x2xf32>
    %c9_7 = arith.constant 9 : index
    %c0_8 = arith.constant 0 : index
    %49 = vector.load %arg1[%c9_7, %c0_8] : memref<11x2xf32, #tpu.memory_space<vmem>>, vector<1x2xf32>
    tpu.vector_store %arg1[%c9_7, %c0_8], %48 {strides = array<i32>} : memref<11x2xf32, #tpu.memory_space<vmem>>, vector<1x2xf32>,
    %50 = vector.extract_strided_slice %20 {offsets = [1, 0, 0], sizes = [1, 2, 128], strides = [1, 1, 1]} : vector<2x2x128xf32> to vector<1x2x128xf32>
    %51 = vector.shape_cast %50 : vector<1x2x128xf32> to vector<2x128xf32>
    %52 = arith.mulf %51, %10 : vector<2x128xf32>
    %53 = arith.mulf %51, %9 : vector<2x128xf32>
    %54 = tpu.concatenate %51, %52, %53 in 0 : vector<2x128xf32>, vector<2x128xf32>, vector<2x128xf32> -> vector<6x128xf32>
    %cst_9 = arith.constant dense<0.000000e+00> : vector<6xf32>
    %55 = vector.multi_reduction <add>, %54, %cst_9 [1] : vector<6x128xf32> to vector<6xf32>
    %56 = vector.shape_cast %55 : vector<6xf32> to vector<6x1xf32>
    %57 = vector.extract_strided_slice %56 {offsets = [0, 0], sizes = [2, 1], strides = [1, 1]} : vector<6x1xf32> to vector<2x1xf32>
    %58 = vector.shape_cast %57 : vector<2x1xf32> to vector<1x2x1xf32>
    %cst_10 = arith.constant dense<0.000000e+00> : vector<1xf32>
    %59 = vector.multi_reduction <add>, %58, %cst_10 [1, 2] : vector<1x2x1xf32> to vector<1xf32>
    %60 = vector.shape_cast %59 : vector<1xf32> to vector<1x1x1xf32>
    %61 = vector.extract %60[0, 0, 0] : f32 from vector<1x1x1xf32>
    %62 = vector.broadcast %61 : f32 to vector<1x1xf32>
    %63 = vector.extract_strided_slice %56 {offsets = [2, 0], sizes = [2, 1], strides = [1, 1]} : vector<6x1xf32> to vector<2x1xf32>
    %64 = vector.shape_cast %63 : vector<2x1xf32> to vector<1x2x1xf32>
    %cst_11 = arith.constant dense<0.000000e+00> : vector<1xf32>
    %65 = vector.multi_reduction <add>, %64, %cst_11 [1, 2] : vector<1x2x1xf32> to vector<1xf32>
    %66 = vector.shape_cast %65 : vector<1xf32> to vector<1x1x1xf32>
    %67 = vector.extract %66[0, 0, 0] : f32 from vector<1x1x1xf32>
    %68 = vector.broadcast %67 : f32 to vector<1x1xf32>
    %69 = vector.extract_strided_slice %56 {offsets = [4, 0], sizes = [2, 1], strides = [1, 1]} : vector<6x1xf32> to vector<2x1xf32>
    %70 = vector.shape_cast %69 : vector<2x1xf32> to vector<1x2x1xf32>
    %cst_12 = arith.constant dense<0.000000e+00> : vector<1xf32>
    %71 = vector.multi_reduction <add>, %70, %cst_12 [1, 2] : vector<1x2x1xf32> to vector<1xf32>
    %72 = vector.shape_cast %71 : vector<1xf32> to vector<1x1x1xf32>
    %73 = vector.extract %72[0, 0, 0] : f32 from vector<1x1x1xf32>
    %74 = vector.broadcast %73 : f32 to vector<1x1xf32>
    %75 = arith.divf %68, %62 : vector<1x1xf32>
    %76 = arith.divf %74, %62 : vector<1x1xf32>
    %77 = tpu.concatenate %75, %76 in 1 : vector<1x1xf32>, vector<1x1xf32> -> vector<1x2xf32>
    %c10 = arith.constant 10 : index
    %c0_13 = arith.constant 0 : index
    %78 = vector.load %arg1[%c10, %c0_13] : memref<11x2xf32, #tpu.memory_space<vmem>>, vector<1x2xf32>
    tpu.vector_store %arg1[%c10, %c0_13], %77 {strides = array<i32>} : memref<11x2xf32, #tpu.memory_space<vmem>>, vector<1x2xf32>,
    %cst_14 = arith.constant 0.000000e+00 : f32
    %79 = vector.broadcast %cst_14 : f32 to vector<1x1xf32>
    %cst_15 = arith.constant 0.000000e+00 : f32
    %80 = vector.broadcast %cst_15 : f32 to vector<1x1xf32>
    %81 = arith.subf %76, %47 : vector<1x1xf32>
    %82 = math.floor %47 : vector<1x1xf32>
    %83 = arith.subf %76, %47 : vector<1x1xf32>
    %84 = math.ceil %83 : vector<1x1xf32>
    %85 = arith.subf %84, %81 : vector<1x1xf32>
    %86 = math.absf %85 : vector<1x1xf32>
    %cst_16 = arith.constant 3.500000e-01 : f32
    %87 = vector.broadcast %cst_16 : f32 to vector<1x1xf32>
    %88 = arith.mulf %87, %81 : vector<1x1xf32>
    %89 = arith.cmpf ogt, %86, %88 : vector<1x1xf32>
    %90 = arith.addf %79, %84 : vector<1x1xf32>
    %91 = arith.select %89, %90, %79 : vector<1x1xi1>, vector<1x1xf32>
    %cst_17 = arith.constant 1.000000e+00 : f32
    %92 = vector.broadcast %cst_17 : f32 to vector<1x1xf32>
    %93 = arith.addf %80, %92 : vector<1x1xf32>
    %94 = arith.select %89, %93, %80 : vector<1x1xi1>, vector<1x1xf32>
    %cst_18 = arith.constant 1.000000e+00 : f32
    %95 = vector.broadcast %cst_18 : f32 to vector<1x1xf32>
    %96 = arith.maximumf %94, %95 : vector<1x1xf32>
    %97 = arith.divf %91, %96 : vector<1x1xf32>
    %98 = arith.select %89, %97, %81 : vector<1x1xi1>, vector<1x1xf32>
    %cst_19 = arith.constant 1.800000e+00 : f32
    %99 = vector.broadcast %cst_19 : f32 to vector<1x1xf32>
    %100 = arith.mulf %99, %98 : vector<1x1xf32>
    %101 = arith.subf %82, %100 : vector<1x1xf32>
    %102 = arith.addf %101, %100 : vector<1x1xf32>
    %103 = math.roundeven %102 : vector<1x1xf32>
    %104 = math.roundeven %101 : vector<1x1xf32>
    %cst_20 = arith.constant 0.000000e+00 : f32
    %105 = vector.broadcast %cst_20 : f32 to vector<1x1xf32>
    %106 = arith.cmpf olt, %104, %105 : vector<1x1xf32>
    %cst_21 = arith.constant 1.600000e+01 : f32
    %107 = vector.broadcast %cst_21 : f32 to vector<1x1xf32>
    %108 = arith.addf %104, %107 : vector<1x1xf32>
    %109 = arith.select %106, %108, %104 : vector<1x1xi1>, vector<1x1xf32>
    %cst_22 = arith.constant 0.000000e+00 : f32
    %cst_23 = arith.constant 1.600000e+01 : f32
    %110 = vector.broadcast %cst_22 : f32 to vector<1x1xf32>
    %111 = arith.maximumf %110, %109 : vector<1x1xf32>
    %112 = vector.broadcast %cst_23 : f32 to vector<1x1xf32>
    %113 = arith.minimumf %112, %111 : vector<1x1xf32>
    %cst_24 = arith.constant 1.000000e+00 : f32
    %114 = vector.broadcast %cst_24 : f32 to vector<1x1xf32>
    %115 = arith.addf %103, %114 : vector<1x1xf32>
    %cst_25 = arith.constant 0.000000e+00 : f32
    %116 = vector.broadcast %cst_25 : f32 to vector<1x1xf32>
    %117 = arith.cmpf olt, %115, %116 : vector<1x1xf32>
    %cst_26 = arith.constant 1.600000e+01 : f32
    %118 = vector.broadcast %cst_26 : f32 to vector<1x1xf32>
    %119 = arith.addf %115, %118 : vector<1x1xf32>
    %120 = arith.select %117, %119, %115 : vector<1x1xi1>, vector<1x1xf32>
    %cst_27 = arith.constant 0.000000e+00 : f32
    %cst_28 = arith.constant 1.600000e+01 : f32
    %121 = vector.broadcast %cst_27 : f32 to vector<1x1xf32>
    %122 = arith.maximumf %121, %120 : vector<1x1xf32>
    %123 = vector.broadcast %cst_28 : f32 to vector<1x1xf32>
    %124 = arith.minimumf %123, %122 : vector<1x1xf32>
    %c8 = arith.constant 8 : index
    %c0_29 = arith.constant 0 : index
    %c0_30 = arith.constant 0 : index
    %125 = vector.load %arg0[%c8, %c0_29, %c0_30] : memref<11x2x128xf32, #tpu.memory_space<vmem>>, vector<1x2x128xf32>
    %126 = vector.shape_cast %125 : vector<1x2x128xf32> to vector<2x128xf32>
    %cst_31 = arith.constant 1.000000e+02 : f32
    %127 = vector.broadcast %cst_31 : f32 to vector<2x128xf32>
    %128 = arith.mulf %126, %127 : vector<2x128xf32>
    %129 = vector.broadcast %113 : vector<1x1xf32> to vector<2x128xf32>
    %130 = arith.cmpf oge, %9, %129 : vector<2x128xf32>
    %131 = vector.broadcast %124 : vector<1x1xf32> to vector<2x128xf32>
    %132 = arith.cmpf olt, %9, %131 : vector<2x128xf32>
    %133 = arith.andi %130, %132 : vector<2x128xi1>
    %cst_32 = arith.constant 0.000000e+00 : f32
    %134 = vector.broadcast %cst_32 : f32 to vector<2x128xf32>
    %135 = arith.select %133, %128, %134 : vector<2x128xi1>, vector<2x128xf32>
    %136 = vector.shape_cast %135 : vector<2x128xf32> to vector<1x2x128xf32>
    %cst_33 = arith.constant dense<0xFF800000> : vector<1xf32>
    %137 = vector.multi_reduction <maximumf>, %136, %cst_33 [1, 2] : vector<1x2x128xf32> to vector<1xf32>
    %138 = vector.shape_cast %137 : vector<1xf32> to vector<1x1x1xf32>
    %139 = vector.extract %138[0, 0, 0] : f32 from vector<1x1x1xf32>
    %140 = vector.broadcast %139 : f32 to vector<1x1xf32>
    %141 = vector.broadcast %140 : vector<1x1xf32> to vector<2x128xf32>
    %142 = arith.subf %135, %141 : vector<2x128xf32>
    %143 = math.exp %142 : vector<2x128xf32>
    %144 = arith.mulf %143, %10 : vector<2x128xf32>
    %145 = arith.mulf %143, %9 : vector<2x128xf32>
    %146 = tpu.concatenate %143, %144, %145 in 0 : vector<2x128xf32>, vector<2x128xf32>, vector<2x128xf32> -> vector<6x128xf32>
    %cst_34 = arith.constant dense<0.000000e+00> : vector<6xf32>
    %147 = vector.multi_reduction <add>, %146, %cst_34 [1] : vector<6x128xf32> to vector<6xf32>
    %148 = vector.shape_cast %147 : vector<6xf32> to vector<6x1xf32>
    %149 = vector.extract_strided_slice %148 {offsets = [0, 0], sizes = [2, 1], strides = [1, 1]} : vector<6x1xf32> to vector<2x1xf32>
    %150 = vector.shape_cast %149 : vector<2x1xf32> to vector<1x2x1xf32>
    %cst_35 = arith.constant dense<0.000000e+00> : vector<1xf32>
    %151 = vector.multi_reduction <add>, %150, %cst_35 [1, 2] : vector<1x2x1xf32> to vector<1xf32>
    %152 = vector.shape_cast %151 : vector<1xf32> to vector<1x1x1xf32>
    %153 = vector.extract %152[0, 0, 0] : f32 from vector<1x1x1xf32>
    %154 = vector.broadcast %153 : f32 to vector<1x1xf32>
    %155 = vector.extract_strided_slice %148 {offsets = [2, 0], sizes = [2, 1], strides = [1, 1]} : vector<6x1xf32> to vector<2x1xf32>
    %156 = vector.shape_cast %155 : vector<2x1xf32> to vector<1x2x1xf32>
    %cst_36 = arith.constant dense<0.000000e+00> : vector<1xf32>
    %157 = vector.multi_reduction <add>, %156, %cst_36 [1, 2] : vector<1x2x1xf32> to vector<1xf32>
    %158 = vector.shape_cast %157 : vector<1xf32> to vector<1x1x1xf32>
    %159 = vector.extract %158[0, 0, 0] : f32 from vector<1x1x1xf32>
    %160 = vector.broadcast %159 : f32 to vector<1x1xf32>
    %161 = vector.extract_strided_slice %148 {offsets = [4, 0], sizes = [2, 1], strides = [1, 1]} : vector<6x1xf32> to vector<2x1xf32>
    %162 = vector.shape_cast %161 : vector<2x1xf32> to vector<1x2x1xf32>
    %cst_37 = arith.constant dense<0.000000e+00> : vector<1xf32>
    %163 = vector.multi_reduction <add>, %162, %cst_37 [1, 2] : vector<1x2x1xf32> to vector<1xf32>
    %164 = vector.shape_cast %163 : vector<1xf32> to vector<1x1x1xf32>
    %165 = vector.extract %164[0, 0, 0] : f32 from vector<1x1x1xf32>
    %166 = vector.broadcast %165 : f32 to vector<1x1xf32>
    %167 = arith.divf %160, %154 : vector<1x1xf32>
    %168 = arith.divf %166, %154 : vector<1x1xf32>
    %169 = tpu.concatenate %167, %168 in 1 : vector<1x1xf32>, vector<1x1xf32> -> vector<1x2xf32>
    %c8_38 = arith.constant 8 : index
    %c0_39 = arith.constant 0 : index
    %170 = vector.load %arg1[%c8_38, %c0_39] : memref<11x2xf32, #tpu.memory_space<vmem>>, vector<1x2xf32>
    tpu.vector_store %arg1[%c8_38, %c0_39], %169 {strides = array<i32>} : memref<11x2xf32, #tpu.memory_space<vmem>>, vector<1x2xf32>,
    %171 = math.floor %168 : vector<1x1xf32>
    %172 = arith.subf %47, %168 : vector<1x1xf32>
    %173 = math.ceil %172 : vector<1x1xf32>
    %174 = arith.subf %173, %98 : vector<1x1xf32>
    %175 = math.absf %174 : vector<1x1xf32>
    %cst_40 = arith.constant 3.500000e-01 : f32
    %176 = vector.broadcast %cst_40 : f32 to vector<1x1xf32>
    %177 = arith.mulf %176, %98 : vector<1x1xf32>
    %178 = arith.cmpf ogt, %175, %177 : vector<1x1xf32>
    %179 = arith.addf %91, %173 : vector<1x1xf32>
    %180 = arith.select %178, %179, %91 : vector<1x1xi1>, vector<1x1xf32>
    %cst_41 = arith.constant 1.000000e+00 : f32
    %181 = vector.broadcast %cst_41 : f32 to vector<1x1xf32>
    %182 = arith.addf %94, %181 : vector<1x1xf32>
    %183 = arith.select %178, %182, %94 : vector<1x1xi1>, vector<1x1xf32>
    %cst_42 = arith.constant 1.000000e+00 : f32
    %184 = vector.broadcast %cst_42 : f32 to vector<1x1xf32>
    %185 = arith.maximumf %183, %184 : vector<1x1xf32>
    %186 = arith.divf %180, %185 : vector<1x1xf32>
    %187 = arith.select %178, %186, %98 : vector<1x1xi1>, vector<1x1xf32>
    %cst_43 = arith.constant 1.800000e+00 : f32
    %188 = vector.broadcast %cst_43 : f32 to vector<1x1xf32>
    %189 = arith.mulf %188, %187 : vector<1x1xf32>
    %190 = arith.subf %171, %189 : vector<1x1xf32>
    %191 = arith.addf %190, %189 : vector<1x1xf32>
    %192 = math.roundeven %191 : vector<1x1xf32>
    %193 = math.roundeven %190 : vector<1x1xf32>
    %cst_44 = arith.constant 0.000000e+00 : f32
    %194 = vector.broadcast %cst_44 : f32 to vector<1x1xf32>
    %195 = arith.cmpf olt, %193, %194 : vector<1x1xf32>
    %cst_45 = arith.constant 1.600000e+01 : f32
    %196 = vector.broadcast %cst_45 : f32 to vector<1x1xf32>
    %197 = arith.addf %193, %196 : vector<1x1xf32>
    %198 = arith.select %195, %197, %193 : vector<1x1xi1>, vector<1x1xf32>
    %cst_46 = arith.constant 0.000000e+00 : f32
    %cst_47 = arith.constant 1.600000e+01 : f32
    %199 = vector.broadcast %cst_46 : f32 to vector<1x1xf32>
    %200 = arith.maximumf %199, %198 : vector<1x1xf32>
    %201 = vector.broadcast %cst_47 : f32 to vector<1x1xf32>
    %202 = arith.minimumf %201, %200 : vector<1x1xf32>
    %cst_48 = arith.constant 1.000000e+00 : f32
    %203 = vector.broadcast %cst_48 : f32 to vector<1x1xf32>
    %204 = arith.addf %192, %203 : vector<1x1xf32>
    %cst_49 = arith.constant 0.000000e+00 : f32
    %205 = vector.broadcast %cst_49 : f32 to vector<1x1xf32>
    %206 = arith.cmpf olt, %204, %205 : vector<1x1xf32>
    %cst_50 = arith.constant 1.600000e+01 : f32
    %207 = vector.broadcast %cst_50 : f32 to vector<1x1xf32>
    %208 = arith.addf %204, %207 : vector<1x1xf32>
    %209 = arith.select %206, %208, %204 : vector<1x1xi1>, vector<1x1xf32>
    %cst_51 = arith.constant 0.000000e+00 : f32
    %cst_52 = arith.constant 1.600000e+01 : f32
    %210 = vector.broadcast %cst_51 : f32 to vector<1x1xf32>
    %211 = arith.maximumf %210, %209 : vector<1x1xf32>
    %212 = vector.broadcast %cst_52 : f32 to vector<1x1xf32>
    %213 = arith.minimumf %212, %211 : vector<1x1xf32>
    %c7 = arith.constant 7 : index
    %c0_53 = arith.constant 0 : index
    %c0_54 = arith.constant 0 : index
    %214 = vector.load %arg0[%c7, %c0_53, %c0_54] : memref<11x2x128xf32, #tpu.memory_space<vmem>>, vector<1x2x128xf32>
    %215 = vector.shape_cast %214 : vector<1x2x128xf32> to vector<2x128xf32>
    %cst_55 = arith.constant 1.000000e+02 : f32
    %216 = vector.broadcast %cst_55 : f32 to vector<2x128xf32>
    %217 = arith.mulf %215, %216 : vector<2x128xf32>
    %218 = vector.broadcast %202 : vector<1x1xf32> to vector<2x128xf32>
    %219 = arith.cmpf oge, %9, %218 : vector<2x128xf32>
    %220 = vector.broadcast %213 : vector<1x1xf32> to vector<2x128xf32>
    %221 = arith.cmpf olt, %9, %220 : vector<2x128xf32>
    %222 = arith.andi %219, %221 : vector<2x128xi1>
    %cst_56 = arith.constant 0.000000e+00 : f32
    %223 = vector.broadcast %cst_56 : f32 to vector<2x128xf32>
    %224 = arith.select %222, %217, %223 : vector<2x128xi1>, vector<2x128xf32>
    %225 = vector.shape_cast %224 : vector<2x128xf32> to vector<1x2x128xf32>
    %cst_57 = arith.constant dense<0xFF800000> : vector<1xf32>
    %226 = vector.multi_reduction <maximumf>, %225, %cst_57 [1, 2] : vector<1x2x128xf32> to vector<1xf32>
    %227 = vector.shape_cast %226 : vector<1xf32> to vector<1x1x1xf32>
    %228 = vector.extract %227[0, 0, 0] : f32 from vector<1x1x1xf32>
    %229 = vector.broadcast %228 : f32 to vector<1x1xf32>
    %230 = vector.broadcast %229 : vector<1x1xf32> to vector<2x128xf32>
    %231 = arith.subf %224, %230 : vector<2x128xf32>
    %232 = math.exp %231 : vector<2x128xf32>
    %233 = arith.mulf %232, %10 : vector<2x128xf32>
    %234 = arith.mulf %232, %9 : vector<2x128xf32>
    %235 = tpu.concatenate %232, %233, %234 in 0 : vector<2x128xf32>, vector<2x128xf32>, vector<2x128xf32> -> vector<6x128xf32>
    %cst_58 = arith.constant dense<0.000000e+00> : vector<6xf32>
    %236 = vector.multi_reduction <add>, %235, %cst_58 [1] : vector<6x128xf32> to vector<6xf32>
    %237 = vector.shape_cast %236 : vector<6xf32> to vector<6x1xf32>
    %238 = vector.extract_strided_slice %237 {offsets = [0, 0], sizes = [2, 1], strides = [1, 1]} : vector<6x1xf32> to vector<2x1xf32>
    %239 = vector.shape_cast %238 : vector<2x1xf32> to vector<1x2x1xf32>
    %cst_59 = arith.constant dense<0.000000e+00> : vector<1xf32>
    %240 = vector.multi_reduction <add>, %239, %cst_59 [1, 2] : vector<1x2x1xf32> to vector<1xf32>
    %241 = vector.shape_cast %240 : vector<1xf32> to vector<1x1x1xf32>
    %242 = vector.extract %241[0, 0, 0] : f32 from vector<1x1x1xf32>
    %243 = vector.broadcast %242 : f32 to vector<1x1xf32>
    %244 = vector.extract_strided_slice %237 {offsets = [2, 0], sizes = [2, 1], strides = [1, 1]} : vector<6x1xf32> to vector<2x1xf32>
    %245 = vector.shape_cast %244 : vector<2x1xf32> to vector<1x2x1xf32>
    %cst_60 = arith.constant dense<0.000000e+00> : vector<1xf32>
    %246 = vector.multi_reduction <add>, %245, %cst_60 [1, 2] : vector<1x2x1xf32> to vector<1xf32>
    %247 = vector.shape_cast %246 : vector<1xf32> to vector<1x1x1xf32>
    %248 = vector.extract %247[0, 0, 0] : f32 from vector<1x1x1xf32>
    %249 = vector.broadcast %248 : f32 to vector<1x1xf32>
    %250 = vector.extract_strided_slice %237 {offsets = [4, 0], sizes = [2, 1], strides = [1, 1]} : vector<6x1xf32> to vector<2x1xf32>
    %251 = vector.shape_cast %250 : vector<2x1xf32> to vector<1x2x1xf32>
    %cst_61 = arith.constant dense<0.000000e+00> : vector<1xf32>
    %252 = vector.multi_reduction <add>, %251, %cst_61 [1, 2] : vector<1x2x1xf32> to vector<1xf32>
    %253 = vector.shape_cast %252 : vector<1xf32> to vector<1x1x1xf32>
    %254 = vector.extract %253[0, 0, 0] : f32 from vector<1x1x1xf32>
    %255 = vector.broadcast %254 : f32 to vector<1x1xf32>
    %256 = arith.divf %249, %243 : vector<1x1xf32>
    %257 = arith.divf %255, %243 : vector<1x1xf32>
    %258 = tpu.concatenate %256, %257 in 1 : vector<1x1xf32>, vector<1x1xf32> -> vector<1x2xf32>
    %c7_62 = arith.constant 7 : index
    %c0_63 = arith.constant 0 : index
    %259 = vector.load %arg1[%c7_62, %c0_63] : memref<11x2xf32, #tpu.memory_space<vmem>>, vector<1x2xf32>
    tpu.vector_store %arg1[%c7_62, %c0_63], %258 {strides = array<i32>} : memref<11x2xf32, #tpu.memory_space<vmem>>, vector<1x2xf32>,
    %260 = math.floor %257 : vector<1x1xf32>
    %261 = arith.subf %168, %257 : vector<1x1xf32>
    %262 = math.ceil %261 : vector<1x1xf32>
    %263 = arith.subf %262, %187 : vector<1x1xf32>
    %264 = math.absf %263 : vector<1x1xf32>
    %cst_64 = arith.constant 3.500000e-01 : f32
    %265 = vector.broadcast %cst_64 : f32 to vector<1x1xf32>
    %266 = arith.mulf %265, %187 : vector<1x1xf32>
    %267 = arith.cmpf ogt, %264, %266 : vector<1x1xf32>
    %268 = arith.addf %180, %262 : vector<1x1xf32>
    %269 = arith.select %267, %268, %180 : vector<1x1xi1>, vector<1x1xf32>
    %cst_65 = arith.constant 1.000000e+00 : f32
    %270 = vector.broadcast %cst_65 : f32 to vector<1x1xf32>
    %271 = arith.addf %183, %270 : vector<1x1xf32>
    %272 = arith.select %267, %271, %183 : vector<1x1xi1>, vector<1x1xf32>
    %cst_66 = arith.constant 1.000000e+00 : f32
    %273 = vector.broadcast %cst_66 : f32 to vector<1x1xf32>
    %274 = arith.maximumf %272, %273 : vector<1x1xf32>
    %275 = arith.divf %269, %274 : vector<1x1xf32>
    %276 = arith.select %267, %275, %187 : vector<1x1xi1>, vector<1x1xf32>
    %cst_67 = arith.constant 1.800000e+00 : f32
    %277 = vector.broadcast %cst_67 : f32 to vector<1x1xf32>
    %278 = arith.mulf %277, %276 : vector<1x1xf32>
    %279 = arith.subf %260, %278 : vector<1x1xf32>
    %280 = arith.addf %279, %278 : vector<1x1xf32>
    %281 = math.roundeven %280 : vector<1x1xf32>
    %282 = math.roundeven %279 : vector<1x1xf32>
    %cst_68 = arith.constant 0.000000e+00 : f32
    %283 = vector.broadcast %cst_68 : f32 to vector<1x1xf32>
    %284 = arith.cmpf olt, %282, %283 : vector<1x1xf32>
    %cst_69 = arith.constant 1.600000e+01 : f32
    %285 = vector.broadcast %cst_69 : f32 to vector<1x1xf32>
    %286 = arith.addf %282, %285 : vector<1x1xf32>
    %287 = arith.select %284, %286, %282 : vector<1x1xi1>, vector<1x1xf32>
    %cst_70 = arith.constant 0.000000e+00 : f32
    %cst_71 = arith.constant 1.600000e+01 : f32
    %288 = vector.broadcast %cst_70 : f32 to vector<1x1xf32>
    %289 = arith.maximumf %288, %287 : vector<1x1xf32>
    %290 = vector.broadcast %cst_71 : f32 to vector<1x1xf32>
    %291 = arith.minimumf %290, %289 : vector<1x1xf32>
    %cst_72 = arith.constant 1.000000e+00 : f32
    %292 = vector.broadcast %cst_72 : f32 to vector<1x1xf32>
    %293 = arith.addf %281, %292 : vector<1x1xf32>
    %cst_73 = arith.constant 0.000000e+00 : f32
    %294 = vector.broadcast %cst_73 : f32 to vector<1x1xf32>
    %295 = arith.cmpf olt, %293, %294 : vector<1x1xf32>
    %cst_74 = arith.constant 1.600000e+01 : f32
    %296 = vector.broadcast %cst_74 : f32 to vector<1x1xf32>
    %297 = arith.addf %293, %296 : vector<1x1xf32>
    %298 = arith.select %295, %297, %293 : vector<1x1xi1>, vector<1x1xf32>
    %cst_75 = arith.constant 0.000000e+00 : f32
    %cst_76 = arith.constant 1.600000e+01 : f32
    %299 = vector.broadcast %cst_75 : f32 to vector<1x1xf32>
    %300 = arith.maximumf %299, %298 : vector<1x1xf32>
    %301 = vector.broadcast %cst_76 : f32 to vector<1x1xf32>
    %302 = arith.minimumf %301, %300 : vector<1x1xf32>
    %c6 = arith.constant 6 : index
    %c0_77 = arith.constant 0 : index
    %c0_78 = arith.constant 0 : index
    %303 = vector.load %arg0[%c6, %c0_77, %c0_78] : memref<11x2x128xf32, #tpu.memory_space<vmem>>, vector<1x2x128xf32>
    %304 = vector.shape_cast %303 : vector<1x2x128xf32> to vector<2x128xf32>
    %cst_79 = arith.constant 1.000000e+02 : f32
    %305 = vector.broadcast %cst_79 : f32 to vector<2x128xf32>
    %306 = arith.mulf %304, %305 : vector<2x128xf32>
    %307 = vector.broadcast %291 : vector<1x1xf32> to vector<2x128xf32>
    %308 = arith.cmpf oge, %9, %307 : vector<2x128xf32>
    %309 = vector.broadcast %302 : vector<1x1xf32> to vector<2x128xf32>
    %310 = arith.cmpf olt, %9, %309 : vector<2x128xf32>
    %311 = arith.andi %308, %310 : vector<2x128xi1>
    %cst_80 = arith.constant 0.000000e+00 : f32
    %312 = vector.broadcast %cst_80 : f32 to vector<2x128xf32>
    %313 = arith.select %311, %306, %312 : vector<2x128xi1>, vector<2x128xf32>
    %314 = vector.shape_cast %313 : vector<2x128xf32> to vector<1x2x128xf32>
    %cst_81 = arith.constant dense<0xFF800000> : vector<1xf32>
    %315 = vector.multi_reduction <maximumf>, %314, %cst_81 [1, 2] : vector<1x2x128xf32> to vector<1xf32>
    %316 = vector.shape_cast %315 : vector<1xf32> to vector<1x1x1xf32>
    %317 = vector.extract %316[0, 0, 0] : f32 from vector<1x1x1xf32>
    %318 = vector.broadcast %317 : f32 to vector<1x1xf32>
    %319 = vector.broadcast %318 : vector<1x1xf32> to vector<2x128xf32>
    %320 = arith.subf %313, %319 : vector<2x128xf32>
    %321 = math.exp %320 : vector<2x128xf32>
    %322 = arith.mulf %321, %10 : vector<2x128xf32>
    %323 = arith.mulf %321, %9 : vector<2x128xf32>
    %324 = tpu.concatenate %321, %322, %323 in 0 : vector<2x128xf32>, vector<2x128xf32>, vector<2x128xf32> -> vector<6x128xf32>
    %cst_82 = arith.constant dense<0.000000e+00> : vector<6xf32>
    %325 = vector.multi_reduction <add>, %324, %cst_82 [1] : vector<6x128xf32> to vector<6xf32>
    %326 = vector.shape_cast %325 : vector<6xf32> to vector<6x1xf32>
    %327 = vector.extract_strided_slice %326 {offsets = [0, 0], sizes = [2, 1], strides = [1, 1]} : vector<6x1xf32> to vector<2x1xf32>
    %328 = vector.shape_cast %327 : vector<2x1xf32> to vector<1x2x1xf32>
    %cst_83 = arith.constant dense<0.000000e+00> : vector<1xf32>
    %329 = vector.multi_reduction <add>, %328, %cst_83 [1, 2] : vector<1x2x1xf32> to vector<1xf32>
    %330 = vector.shape_cast %329 : vector<1xf32> to vector<1x1x1xf32>
    %331 = vector.extract %330[0, 0, 0] : f32 from vector<1x1x1xf32>
    %332 = vector.broadcast %331 : f32 to vector<1x1xf32>
    %333 = vector.extract_strided_slice %326 {offsets = [2, 0], sizes = [2, 1], strides = [1, 1]} : vector<6x1xf32> to vector<2x1xf32>
    %334 = vector.shape_cast %333 : vector<2x1xf32> to vector<1x2x1xf32>
    %cst_84 = arith.constant dense<0.000000e+00> : vector<1xf32>
    %335 = vector.multi_reduction <add>, %334, %cst_84 [1, 2] : vector<1x2x1xf32> to vector<1xf32>
    %336 = vector.shape_cast %335 : vector<1xf32> to vector<1x1x1xf32>
    %337 = vector.extract %336[0, 0, 0] : f32 from vector<1x1x1xf32>
    %338 = vector.broadcast %337 : f32 to vector<1x1xf32>
    %339 = vector.extract_strided_slice %326 {offsets = [4, 0], sizes = [2, 1], strides = [1, 1]} : vector<6x1xf32> to vector<2x1xf32>
    %340 = vector.shape_cast %339 : vector<2x1xf32> to vector<1x2x1xf32>
    %cst_85 = arith.constant dense<0.000000e+00> : vector<1xf32>
    %341 = vector.multi_reduction <add>, %340, %cst_85 [1, 2] : vector<1x2x1xf32> to vector<1xf32>
    %342 = vector.shape_cast %341 : vector<1xf32> to vector<1x1x1xf32>
    %343 = vector.extract %342[0, 0, 0] : f32 from vector<1x1x1xf32>
    %344 = vector.broadcast %343 : f32 to vector<1x1xf32>
    %345 = arith.divf %338, %332 : vector<1x1xf32>
    %346 = arith.divf %344, %332 : vector<1x1xf32>
    %347 = tpu.concatenate %345, %346 in 1 : vector<1x1xf32>, vector<1x1xf32> -> vector<1x2xf32>
    %c6_86 = arith.constant 6 : index
    %c0_87 = arith.constant 0 : index
    %348 = vector.load %arg1[%c6_86, %c0_87] : memref<11x2xf32, #tpu.memory_space<vmem>>, vector<1x2xf32>
    tpu.vector_store %arg1[%c6_86, %c0_87], %347 {strides = array<i32>} : memref<11x2xf32, #tpu.memory_space<vmem>>, vector<1x2xf32>,
    %349 = math.floor %346 : vector<1x1xf32>
    %350 = arith.subf %257, %346 : vector<1x1xf32>
    %351 = math.ceil %350 : vector<1x1xf32>
    %352 = arith.subf %351, %276 : vector<1x1xf32>
    %353 = math.absf %352 : vector<1x1xf32>
    %cst_88 = arith.constant 3.500000e-01 : f32
    %354 = vector.broadcast %cst_88 : f32 to vector<1x1xf32>
    %355 = arith.mulf %354, %276 : vector<1x1xf32>
    %356 = arith.cmpf ogt, %353, %355 : vector<1x1xf32>
    %357 = arith.addf %269, %351 : vector<1x1xf32>
    %358 = arith.select %356, %357, %269 : vector<1x1xi1>, vector<1x1xf32>
    %cst_89 = arith.constant 1.000000e+00 : f32
    %359 = vector.broadcast %cst_89 : f32 to vector<1x1xf32>
    %360 = arith.addf %272, %359 : vector<1x1xf32>
    %361 = arith.select %356, %360, %272 : vector<1x1xi1>, vector<1x1xf32>
    %cst_90 = arith.constant 1.000000e+00 : f32
    %362 = vector.broadcast %cst_90 : f32 to vector<1x1xf32>
    %363 = arith.maximumf %361, %362 : vector<1x1xf32>
    %364 = arith.divf %358, %363 : vector<1x1xf32>
    %365 = arith.select %356, %364, %276 : vector<1x1xi1>, vector<1x1xf32>
    %cst_91 = arith.constant 1.800000e+00 : f32
    %366 = vector.broadcast %cst_91 : f32 to vector<1x1xf32>
    %367 = arith.mulf %366, %365 : vector<1x1xf32>
    %368 = arith.subf %349, %367 : vector<1x1xf32>
    %369 = arith.addf %368, %367 : vector<1x1xf32>
    %370 = math.roundeven %369 : vector<1x1xf32>
    %371 = math.roundeven %368 : vector<1x1xf32>
    %cst_92 = arith.constant 0.000000e+00 : f32
    %372 = vector.broadcast %cst_92 : f32 to vector<1x1xf32>
    %373 = arith.cmpf olt, %371, %372 : vector<1x1xf32>
    %cst_93 = arith.constant 1.600000e+01 : f32
    %374 = vector.broadcast %cst_93 : f32 to vector<1x1xf32>
    %375 = arith.addf %371, %374 : vector<1x1xf32>
    %376 = arith.select %373, %375, %371 : vector<1x1xi1>, vector<1x1xf32>
    %cst_94 = arith.constant 0.000000e+00 : f32
    %cst_95 = arith.constant 1.600000e+01 : f32
    %377 = vector.broadcast %cst_94 : f32 to vector<1x1xf32>
    %378 = arith.maximumf %377, %376 : vector<1x1xf32>
    %379 = vector.broadcast %cst_95 : f32 to vector<1x1xf32>
    %380 = arith.minimumf %379, %378 : vector<1x1xf32>
    %cst_96 = arith.constant 1.000000e+00 : f32
    %381 = vector.broadcast %cst_96 : f32 to vector<1x1xf32>
    %382 = arith.addf %370, %381 : vector<1x1xf32>
    %cst_97 = arith.constant 0.000000e+00 : f32
    %383 = vector.broadcast %cst_97 : f32 to vector<1x1xf32>
    %384 = arith.cmpf olt, %382, %383 : vector<1x1xf32>
    %cst_98 = arith.constant 1.600000e+01 : f32
    %385 = vector.broadcast %cst_98 : f32 to vector<1x1xf32>
    %386 = arith.addf %382, %385 : vector<1x1xf32>
    %387 = arith.select %384, %386, %382 : vector<1x1xi1>, vector<1x1xf32>
    %cst_99 = arith.constant 0.000000e+00 : f32
    %cst_100 = arith.constant 1.600000e+01 : f32
    %388 = vector.broadcast %cst_99 : f32 to vector<1x1xf32>
    %389 = arith.maximumf %388, %387 : vector<1x1xf32>
    %390 = vector.broadcast %cst_100 : f32 to vector<1x1xf32>
    %391 = arith.minimumf %390, %389 : vector<1x1xf32>
    %c5 = arith.constant 5 : index
    %c0_101 = arith.constant 0 : index
    %c0_102 = arith.constant 0 : index
    %392 = vector.load %arg0[%c5, %c0_101, %c0_102] : memref<11x2x128xf32, #tpu.memory_space<vmem>>, vector<1x2x128xf32>
    %393 = vector.shape_cast %392 : vector<1x2x128xf32> to vector<2x128xf32>
    %cst_103 = arith.constant 1.000000e+02 : f32
    %394 = vector.broadcast %cst_103 : f32 to vector<2x128xf32>
    %395 = arith.mulf %393, %394 : vector<2x128xf32>
    %396 = vector.broadcast %380 : vector<1x1xf32> to vector<2x128xf32>
    %397 = arith.cmpf oge, %9, %396 : vector<2x128xf32>
    %398 = vector.broadcast %391 : vector<1x1xf32> to vector<2x128xf32>
    %399 = arith.cmpf olt, %9, %398 : vector<2x128xf32>
    %400 = arith.andi %397, %399 : vector<2x128xi1>
    %cst_104 = arith.constant 0.000000e+00 : f32
    %401 = vector.broadcast %cst_104 : f32 to vector<2x128xf32>
    %402 = arith.select %400, %395, %401 : vector<2x128xi1>, vector<2x128xf32>
    %403 = vector.shape_cast %402 : vector<2x128xf32> to vector<1x2x128xf32>
    %cst_105 = arith.constant dense<0xFF800000> : vector<1xf32>
    %404 = vector.multi_reduction <maximumf>, %403, %cst_105 [1, 2] : vector<1x2x128xf32> to vector<1xf32>
    %405 = vector.shape_cast %404 : vector<1xf32> to vector<1x1x1xf32>
    %406 = vector.extract %405[0, 0, 0] : f32 from vector<1x1x1xf32>
    %407 = vector.broadcast %406 : f32 to vector<1x1xf32>
    %408 = vector.broadcast %407 : vector<1x1xf32> to vector<2x128xf32>
    %409 = arith.subf %402, %408 : vector<2x128xf32>
    %410 = math.exp %409 : vector<2x128xf32>
    %411 = arith.mulf %410, %10 : vector<2x128xf32>
    %412 = arith.mulf %410, %9 : vector<2x128xf32>
    %413 = tpu.concatenate %410, %411, %412 in 0 : vector<2x128xf32>, vector<2x128xf32>, vector<2x128xf32> -> vector<6x128xf32>
    %cst_106 = arith.constant dense<0.000000e+00> : vector<6xf32>
    %414 = vector.multi_reduction <add>, %413, %cst_106 [1] : vector<6x128xf32> to vector<6xf32>
    %415 = vector.shape_cast %414 : vector<6xf32> to vector<6x1xf32>
    %416 = vector.extract_strided_slice %415 {offsets = [0, 0], sizes = [2, 1], strides = [1, 1]} : vector<6x1xf32> to vector<2x1xf32>
    %417 = vector.shape_cast %416 : vector<2x1xf32> to vector<1x2x1xf32>
    %cst_107 = arith.constant dense<0.000000e+00> : vector<1xf32>
    %418 = vector.multi_reduction <add>, %417, %cst_107 [1, 2] : vector<1x2x1xf32> to vector<1xf32>
    %419 = vector.shape_cast %418 : vector<1xf32> to vector<1x1x1xf32>
    %420 = vector.extract %419[0, 0, 0] : f32 from vector<1x1x1xf32>
    %421 = vector.broadcast %420 : f32 to vector<1x1xf32>
    %422 = vector.extract_strided_slice %415 {offsets = [2, 0], sizes = [2, 1], strides = [1, 1]} : vector<6x1xf32> to vector<2x1xf32>
    %423 = vector.shape_cast %422 : vector<2x1xf32> to vector<1x2x1xf32>
    %cst_108 = arith.constant dense<0.000000e+00> : vector<1xf32>
    %424 = vector.multi_reduction <add>, %423, %cst_108 [1, 2] : vector<1x2x1xf32> to vector<1xf32>
    %425 = vector.shape_cast %424 : vector<1xf32> to vector<1x1x1xf32>
    %426 = vector.extract %425[0, 0, 0] : f32 from vector<1x1x1xf32>
    %427 = vector.broadcast %426 : f32 to vector<1x1xf32>
    %428 = vector.extract_strided_slice %415 {offsets = [4, 0], sizes = [2, 1], strides = [1, 1]} : vector<6x1xf32> to vector<2x1xf32>
    %429 = vector.shape_cast %428 : vector<2x1xf32> to vector<1x2x1xf32>
    %cst_109 = arith.constant dense<0.000000e+00> : vector<1xf32>
    %430 = vector.multi_reduction <add>, %429, %cst_109 [1, 2] : vector<1x2x1xf32> to vector<1xf32>
    %431 = vector.shape_cast %430 : vector<1xf32> to vector<1x1x1xf32>
    %432 = vector.extract %431[0, 0, 0] : f32 from vector<1x1x1xf32>
    %433 = vector.broadcast %432 : f32 to vector<1x1xf32>
    %434 = arith.divf %427, %421 : vector<1x1xf32>
    %435 = arith.divf %433, %421 : vector<1x1xf32>
    %436 = tpu.concatenate %434, %435 in 1 : vector<1x1xf32>, vector<1x1xf32> -> vector<1x2xf32>
    %c5_110 = arith.constant 5 : index
    %c0_111 = arith.constant 0 : index
    %437 = vector.load %arg1[%c5_110, %c0_111] : memref<11x2xf32, #tpu.memory_space<vmem>>, vector<1x2xf32>
    tpu.vector_store %arg1[%c5_110, %c0_111], %436 {strides = array<i32>} : memref<11x2xf32, #tpu.memory_space<vmem>>, vector<1x2xf32>,
    %438 = math.floor %435 : vector<1x1xf32>
    %439 = arith.subf %346, %435 : vector<1x1xf32>
    %440 = math.ceil %439 : vector<1x1xf32>
    %441 = arith.subf %440, %365 : vector<1x1xf32>
    %442 = math.absf %441 : vector<1x1xf32>
    %cst_112 = arith.constant 3.500000e-01 : f32
    %443 = vector.broadcast %cst_112 : f32 to vector<1x1xf32>
    %444 = arith.mulf %443, %365 : vector<1x1xf32>
    %445 = arith.cmpf ogt, %442, %444 : vector<1x1xf32>
    %446 = arith.addf %358, %440 : vector<1x1xf32>
    %447 = arith.select %445, %446, %358 : vector<1x1xi1>, vector<1x1xf32>
    %cst_113 = arith.constant 1.000000e+00 : f32
    %448 = vector.broadcast %cst_113 : f32 to vector<1x1xf32>
    %449 = arith.addf %361, %448 : vector<1x1xf32>
    %450 = arith.select %445, %449, %361 : vector<1x1xi1>, vector<1x1xf32>
    %cst_114 = arith.constant 1.000000e+00 : f32
    %451 = vector.broadcast %cst_114 : f32 to vector<1x1xf32>
    %452 = arith.maximumf %450, %451 : vector<1x1xf32>
    %453 = arith.divf %447, %452 : vector<1x1xf32>
    %454 = arith.select %445, %453, %365 : vector<1x1xi1>, vector<1x1xf32>
    %cst_115 = arith.constant 1.800000e+00 : f32
    %455 = vector.broadcast %cst_115 : f32 to vector<1x1xf32>
    %456 = arith.mulf %455, %454 : vector<1x1xf32>
    %457 = arith.subf %438, %456 : vector<1x1xf32>
    %458 = arith.addf %457, %456 : vector<1x1xf32>
    %459 = math.roundeven %458 : vector<1x1xf32>
    %460 = math.roundeven %457 : vector<1x1xf32>
    %cst_116 = arith.constant 0.000000e+00 : f32
    %461 = vector.broadcast %cst_116 : f32 to vector<1x1xf32>
    %462 = arith.cmpf olt, %460, %461 : vector<1x1xf32>
    %cst_117 = arith.constant 1.600000e+01 : f32
    %463 = vector.broadcast %cst_117 : f32 to vector<1x1xf32>
    %464 = arith.addf %460, %463 : vector<1x1xf32>
    %465 = arith.select %462, %464, %460 : vector<1x1xi1>, vector<1x1xf32>
    %cst_118 = arith.constant 0.000000e+00 : f32
    %cst_119 = arith.constant 1.600000e+01 : f32
    %466 = vector.broadcast %cst_118 : f32 to vector<1x1xf32>
    %467 = arith.maximumf %466, %465 : vector<1x1xf32>
    %468 = vector.broadcast %cst_119 : f32 to vector<1x1xf32>
    %469 = arith.minimumf %468, %467 : vector<1x1xf32>
    %cst_120 = arith.constant 1.000000e+00 : f32
    %470 = vector.broadcast %cst_120 : f32 to vector<1x1xf32>
    %471 = arith.addf %459, %470 : vector<1x1xf32>
    %cst_121 = arith.constant 0.000000e+00 : f32
    %472 = vector.broadcast %cst_121 : f32 to vector<1x1xf32>
    %473 = arith.cmpf olt, %471, %472 : vector<1x1xf32>
    %cst_122 = arith.constant 1.600000e+01 : f32
    %474 = vector.broadcast %cst_122 : f32 to vector<1x1xf32>
    %475 = arith.addf %471, %474 : vector<1x1xf32>
    %476 = arith.select %473, %475, %471 : vector<1x1xi1>, vector<1x1xf32>
    %cst_123 = arith.constant 0.000000e+00 : f32
    %cst_124 = arith.constant 1.600000e+01 : f32
    %477 = vector.broadcast %cst_123 : f32 to vector<1x1xf32>
    %478 = arith.maximumf %477, %476 : vector<1x1xf32>
    %479 = vector.broadcast %cst_124 : f32 to vector<1x1xf32>
    %480 = arith.minimumf %479, %478 : vector<1x1xf32>
    %c4 = arith.constant 4 : index
    %c0_125 = arith.constant 0 : index
    %c0_126 = arith.constant 0 : index
    %481 = vector.load %arg0[%c4, %c0_125, %c0_126] : memref<11x2x128xf32, #tpu.memory_space<vmem>>, vector<1x2x128xf32>
    %482 = vector.shape_cast %481 : vector<1x2x128xf32> to vector<2x128xf32>
    %cst_127 = arith.constant 1.000000e+02 : f32
    %483 = vector.broadcast %cst_127 : f32 to vector<2x128xf32>
    %484 = arith.mulf %482, %483 : vector<2x128xf32>
    %485 = vector.broadcast %469 : vector<1x1xf32> to vector<2x128xf32>
    %486 = arith.cmpf oge, %9, %485 : vector<2x128xf32>
    %487 = vector.broadcast %480 : vector<1x1xf32> to vector<2x128xf32>
    %488 = arith.cmpf olt, %9, %487 : vector<2x128xf32>
    %489 = arith.andi %486, %488 : vector<2x128xi1>
    %cst_128 = arith.constant 0.000000e+00 : f32
    %490 = vector.broadcast %cst_128 : f32 to vector<2x128xf32>
    %491 = arith.select %489, %484, %490 : vector<2x128xi1>, vector<2x128xf32>
    %492 = vector.shape_cast %491 : vector<2x128xf32> to vector<1x2x128xf32>
    %cst_129 = arith.constant dense<0xFF800000> : vector<1xf32>
    %493 = vector.multi_reduction <maximumf>, %492, %cst_129 [1, 2] : vector<1x2x128xf32> to vector<1xf32>
    %494 = vector.shape_cast %493 : vector<1xf32> to vector<1x1x1xf32>
    %495 = vector.extract %494[0, 0, 0] : f32 from vector<1x1x1xf32>
    %496 = vector.broadcast %495 : f32 to vector<1x1xf32>
    %497 = vector.broadcast %496 : vector<1x1xf32> to vector<2x128xf32>
    %498 = arith.subf %491, %497 : vector<2x128xf32>
    %499 = math.exp %498 : vector<2x128xf32>
    %500 = arith.mulf %499, %10 : vector<2x128xf32>
    %501 = arith.mulf %499, %9 : vector<2x128xf32>
    %502 = tpu.concatenate %499, %500, %501 in 0 : vector<2x128xf32>, vector<2x128xf32>, vector<2x128xf32> -> vector<6x128xf32>
    %cst_130 = arith.constant dense<0.000000e+00> : vector<6xf32>
    %503 = vector.multi_reduction <add>, %502, %cst_130 [1] : vector<6x128xf32> to vector<6xf32>
    %504 = vector.shape_cast %503 : vector<6xf32> to vector<6x1xf32>
    %505 = vector.extract_strided_slice %504 {offsets = [0, 0], sizes = [2, 1], strides = [1, 1]} : vector<6x1xf32> to vector<2x1xf32>
    %506 = vector.shape_cast %505 : vector<2x1xf32> to vector<1x2x1xf32>
    %cst_131 = arith.constant dense<0.000000e+00> : vector<1xf32>
    %507 = vector.multi_reduction <add>, %506, %cst_131 [1, 2] : vector<1x2x1xf32> to vector<1xf32>
    %508 = vector.shape_cast %507 : vector<1xf32> to vector<1x1x1xf32>
    %509 = vector.extract %508[0, 0, 0] : f32 from vector<1x1x1xf32>
    %510 = vector.broadcast %509 : f32 to vector<1x1xf32>
    %511 = vector.extract_strided_slice %504 {offsets = [2, 0], sizes = [2, 1], strides = [1, 1]} : vector<6x1xf32> to vector<2x1xf32>
    %512 = vector.shape_cast %511 : vector<2x1xf32> to vector<1x2x1xf32>
    %cst_132 = arith.constant dense<0.000000e+00> : vector<1xf32>
    %513 = vector.multi_reduction <add>, %512, %cst_132 [1, 2] : vector<1x2x1xf32> to vector<1xf32>
    %514 = vector.shape_cast %513 : vector<1xf32> to vector<1x1x1xf32>
    %515 = vector.extract %514[0, 0, 0] : f32 from vector<1x1x1xf32>
    %516 = vector.broadcast %515 : f32 to vector<1x1xf32>
    %517 = vector.extract_strided_slice %504 {offsets = [4, 0], sizes = [2, 1], strides = [1, 1]} : vector<6x1xf32> to vector<2x1xf32>
    %518 = vector.shape_cast %517 : vector<2x1xf32> to vector<1x2x1xf32>
    %cst_133 = arith.constant dense<0.000000e+00> : vector<1xf32>
    %519 = vector.multi_reduction <add>, %518, %cst_133 [1, 2] : vector<1x2x1xf32> to vector<1xf32>
    %520 = vector.shape_cast %519 : vector<1xf32> to vector<1x1x1xf32>
    %521 = vector.extract %520[0, 0, 0] : f32 from vector<1x1x1xf32>
    %522 = vector.broadcast %521 : f32 to vector<1x1xf32>
    %523 = arith.divf %516, %510 : vector<1x1xf32>
    %524 = arith.divf %522, %510 : vector<1x1xf32>
    %525 = tpu.concatenate %523, %524 in 1 : vector<1x1xf32>, vector<1x1xf32> -> vector<1x2xf32>
    %c4_134 = arith.constant 4 : index
    %c0_135 = arith.constant 0 : index
    %526 = vector.load %arg1[%c4_134, %c0_135] : memref<11x2xf32, #tpu.memory_space<vmem>>, vector<1x2xf32>
    tpu.vector_store %arg1[%c4_134, %c0_135], %525 {strides = array<i32>} : memref<11x2xf32, #tpu.memory_space<vmem>>, vector<1x2xf32>,
    %527 = math.floor %524 : vector<1x1xf32>
    %528 = arith.subf %435, %524 : vector<1x1xf32>
    %529 = math.ceil %528 : vector<1x1xf32>
    %530 = arith.subf %529, %454 : vector<1x1xf32>
    %531 = math.absf %530 : vector<1x1xf32>
    %cst_136 = arith.constant 3.500000e-01 : f32
    %532 = vector.broadcast %cst_136 : f32 to vector<1x1xf32>
    %533 = arith.mulf %532, %454 : vector<1x1xf32>
    %534 = arith.cmpf ogt, %531, %533 : vector<1x1xf32>
    %535 = arith.addf %447, %529 : vector<1x1xf32>
    %536 = arith.select %534, %535, %447 : vector<1x1xi1>, vector<1x1xf32>
    %cst_137 = arith.constant 1.000000e+00 : f32
    %537 = vector.broadcast %cst_137 : f32 to vector<1x1xf32>
    %538 = arith.addf %450, %537 : vector<1x1xf32>
    %539 = arith.select %534, %538, %450 : vector<1x1xi1>, vector<1x1xf32>
    %cst_138 = arith.constant 1.000000e+00 : f32
    %540 = vector.broadcast %cst_138 : f32 to vector<1x1xf32>
    %541 = arith.maximumf %539, %540 : vector<1x1xf32>
    %542 = arith.divf %536, %541 : vector<1x1xf32>
    %543 = arith.select %534, %542, %454 : vector<1x1xi1>, vector<1x1xf32>
    %cst_139 = arith.constant 1.800000e+00 : f32
    %544 = vector.broadcast %cst_139 : f32 to vector<1x1xf32>
    %545 = arith.mulf %544, %543 : vector<1x1xf32>
    %546 = arith.subf %527, %545 : vector<1x1xf32>
    %547 = arith.addf %546, %545 : vector<1x1xf32>
    %548 = math.roundeven %547 : vector<1x1xf32>
    %549 = math.roundeven %546 : vector<1x1xf32>
    %cst_140 = arith.constant 0.000000e+00 : f32
    %550 = vector.broadcast %cst_140 : f32 to vector<1x1xf32>
    %551 = arith.cmpf olt, %549, %550 : vector<1x1xf32>
    %cst_141 = arith.constant 1.600000e+01 : f32
    %552 = vector.broadcast %cst_141 : f32 to vector<1x1xf32>
    %553 = arith.addf %549, %552 : vector<1x1xf32>
    %554 = arith.select %551, %553, %549 : vector<1x1xi1>, vector<1x1xf32>
    %cst_142 = arith.constant 0.000000e+00 : f32
    %cst_143 = arith.constant 1.600000e+01 : f32
    %555 = vector.broadcast %cst_142 : f32 to vector<1x1xf32>
    %556 = arith.maximumf %555, %554 : vector<1x1xf32>
    %557 = vector.broadcast %cst_143 : f32 to vector<1x1xf32>
    %558 = arith.minimumf %557, %556 : vector<1x1xf32>
    %cst_144 = arith.constant 1.000000e+00 : f32
    %559 = vector.broadcast %cst_144 : f32 to vector<1x1xf32>
    %560 = arith.addf %548, %559 : vector<1x1xf32>
    %cst_145 = arith.constant 0.000000e+00 : f32
    %561 = vector.broadcast %cst_145 : f32 to vector<1x1xf32>
    %562 = arith.cmpf olt, %560, %561 : vector<1x1xf32>
    %cst_146 = arith.constant 1.600000e+01 : f32
    %563 = vector.broadcast %cst_146 : f32 to vector<1x1xf32>
    %564 = arith.addf %560, %563 : vector<1x1xf32>
    %565 = arith.select %562, %564, %560 : vector<1x1xi1>, vector<1x1xf32>
    %cst_147 = arith.constant 0.000000e+00 : f32
    %cst_148 = arith.constant 1.600000e+01 : f32
    %566 = vector.broadcast %cst_147 : f32 to vector<1x1xf32>
    %567 = arith.maximumf %566, %565 : vector<1x1xf32>
    %568 = vector.broadcast %cst_148 : f32 to vector<1x1xf32>
    %569 = arith.minimumf %568, %567 : vector<1x1xf32>
    %c3 = arith.constant 3 : index
    %c0_149 = arith.constant 0 : index
    %c0_150 = arith.constant 0 : index
    %570 = vector.load %arg0[%c3, %c0_149, %c0_150] : memref<11x2x128xf32, #tpu.memory_space<vmem>>, vector<1x2x128xf32>
    %571 = vector.shape_cast %570 : vector<1x2x128xf32> to vector<2x128xf32>
    %cst_151 = arith.constant 1.000000e+02 : f32
    %572 = vector.broadcast %cst_151 : f32 to vector<2x128xf32>
    %573 = arith.mulf %571, %572 : vector<2x128xf32>
    %574 = vector.broadcast %558 : vector<1x1xf32> to vector<2x128xf32>
    %575 = arith.cmpf oge, %9, %574 : vector<2x128xf32>
    %576 = vector.broadcast %569 : vector<1x1xf32> to vector<2x128xf32>
    %577 = arith.cmpf olt, %9, %576 : vector<2x128xf32>
    %578 = arith.andi %575, %577 : vector<2x128xi1>
    %cst_152 = arith.constant 0.000000e+00 : f32
    %579 = vector.broadcast %cst_152 : f32 to vector<2x128xf32>
    %580 = arith.select %578, %573, %579 : vector<2x128xi1>, vector<2x128xf32>
    %581 = vector.shape_cast %580 : vector<2x128xf32> to vector<1x2x128xf32>
    %cst_153 = arith.constant dense<0xFF800000> : vector<1xf32>
    %582 = vector.multi_reduction <maximumf>, %581, %cst_153 [1, 2] : vector<1x2x128xf32> to vector<1xf32>
    %583 = vector.shape_cast %582 : vector<1xf32> to vector<1x1x1xf32>
    %584 = vector.extract %583[0, 0, 0] : f32 from vector<1x1x1xf32>
    %585 = vector.broadcast %584 : f32 to vector<1x1xf32>
    %586 = vector.broadcast %585 : vector<1x1xf32> to vector<2x128xf32>
    %587 = arith.subf %580, %586 : vector<2x128xf32>
    %588 = math.exp %587 : vector<2x128xf32>
    %589 = arith.mulf %588, %10 : vector<2x128xf32>
    %590 = arith.mulf %588, %9 : vector<2x128xf32>
    %591 = tpu.concatenate %588, %589, %590 in 0 : vector<2x128xf32>, vector<2x128xf32>, vector<2x128xf32> -> vector<6x128xf32>
    %cst_154 = arith.constant dense<0.000000e+00> : vector<6xf32>
    %592 = vector.multi_reduction <add>, %591, %cst_154 [1] : vector<6x128xf32> to vector<6xf32>
    %593 = vector.shape_cast %592 : vector<6xf32> to vector<6x1xf32>
    %594 = vector.extract_strided_slice %593 {offsets = [0, 0], sizes = [2, 1], strides = [1, 1]} : vector<6x1xf32> to vector<2x1xf32>
    %595 = vector.shape_cast %594 : vector<2x1xf32> to vector<1x2x1xf32>
    %cst_155 = arith.constant dense<0.000000e+00> : vector<1xf32>
    %596 = vector.multi_reduction <add>, %595, %cst_155 [1, 2] : vector<1x2x1xf32> to vector<1xf32>
    %597 = vector.shape_cast %596 : vector<1xf32> to vector<1x1x1xf32>
    %598 = vector.extract %597[0, 0, 0] : f32 from vector<1x1x1xf32>
    %599 = vector.broadcast %598 : f32 to vector<1x1xf32>
    %600 = vector.extract_strided_slice %593 {offsets = [2, 0], sizes = [2, 1], strides = [1, 1]} : vector<6x1xf32> to vector<2x1xf32>
    %601 = vector.shape_cast %600 : vector<2x1xf32> to vector<1x2x1xf32>
    %cst_156 = arith.constant dense<0.000000e+00> : vector<1xf32>
    %602 = vector.multi_reduction <add>, %601, %cst_156 [1, 2] : vector<1x2x1xf32> to vector<1xf32>
    %603 = vector.shape_cast %602 : vector<1xf32> to vector<1x1x1xf32>
    %604 = vector.extract %603[0, 0, 0] : f32 from vector<1x1x1xf32>
    %605 = vector.broadcast %604 : f32 to vector<1x1xf32>
    %606 = vector.extract_strided_slice %593 {offsets = [4, 0], sizes = [2, 1], strides = [1, 1]} : vector<6x1xf32> to vector<2x1xf32>
    %607 = vector.shape_cast %606 : vector<2x1xf32> to vector<1x2x1xf32>
    %cst_157 = arith.constant dense<0.000000e+00> : vector<1xf32>
    %608 = vector.multi_reduction <add>, %607, %cst_157 [1, 2] : vector<1x2x1xf32> to vector<1xf32>
    %609 = vector.shape_cast %608 : vector<1xf32> to vector<1x1x1xf32>
    %610 = vector.extract %609[0, 0, 0] : f32 from vector<1x1x1xf32>
    %611 = vector.broadcast %610 : f32 to vector<1x1xf32>
    %612 = arith.divf %605, %599 : vector<1x1xf32>
    %613 = arith.divf %611, %599 : vector<1x1xf32>
    %614 = tpu.concatenate %612, %613 in 1 : vector<1x1xf32>, vector<1x1xf32> -> vector<1x2xf32>
    %c3_158 = arith.constant 3 : index
    %c0_159 = arith.constant 0 : index
    %615 = vector.load %arg1[%c3_158, %c0_159] : memref<11x2xf32, #tpu.memory_space<vmem>>, vector<1x2xf32>
    tpu.vector_store %arg1[%c3_158, %c0_159], %614 {strides = array<i32>} : memref<11x2xf32, #tpu.memory_space<vmem>>, vector<1x2xf32>,
    %616 = math.floor %613 : vector<1x1xf32>
    %617 = arith.subf %524, %613 : vector<1x1xf32>
    %618 = math.ceil %617 : vector<1x1xf32>
    %619 = arith.subf %618, %543 : vector<1x1xf32>
    %620 = math.absf %619 : vector<1x1xf32>
    %cst_160 = arith.constant 3.500000e-01 : f32
    %621 = vector.broadcast %cst_160 : f32 to vector<1x1xf32>
    %622 = arith.mulf %621, %543 : vector<1x1xf32>
    %623 = arith.cmpf ogt, %620, %622 : vector<1x1xf32>
    %624 = arith.addf %536, %618 : vector<1x1xf32>
    %625 = arith.select %623, %624, %536 : vector<1x1xi1>, vector<1x1xf32>
    %cst_161 = arith.constant 1.000000e+00 : f32
    %626 = vector.broadcast %cst_161 : f32 to vector<1x1xf32>
    %627 = arith.addf %539, %626 : vector<1x1xf32>
    %628 = arith.select %623, %627, %539 : vector<1x1xi1>, vector<1x1xf32>
    %cst_162 = arith.constant 1.000000e+00 : f32
    %629 = vector.broadcast %cst_162 : f32 to vector<1x1xf32>
    %630 = arith.maximumf %628, %629 : vector<1x1xf32>
    %631 = arith.divf %625, %630 : vector<1x1xf32>
    %632 = arith.select %623, %631, %543 : vector<1x1xi1>, vector<1x1xf32>
    %cst_163 = arith.constant 1.800000e+00 : f32
    %633 = vector.broadcast %cst_163 : f32 to vector<1x1xf32>
    %634 = arith.mulf %633, %632 : vector<1x1xf32>
    %635 = arith.subf %616, %634 : vector<1x1xf32>
    %636 = arith.addf %635, %634 : vector<1x1xf32>
    %637 = math.roundeven %636 : vector<1x1xf32>
    %638 = math.roundeven %635 : vector<1x1xf32>
    %cst_164 = arith.constant 0.000000e+00 : f32
    %639 = vector.broadcast %cst_164 : f32 to vector<1x1xf32>
    %640 = arith.cmpf olt, %638, %639 : vector<1x1xf32>
    %cst_165 = arith.constant 1.600000e+01 : f32
    %641 = vector.broadcast %cst_165 : f32 to vector<1x1xf32>
    %642 = arith.addf %638, %641 : vector<1x1xf32>
    %643 = arith.select %640, %642, %638 : vector<1x1xi1>, vector<1x1xf32>
    %cst_166 = arith.constant 0.000000e+00 : f32
    %cst_167 = arith.constant 1.600000e+01 : f32
    %644 = vector.broadcast %cst_166 : f32 to vector<1x1xf32>
    %645 = arith.maximumf %644, %643 : vector<1x1xf32>
    %646 = vector.broadcast %cst_167 : f32 to vector<1x1xf32>
    %647 = arith.minimumf %646, %645 : vector<1x1xf32>
    %cst_168 = arith.constant 1.000000e+00 : f32
    %648 = vector.broadcast %cst_168 : f32 to vector<1x1xf32>
    %649 = arith.addf %637, %648 : vector<1x1xf32>
    %cst_169 = arith.constant 0.000000e+00 : f32
    %650 = vector.broadcast %cst_169 : f32 to vector<1x1xf32>
    %651 = arith.cmpf olt, %649, %650 : vector<1x1xf32>
    %cst_170 = arith.constant 1.600000e+01 : f32
    %652 = vector.broadcast %cst_170 : f32 to vector<1x1xf32>
    %653 = arith.addf %649, %652 : vector<1x1xf32>
    %654 = arith.select %651, %653, %649 : vector<1x1xi1>, vector<1x1xf32>
    %cst_171 = arith.constant 0.000000e+00 : f32
    %cst_172 = arith.constant 1.600000e+01 : f32
    %655 = vector.broadcast %cst_171 : f32 to vector<1x1xf32>
    %656 = arith.maximumf %655, %654 : vector<1x1xf32>
    %657 = vector.broadcast %cst_172 : f32 to vector<1x1xf32>
    %658 = arith.minimumf %657, %656 : vector<1x1xf32>
    %c2 = arith.constant 2 : index
    %c0_173 = arith.constant 0 : index
    %c0_174 = arith.constant 0 : index
    %659 = vector.load %arg0[%c2, %c0_173, %c0_174] : memref<11x2x128xf32, #tpu.memory_space<vmem>>, vector<1x2x128xf32>
    %660 = vector.shape_cast %659 : vector<1x2x128xf32> to vector<2x128xf32>
    %cst_175 = arith.constant 1.000000e+02 : f32
    %661 = vector.broadcast %cst_175 : f32 to vector<2x128xf32>
    %662 = arith.mulf %660, %661 : vector<2x128xf32>
    %663 = vector.broadcast %647 : vector<1x1xf32> to vector<2x128xf32>
    %664 = arith.cmpf oge, %9, %663 : vector<2x128xf32>
    %665 = vector.broadcast %658 : vector<1x1xf32> to vector<2x128xf32>
    %666 = arith.cmpf olt, %9, %665 : vector<2x128xf32>
    %667 = arith.andi %664, %666 : vector<2x128xi1>
    %cst_176 = arith.constant 0.000000e+00 : f32
    %668 = vector.broadcast %cst_176 : f32 to vector<2x128xf32>
    %669 = arith.select %667, %662, %668 : vector<2x128xi1>, vector<2x128xf32>
    %670 = vector.shape_cast %669 : vector<2x128xf32> to vector<1x2x128xf32>
    %cst_177 = arith.constant dense<0xFF800000> : vector<1xf32>
    %671 = vector.multi_reduction <maximumf>, %670, %cst_177 [1, 2] : vector<1x2x128xf32> to vector<1xf32>
    %672 = vector.shape_cast %671 : vector<1xf32> to vector<1x1x1xf32>
    %673 = vector.extract %672[0, 0, 0] : f32 from vector<1x1x1xf32>
    %674 = vector.broadcast %673 : f32 to vector<1x1xf32>
    %675 = vector.broadcast %674 : vector<1x1xf32> to vector<2x128xf32>
    %676 = arith.subf %669, %675 : vector<2x128xf32>
    %677 = math.exp %676 : vector<2x128xf32>
    %678 = arith.mulf %677, %10 : vector<2x128xf32>
    %679 = arith.mulf %677, %9 : vector<2x128xf32>
    %680 = tpu.concatenate %677, %678, %679 in 0 : vector<2x128xf32>, vector<2x128xf32>, vector<2x128xf32> -> vector<6x128xf32>
    %cst_178 = arith.constant dense<0.000000e+00> : vector<6xf32>
    %681 = vector.multi_reduction <add>, %680, %cst_178 [1] : vector<6x128xf32> to vector<6xf32>
    %682 = vector.shape_cast %681 : vector<6xf32> to vector<6x1xf32>
    %683 = vector.extract_strided_slice %682 {offsets = [0, 0], sizes = [2, 1], strides = [1, 1]} : vector<6x1xf32> to vector<2x1xf32>
    %684 = vector.shape_cast %683 : vector<2x1xf32> to vector<1x2x1xf32>
    %cst_179 = arith.constant dense<0.000000e+00> : vector<1xf32>
    %685 = vector.multi_reduction <add>, %684, %cst_179 [1, 2] : vector<1x2x1xf32> to vector<1xf32>
    %686 = vector.shape_cast %685 : vector<1xf32> to vector<1x1x1xf32>
    %687 = vector.extract %686[0, 0, 0] : f32 from vector<1x1x1xf32>
    %688 = vector.broadcast %687 : f32 to vector<1x1xf32>
    %689 = vector.extract_strided_slice %682 {offsets = [2, 0], sizes = [2, 1], strides = [1, 1]} : vector<6x1xf32> to vector<2x1xf32>
    %690 = vector.shape_cast %689 : vector<2x1xf32> to vector<1x2x1xf32>
    %cst_180 = arith.constant dense<0.000000e+00> : vector<1xf32>
    %691 = vector.multi_reduction <add>, %690, %cst_180 [1, 2] : vector<1x2x1xf32> to vector<1xf32>
    %692 = vector.shape_cast %691 : vector<1xf32> to vector<1x1x1xf32>
    %693 = vector.extract %692[0, 0, 0] : f32 from vector<1x1x1xf32>
    %694 = vector.broadcast %693 : f32 to vector<1x1xf32>
    %695 = vector.extract_strided_slice %682 {offsets = [4, 0], sizes = [2, 1], strides = [1, 1]} : vector<6x1xf32> to vector<2x1xf32>
    %696 = vector.shape_cast %695 : vector<2x1xf32> to vector<1x2x1xf32>
    %cst_181 = arith.constant dense<0.000000e+00> : vector<1xf32>
    %697 = vector.multi_reduction <add>, %696, %cst_181 [1, 2] : vector<1x2x1xf32> to vector<1xf32>
    %698 = vector.shape_cast %697 : vector<1xf32> to vector<1x1x1xf32>
    %699 = vector.extract %698[0, 0, 0] : f32 from vector<1x1x1xf32>
    %700 = vector.broadcast %699 : f32 to vector<1x1xf32>
    %701 = arith.divf %694, %688 : vector<1x1xf32>
    %702 = arith.divf %700, %688 : vector<1x1xf32>
    %703 = tpu.concatenate %701, %702 in 1 : vector<1x1xf32>, vector<1x1xf32> -> vector<1x2xf32>
    %c2_182 = arith.constant 2 : index
    %c0_183 = arith.constant 0 : index
    %704 = vector.load %arg1[%c2_182, %c0_183] : memref<11x2xf32, #tpu.memory_space<vmem>>, vector<1x2xf32>
    tpu.vector_store %arg1[%c2_182, %c0_183], %703 {strides = array<i32>} : memref<11x2xf32, #tpu.memory_space<vmem>>, vector<1x2xf32>,
    %705 = math.floor %702 : vector<1x1xf32>
    %706 = arith.subf %613, %702 : vector<1x1xf32>
    %707 = math.ceil %706 : vector<1x1xf32>
    %708 = arith.subf %707, %632 : vector<1x1xf32>
    %709 = math.absf %708 : vector<1x1xf32>
    %cst_184 = arith.constant 3.500000e-01 : f32
    %710 = vector.broadcast %cst_184 : f32 to vector<1x1xf32>
    %711 = arith.mulf %710, %632 : vector<1x1xf32>
    %712 = arith.cmpf ogt, %709, %711 : vector<1x1xf32>
    %713 = arith.addf %625, %707 : vector<1x1xf32>
    %714 = arith.select %712, %713, %625 : vector<1x1xi1>, vector<1x1xf32>
    %cst_185 = arith.constant 1.000000e+00 : f32
    %715 = vector.broadcast %cst_185 : f32 to vector<1x1xf32>
    %716 = arith.addf %628, %715 : vector<1x1xf32>
    %717 = arith.select %712, %716, %628 : vector<1x1xi1>, vector<1x1xf32>
    %cst_186 = arith.constant 1.000000e+00 : f32
    %718 = vector.broadcast %cst_186 : f32 to vector<1x1xf32>
    %719 = arith.maximumf %717, %718 : vector<1x1xf32>
    %720 = arith.divf %714, %719 : vector<1x1xf32>
    %721 = arith.select %712, %720, %632 : vector<1x1xi1>, vector<1x1xf32>
    %cst_187 = arith.constant 1.800000e+00 : f32
    %722 = vector.broadcast %cst_187 : f32 to vector<1x1xf32>
    %723 = arith.mulf %722, %721 : vector<1x1xf32>
    %724 = arith.subf %705, %723 : vector<1x1xf32>
    %725 = arith.addf %724, %723 : vector<1x1xf32>
    %726 = math.roundeven %725 : vector<1x1xf32>
    %727 = math.roundeven %724 : vector<1x1xf32>
    %cst_188 = arith.constant 0.000000e+00 : f32
    %728 = vector.broadcast %cst_188 : f32 to vector<1x1xf32>
    %729 = arith.cmpf olt, %727, %728 : vector<1x1xf32>
    %cst_189 = arith.constant 1.600000e+01 : f32
    %730 = vector.broadcast %cst_189 : f32 to vector<1x1xf32>
    %731 = arith.addf %727, %730 : vector<1x1xf32>
    %732 = arith.select %729, %731, %727 : vector<1x1xi1>, vector<1x1xf32>
    %cst_190 = arith.constant 0.000000e+00 : f32
    %cst_191 = arith.constant 1.600000e+01 : f32
    %733 = vector.broadcast %cst_190 : f32 to vector<1x1xf32>
    %734 = arith.maximumf %733, %732 : vector<1x1xf32>
    %735 = vector.broadcast %cst_191 : f32 to vector<1x1xf32>
    %736 = arith.minimumf %735, %734 : vector<1x1xf32>
    %cst_192 = arith.constant 1.000000e+00 : f32
    %737 = vector.broadcast %cst_192 : f32 to vector<1x1xf32>
    %738 = arith.addf %726, %737 : vector<1x1xf32>
    %cst_193 = arith.constant 0.000000e+00 : f32
    %739 = vector.broadcast %cst_193 : f32 to vector<1x1xf32>
    %740 = arith.cmpf olt, %738, %739 : vector<1x1xf32>
    %cst_194 = arith.constant 1.600000e+01 : f32
    %741 = vector.broadcast %cst_194 : f32 to vector<1x1xf32>
    %742 = arith.addf %738, %741 : vector<1x1xf32>
    %743 = arith.select %740, %742, %738 : vector<1x1xi1>, vector<1x1xf32>
    %cst_195 = arith.constant 0.000000e+00 : f32
    %cst_196 = arith.constant 1.600000e+01 : f32
    %744 = vector.broadcast %cst_195 : f32 to vector<1x1xf32>
    %745 = arith.maximumf %744, %743 : vector<1x1xf32>
    %746 = vector.broadcast %cst_196 : f32 to vector<1x1xf32>
    %747 = arith.minimumf %746, %745 : vector<1x1xf32>
    %c1 = arith.constant 1 : index
    %c0_197 = arith.constant 0 : index
    %c0_198 = arith.constant 0 : index
    %748 = vector.load %arg0[%c1, %c0_197, %c0_198] : memref<11x2x128xf32, #tpu.memory_space<vmem>>, vector<1x2x128xf32>
    %749 = vector.shape_cast %748 : vector<1x2x128xf32> to vector<2x128xf32>
    %cst_199 = arith.constant 1.000000e+02 : f32
    %750 = vector.broadcast %cst_199 : f32 to vector<2x128xf32>
    %751 = arith.mulf %749, %750 : vector<2x128xf32>
    %752 = vector.broadcast %736 : vector<1x1xf32> to vector<2x128xf32>
    %753 = arith.cmpf oge, %9, %752 : vector<2x128xf32>
    %754 = vector.broadcast %747 : vector<1x1xf32> to vector<2x128xf32>
    %755 = arith.cmpf olt, %9, %754 : vector<2x128xf32>
    %756 = arith.andi %753, %755 : vector<2x128xi1>
    %cst_200 = arith.constant 0.000000e+00 : f32
    %757 = vector.broadcast %cst_200 : f32 to vector<2x128xf32>
    %758 = arith.select %756, %751, %757 : vector<2x128xi1>, vector<2x128xf32>
    %759 = vector.shape_cast %758 : vector<2x128xf32> to vector<1x2x128xf32>
    %cst_201 = arith.constant dense<0xFF800000> : vector<1xf32>
    %760 = vector.multi_reduction <maximumf>, %759, %cst_201 [1, 2] : vector<1x2x128xf32> to vector<1xf32>
    %761 = vector.shape_cast %760 : vector<1xf32> to vector<1x1x1xf32>
    %762 = vector.extract %761[0, 0, 0] : f32 from vector<1x1x1xf32>
    %763 = vector.broadcast %762 : f32 to vector<1x1xf32>
    %764 = vector.broadcast %763 : vector<1x1xf32> to vector<2x128xf32>
    %765 = arith.subf %758, %764 : vector<2x128xf32>
    %766 = math.exp %765 : vector<2x128xf32>
    %767 = arith.mulf %766, %10 : vector<2x128xf32>
    %768 = arith.mulf %766, %9 : vector<2x128xf32>
    %769 = tpu.concatenate %766, %767, %768 in 0 : vector<2x128xf32>, vector<2x128xf32>, vector<2x128xf32> -> vector<6x128xf32>
    %cst_202 = arith.constant dense<0.000000e+00> : vector<6xf32>
    %770 = vector.multi_reduction <add>, %769, %cst_202 [1] : vector<6x128xf32> to vector<6xf32>
    %771 = vector.shape_cast %770 : vector<6xf32> to vector<6x1xf32>
    %772 = vector.extract_strided_slice %771 {offsets = [0, 0], sizes = [2, 1], strides = [1, 1]} : vector<6x1xf32> to vector<2x1xf32>
    %773 = vector.shape_cast %772 : vector<2x1xf32> to vector<1x2x1xf32>
    %cst_203 = arith.constant dense<0.000000e+00> : vector<1xf32>
    %774 = vector.multi_reduction <add>, %773, %cst_203 [1, 2] : vector<1x2x1xf32> to vector<1xf32>
    %775 = vector.shape_cast %774 : vector<1xf32> to vector<1x1x1xf32>
    %776 = vector.extract %775[0, 0, 0] : f32 from vector<1x1x1xf32>
    %777 = vector.broadcast %776 : f32 to vector<1x1xf32>
    %778 = vector.extract_strided_slice %771 {offsets = [2, 0], sizes = [2, 1], strides = [1, 1]} : vector<6x1xf32> to vector<2x1xf32>
    %779 = vector.shape_cast %778 : vector<2x1xf32> to vector<1x2x1xf32>
    %cst_204 = arith.constant dense<0.000000e+00> : vector<1xf32>
    %780 = vector.multi_reduction <add>, %779, %cst_204 [1, 2] : vector<1x2x1xf32> to vector<1xf32>
    %781 = vector.shape_cast %780 : vector<1xf32> to vector<1x1x1xf32>
    %782 = vector.extract %781[0, 0, 0] : f32 from vector<1x1x1xf32>
    %783 = vector.broadcast %782 : f32 to vector<1x1xf32>
    %784 = vector.extract_strided_slice %771 {offsets = [4, 0], sizes = [2, 1], strides = [1, 1]} : vector<6x1xf32> to vector<2x1xf32>
    %785 = vector.shape_cast %784 : vector<2x1xf32> to vector<1x2x1xf32>
    %cst_205 = arith.constant dense<0.000000e+00> : vector<1xf32>
    %786 = vector.multi_reduction <add>, %785, %cst_205 [1, 2] : vector<1x2x1xf32> to vector<1xf32>
    %787 = vector.shape_cast %786 : vector<1xf32> to vector<1x1x1xf32>
    %788 = vector.extract %787[0, 0, 0] : f32 from vector<1x1x1xf32>
    %789 = vector.broadcast %788 : f32 to vector<1x1xf32>
    %790 = arith.divf %783, %777 : vector<1x1xf32>
    %791 = arith.divf %789, %777 : vector<1x1xf32>
    %792 = tpu.concatenate %790, %791 in 1 : vector<1x1xf32>, vector<1x1xf32> -> vector<1x2xf32>
    %c1_206 = arith.constant 1 : index
    %c0_207 = arith.constant 0 : index
    %793 = vector.load %arg1[%c1_206, %c0_207] : memref<11x2xf32, #tpu.memory_space<vmem>>, vector<1x2xf32>
    tpu.vector_store %arg1[%c1_206, %c0_207], %792 {strides = array<i32>} : memref<11x2xf32, #tpu.memory_space<vmem>>, vector<1x2xf32>,
    %794 = math.floor %791 : vector<1x1xf32>
    %795 = arith.subf %702, %791 : vector<1x1xf32>
    %796 = math.ceil %795 : vector<1x1xf32>
    %797 = arith.subf %796, %721 : vector<1x1xf32>
    %798 = math.absf %797 : vector<1x1xf32>
    %cst_208 = arith.constant 3.500000e-01 : f32
    %799 = vector.broadcast %cst_208 : f32 to vector<1x1xf32>
    %800 = arith.mulf %799, %721 : vector<1x1xf32>
    %801 = arith.cmpf ogt, %798, %800 : vector<1x1xf32>
    %802 = arith.addf %714, %796 : vector<1x1xf32>
    %803 = arith.select %801, %802, %714 : vector<1x1xi1>, vector<1x1xf32>
    %cst_209 = arith.constant 1.000000e+00 : f32
    %804 = vector.broadcast %cst_209 : f32 to vector<1x1xf32>
    %805 = arith.addf %717, %804 : vector<1x1xf32>
    %806 = arith.select %801, %805, %717 : vector<1x1xi1>, vector<1x1xf32>
    %cst_210 = arith.constant 1.000000e+00 : f32
    %807 = vector.broadcast %cst_210 : f32 to vector<1x1xf32>
    %808 = arith.maximumf %806, %807 : vector<1x1xf32>
    %809 = arith.divf %803, %808 : vector<1x1xf32>
    %810 = arith.select %801, %809, %721 : vector<1x1xi1>, vector<1x1xf32>
    %cst_211 = arith.constant 1.800000e+00 : f32
    %811 = vector.broadcast %cst_211 : f32 to vector<1x1xf32>
    %812 = arith.mulf %811, %810 : vector<1x1xf32>
    %813 = arith.subf %794, %812 : vector<1x1xf32>
    %814 = arith.addf %813, %812 : vector<1x1xf32>
    %815 = math.roundeven %814 : vector<1x1xf32>
    %816 = math.roundeven %813 : vector<1x1xf32>
    %cst_212 = arith.constant 0.000000e+00 : f32
    %817 = vector.broadcast %cst_212 : f32 to vector<1x1xf32>
    %818 = arith.cmpf olt, %816, %817 : vector<1x1xf32>
    %cst_213 = arith.constant 1.600000e+01 : f32
    %819 = vector.broadcast %cst_213 : f32 to vector<1x1xf32>
    %820 = arith.addf %816, %819 : vector<1x1xf32>
    %821 = arith.select %818, %820, %816 : vector<1x1xi1>, vector<1x1xf32>
    %cst_214 = arith.constant 0.000000e+00 : f32
    %cst_215 = arith.constant 1.600000e+01 : f32
    %822 = vector.broadcast %cst_214 : f32 to vector<1x1xf32>
    %823 = arith.maximumf %822, %821 : vector<1x1xf32>
    %824 = vector.broadcast %cst_215 : f32 to vector<1x1xf32>
    %825 = arith.minimumf %824, %823 : vector<1x1xf32>
    %cst_216 = arith.constant 1.000000e+00 : f32
    %826 = vector.broadcast %cst_216 : f32 to vector<1x1xf32>
    %827 = arith.addf %815, %826 : vector<1x1xf32>
    %cst_217 = arith.constant 0.000000e+00 : f32
    %828 = vector.broadcast %cst_217 : f32 to vector<1x1xf32>
    %829 = arith.cmpf olt, %827, %828 : vector<1x1xf32>
    %cst_218 = arith.constant 1.600000e+01 : f32
    %830 = vector.broadcast %cst_218 : f32 to vector<1x1xf32>
    %831 = arith.addf %827, %830 : vector<1x1xf32>
    %832 = arith.select %829, %831, %827 : vector<1x1xi1>, vector<1x1xf32>
    %cst_219 = arith.constant 0.000000e+00 : f32
    %cst_220 = arith.constant 1.600000e+01 : f32
    %833 = vector.broadcast %cst_219 : f32 to vector<1x1xf32>
    %834 = arith.maximumf %833, %832 : vector<1x1xf32>
    %835 = vector.broadcast %cst_220 : f32 to vector<1x1xf32>
    %836 = arith.minimumf %835, %834 : vector<1x1xf32>
    %c0_221 = arith.constant 0 : index
    %c0_222 = arith.constant 0 : index
    %c0_223 = arith.constant 0 : index
    %837 = vector.load %arg0[%c0_221, %c0_222, %c0_223] : memref<11x2x128xf32, #tpu.memory_space<vmem>>, vector<1x2x128xf32>
    %838 = vector.shape_cast %837 : vector<1x2x128xf32> to vector<2x128xf32>
    %cst_224 = arith.constant 1.000000e+02 : f32
    %839 = vector.broadcast %cst_224 : f32 to vector<2x128xf32>
    %840 = arith.mulf %838, %839 : vector<2x128xf32>
    %841 = vector.broadcast %825 : vector<1x1xf32> to vector<2x128xf32>
    %842 = arith.cmpf oge, %9, %841 : vector<2x128xf32>
    %843 = vector.broadcast %836 : vector<1x1xf32> to vector<2x128xf32>
    %844 = arith.cmpf olt, %9, %843 : vector<2x128xf32>
    %845 = arith.andi %842, %844 : vector<2x128xi1>
    %cst_225 = arith.constant 0.000000e+00 : f32
    %846 = vector.broadcast %cst_225 : f32 to vector<2x128xf32>
    %847 = arith.select %845, %840, %846 : vector<2x128xi1>, vector<2x128xf32>
    %848 = vector.shape_cast %847 : vector<2x128xf32> to vector<1x2x128xf32>
    %cst_226 = arith.constant dense<0xFF800000> : vector<1xf32>
    %849 = vector.multi_reduction <maximumf>, %848, %cst_226 [1, 2] : vector<1x2x128xf32> to vector<1xf32>
    %850 = vector.shape_cast %849 : vector<1xf32> to vector<1x1x1xf32>
    %851 = vector.extract %850[0, 0, 0] : f32 from vector<1x1x1xf32>
    %852 = vector.broadcast %851 : f32 to vector<1x1xf32>
    %853 = vector.broadcast %852 : vector<1x1xf32> to vector<2x128xf32>
    %854 = arith.subf %847, %853 : vector<2x128xf32>
    %855 = math.exp %854 : vector<2x128xf32>
    %856 = arith.mulf %855, %10 : vector<2x128xf32>
    %857 = arith.mulf %855, %9 : vector<2x128xf32>
    %858 = tpu.concatenate %855, %856, %857 in 0 : vector<2x128xf32>, vector<2x128xf32>, vector<2x128xf32> -> vector<6x128xf32>
    %cst_227 = arith.constant dense<0.000000e+00> : vector<6xf32>
    %859 = vector.multi_reduction <add>, %858, %cst_227 [1] : vector<6x128xf32> to vector<6xf32>
    %860 = vector.shape_cast %859 : vector<6xf32> to vector<6x1xf32>
    %861 = vector.extract_strided_slice %860 {offsets = [0, 0], sizes = [2, 1], strides = [1, 1]} : vector<6x1xf32> to vector<2x1xf32>
    %862 = vector.shape_cast %861 : vector<2x1xf32> to vector<1x2x1xf32>
    %cst_228 = arith.constant dense<0.000000e+00> : vector<1xf32>
    %863 = vector.multi_reduction <add>, %862, %cst_228 [1, 2] : vector<1x2x1xf32> to vector<1xf32>
    %864 = vector.shape_cast %863 : vector<1xf32> to vector<1x1x1xf32>
    %865 = vector.extract %864[0, 0, 0] : f32 from vector<1x1x1xf32>
    %866 = vector.broadcast %865 : f32 to vector<1x1xf32>
    %867 = vector.extract_strided_slice %860 {offsets = [2, 0], sizes = [2, 1], strides = [1, 1]} : vector<6x1xf32> to vector<2x1xf32>
    %868 = vector.shape_cast %867 : vector<2x1xf32> to vector<1x2x1xf32>
    %cst_229 = arith.constant dense<0.000000e+00> : vector<1xf32>
    %869 = vector.multi_reduction <add>, %868, %cst_229 [1, 2] : vector<1x2x1xf32> to vector<1xf32>
    %870 = vector.shape_cast %869 : vector<1xf32> to vector<1x1x1xf32>
    %871 = vector.extract %870[0, 0, 0] : f32 from vector<1x1x1xf32>
    %872 = vector.broadcast %871 : f32 to vector<1x1xf32>
    %873 = vector.extract_strided_slice %860 {offsets = [4, 0], sizes = [2, 1], strides = [1, 1]} : vector<6x1xf32> to vector<2x1xf32>
    %874 = vector.shape_cast %873 : vector<2x1xf32> to vector<1x2x1xf32>
    %cst_230 = arith.constant dense<0.000000e+00> : vector<1xf32>
    %875 = vector.multi_reduction <add>, %874, %cst_230 [1, 2] : vector<1x2x1xf32> to vector<1xf32>
    %876 = vector.shape_cast %875 : vector<1xf32> to vector<1x1x1xf32>
    %877 = vector.extract %876[0, 0, 0] : f32 from vector<1x1x1xf32>
    %878 = vector.broadcast %877 : f32 to vector<1x1xf32>
    %879 = arith.divf %872, %866 : vector<1x1xf32>
    %880 = arith.divf %878, %866 : vector<1x1xf32>
    %881 = tpu.concatenate %879, %880 in 1 : vector<1x1xf32>, vector<1x1xf32> -> vector<1x2xf32>
    %c0_231 = arith.constant 0 : index
    %c0_232 = arith.constant 0 : index
    %882 = vector.load %arg1[%c0_231, %c0_232] : memref<11x2xf32, #tpu.memory_space<vmem>>, vector<1x2xf32>
    tpu.vector_store %arg1[%c0_231, %c0_232], %881 {strides = array<i32>} : memref<11x2xf32, #tpu.memory_space<vmem>>, vector<1x2xf32>,
    return
  }
}

</mosaic_0001>

<bundles_post_ra>
// kernel: squeeze.1
= control target key start
LH: loop header
LB: loop body
LE: loop exit
PB: predicated region body
PF: predicated region fallthrough
CT: control target
= control target key end

     0   :  { %2 = vsyncpa [#allocation1], 0  ;;  %s513_s6 = smov [#allocation0]   ;;  %s644_s0 = inlined_call_operand.hbm [shape: f32[1,11,16,16], index: 0, kind: input, shape index: {}]   ;;  %s645_s1 = inlined_call_operand.vmem [shape: f32[11,2,128], index: 1, kind: output, shape index: {}]  }
   0x1   :  { %s7_s7 = sshll.u32 %s513_s6, 4  ;;  %s489_s10 = scalar_lea.hbm %s644_s0, 2816  ;;  %s8_s7 = int_to_ptr.vmem [resolvable:$true] %s7_s7 }
   0x2   :  { %p490_p0 = scmp.ne.s32.totalorder %s644_s0, %s489_s10  ;;  %p493_p1 = scmp.lt.u32.totalorder %s489_s10, %s644_s0 }
   0x4   :  { %p495_p2 = pnand %p493_p1, %p490_p0 }
   0x6   :  { %498 = shalt.err (!%p495_p2)
}
   0x7   :  { %s499_s15 = scalar_lea.vmem %s8_s7, 2816  ;;  %p504_p4 = scmp.lt.s32.totalorder %s8_s7, %s8_s7 }
   0x8   :  { %p500_p3 = scmp.ne.s32.totalorder %s8_s7, %s499_s15  ;;  %p505_p5 = scmp.lt.s32.totalorder %s499_s15, %s499_s15 }
   0xa   :  { %p506_p6 = por %p505_p5, %p504_p4 }
   0xc   :  { %p507_p7 = pnand %p506_p6, %p500_p3 }
   0xe   :  { %510 = shalt.err (!%p507_p7)
}
   0xf   :  { %10 = dma.hbm_to_vmem [thread:$0]  %s644_s0, 2816, %s8_s7, [#allocation1]  }
  0x10   :  { %511 = dma.done.wait [#allocation1], 2816  }
  0x11   :  { %512 = vsyncadd [#allocation1], 4294964480  ;;  %vm14_vm0 = vcmask 1047556   ;;  %s89_s0 = smov 48  ;;  %vm44_vm1 = vcmask 1045508   ;;  %s138_s18 = smov 48 }
  0x12   :  { %v54_v0 = vld [vmem:[#allocation0 + $0x7] ss:$8 sm:$0xf]   ;;  %s514_s19 = smov 112   ;;  %v139_v15 = vld [vmem:[#allocation0 + $0x86] ss:$8 sm:%s138_s18]  }
  0x13   :  { %v56_v1 = vld [vmem:[#allocation0 + $0x7] ss:$8 sm:$0xf0]   ;;  %v103_v9 = vld [vmem:[#allocation0 + $0x6] ss:$8 sm:$0xf]  }
  0x14   :  { %v58_v2 = vsel %vm14_vm0, %v56_v1, %v54_v0  ;;  %v87_v3 = vld [vmem:[#allocation0 + $0x87] ss:$8 sm:$0xf]   ;;  %v105_v10 = vld [vmem:[#allocation0 + $0x6] ss:$8 sm:$0xf0]  }
  0x15   :  { %v90_v4 = vld [vmem:[#allocation0 + $0x87] ss:$8 sm:%s89_s0]   ;;  %59 = vrot.lane.b32.xlu0 %v58_v2, %s514_s19  ;;  %v107_v11 = vsel %vm14_vm0, %v105_v10, %v103_v9  ;;  %v119_v12 = vld [vmem:[#allocation0 + $0x46] ss:$8 sm:$0xf]   ;;  %s515_s20 = smov 96  }
  0x16   :  { %v92_v5 = vsel %vm44_vm1, %v90_v4, %v87_v3  ;;  %v70_v6 = vld [vmem:[#allocation0 + $0x47] ss:$8 sm:$0xf]   ;;  %v121_v13 = vld [vmem:[#allocation0 + $0x46] ss:$8 sm:$0xf0]  }
  0x17   :  { %v72_v7 = vld [vmem:[#allocation0 + $0x47] ss:$8 sm:$0xf0]   ;;  %93 = vrot.lane.b32.xlu1 %v92_v5, %s514_s19  ;;  %v136_v14 = vld [vmem:[#allocation0 + $0x86] ss:$8 sm:$0xf]   ;;  %v123_v16 = vsel %vm14_vm0, %v121_v13, %v119_v12 }
  0x18   :  { %v74_v8 = vsel %vm14_vm0, %v72_v7, %v70_v6  ;;  %s187_s21 = smov 48  ;;  %v141_v17 = vsel %vm44_vm1, %v139_v15, %v136_v14  ;;  %v152_v18 = vld [vmem:[#allocation0 + $0x5] ss:$8 sm:$0xf]   ;;  %s516_s22 = smov 80   ;;  %vm16_vm2 = vcmask 130048  }
  0x19   :  { %75 = vrot.lane.b32.xlu0 %v74_v8, %s514_s19  ;;  %v154_v19 = vld [vmem:[#allocation0 + $0x5] ss:$8 sm:$0xf0]   ;;  %v201_v26 = vld [vmem:[#allocation0 + $0x4] ss:$8 sm:$0xf]  }
  0x1a   :  { %v168_v20 = vld [vmem:[#allocation0 + $0x45] ss:$8 sm:$0xf]   ;;  %v156_v22 = vsel %vm14_vm0, %v154_v19, %v152_v18  ;;  %v203_v27 = vld [vmem:[#allocation0 + $0x4] ss:$8 sm:$0xf0]  }
  0x1b   :  { %108 = vrot.lane.b32.xlu1 %v107_v11, %s515_s20  ;;  %v170_v21 = vld [vmem:[#allocation0 + $0x45] ss:$8 sm:$0xf0]   ;;  %s236_s23 = smov 48  ;;  %v205_v29 = vsel %vm14_vm0, %v203_v27, %v201_v26  ;;  %s285_s24 = smov 48  ;;  %vm61_vm3 = vcmask 1048448  }
  0x1c   :  { %v172_v23 = vsel %vm14_vm0, %v170_v21, %v168_v20  ;;  %v185_v24 = vld [vmem:[#allocation0 + $0x85] ss:$8 sm:$0xf]   ;;  %v217_v30 = vld [vmem:[#allocation0 + $0x44] ss:$8 sm:$0xf]  }
  0x1d   :  { %124 = vrot.lane.b32.xlu0 %v123_v16, %s515_s20  ;;  %v188_v25 = vld [vmem:[#allocation0 + $0x85] ss:$8 sm:%s187_s21]   ;;  %v219_v31 = vld [vmem:[#allocation0 + $0x44] ss:$8 sm:$0xf0]   ;;  %s42_s25 = smov 48 }
  0x1e   :  { %v190_v28 = vsel %vm44_vm1, %v188_v25, %v185_v24  ;;  %v234_v32 = vld [vmem:[#allocation0 + $0x84] ss:$8 sm:$0xf]   ;;  %s517_s26 = smov 64   ;;  %v221_v34 = vsel %vm14_vm0, %v219_v31, %v217_v30  ;;  %v43_v44 = vld [vmem:[#allocation0 + $0x80] ss:$8 sm:%s42_s25]  }
  0x1f   :  { %142 = vrot.lane.b32.xlu1 %v141_v17, %s515_s20  ;;  %v237_v33 = vld [vmem:[#allocation0 + $0x84] ss:$8 sm:%s236_s23]   ;;  %v250_v35 = vld [vmem:[#allocation0 + $0x3] ss:$8 sm:$0xf]   ;;  %s518_s27 = smov 48  }
  0x20   :  { %v252_v36 = vld [vmem:[#allocation0 + $0x3] ss:$8 sm:$0xf0]   ;;  %v239_v37 = vsel %vm44_vm1, %v237_v33, %v234_v32  ;;  %v12_v40 = vld [vmem:[#allocation0] ss:$8 sm:$0xf]  }
  0x21   :  { %157 = vrot.lane.b32.xlu0 %v156_v22, %s516_s22  ;;  %v266_v38 = vld [vmem:[#allocation0 + $0x43] ss:$8 sm:$0xf]   ;;  %v13_v41 = vld [vmem:[#allocation0] ss:$8 sm:$0xf0]   ;;  %v254_v45 = vsel %vm14_vm0, %v252_v36, %v250_v35 }
  0x22   :  { %v268_v39 = vld [vmem:[#allocation0 + $0x43] ss:$8 sm:$0xf0]   ;;  %v15_v42 = vsel %vm14_vm0, %v13_v41, %v12_v40  ;;  %v40_v43 = vld [vmem:[#allocation0 + $0x80] ss:$8 sm:$0xf]  }
  0x23   :  { %173 = vrot.lane.b32.xlu1 %v172_v23, %s516_s22  ;;  %17 = vst.msk [vmem:[#allocation2] sm:$0x3] %vm16_vm2, %v15_v42   ;;  %19 = vst.msk [vmem:[#allocation2 + $0x6] sm:$0xc] %vm16_vm2, %v15_v42   ;;  %v45_v46 = vsel %vm44_vm1, %v43_v44, %v40_v43  ;;  %v270_v49 = vsel %vm14_vm0, %v268_v39, %v266_v38  ;;  %v286_v51 = vld [vmem:[#allocation0 + $0x83] ss:$8 sm:%s285_s24]  }
  0x24   :  { %21 = vst.msk [vmem:[#allocation2 + $0xc] sm:$0x30] %vm16_vm2, %v15_v42   ;;  %23 = vst.msk [vmem:[#allocation2 + $0x12] sm:$0xc0] %vm16_vm2, %v15_v42   ;;  %s334_s28 = smov 48  ;;  %s519_s29 = smov 32  }
  0x25   :  { %191 = vrot.lane.b32.xlu0 %v190_v28, %s516_s22  ;;  %v25_v47 = vld [vmem:[#allocation0 + $0x40] ss:$8 sm:$0xf]   ;;  %v283_v50 = vld [vmem:[#allocation0 + $0x83] ss:$8 sm:$0xf]  }
  0x26   :  { %v27_v48 = vld [vmem:[#allocation0 + $0x40] ss:$8 sm:$0xf0]   ;;  %48 = vst.msk [vmem:[#allocation2 + $0x40] sm:$0x3] %vm16_vm2, %v45_v46   ;;  %v288_v55 = vsel %vm44_vm1, %v286_v51, %v283_v50  ;;  %s383_s30 = smov 48 }
  0x27   :  { %206 = vrot.lane.b32.xlu1 %v205_v29, %s517_s26  ;;  %50 = vst.msk [vmem:[#allocation2 + $0x46] sm:$0xc] %vm16_vm2, %v45_v46   ;;  %52 = vst.msk [vmem:[#allocation2 + $0x4c] sm:$0x30] %vm16_vm2, %v45_v46   ;;  %v29_v52 = vsel %vm14_vm0, %v27_v48, %v25_v47  ;;  %v335_v60 = vld [vmem:[#allocation0 + $0x82] ss:$8 sm:%s334_s28]  }
  0x28   :  { %v299_v53 = vld [vmem:[#allocation0 + $0x2] ss:$8 sm:$0xf]   ;;  %32 = vst.msk [vmem:[#allocation2 + $0x20] sm:$0x3] %vm16_vm2, %v29_v52   ;;  %s520_s2 = smov 16  }
  0x29   :  { %222 = vrot.lane.b32.xlu0 %v221_v34, %s517_s26  ;;  %v301_v54 = vld [vmem:[#allocation0 + $0x2] ss:$8 sm:$0xf0]   ;;  %34 = vst.msk [vmem:[#allocation2 + $0x26] sm:$0xc] %vm16_vm2, %v29_v52   ;;  %vm110_vm4 = vcmask 917248  }
  0x2a   :  { %36 = vst.msk [vmem:[#allocation2 + $0x2c] sm:$0x30] %vm16_vm2, %v29_v52   ;;  %38 = vst.msk [vmem:[#allocation2 + $0x32] sm:$0xc0] %vm16_vm2, %v29_v52   ;;  %v303_v56 = vsel %vm14_vm0, %v301_v54, %v299_v53  ;;  %v384_v6 = vld [vmem:[#allocation0 + $0x81] ss:$8 sm:%s383_s30]  }
  0x2b   :  { %240 = vrot.lane.b32.xlu1 %v239_v37, %s517_s26  ;;  %v315_v57 = vld [vmem:[#allocation0 + $0x42] ss:$8 sm:$0xf]   ;;  %v348_v63 = vld [vmem:[#allocation0 + $0x1] ss:$8 sm:$0xf]  }
  0x2c   :  { %v317_v58 = vld [vmem:[#allocation0 + $0x42] ss:$8 sm:$0xf0]   ;;  %v350_v0 = vld [vmem:[#allocation0 + $0x1] ss:$8 sm:$0xf0]  }
  0x2d   :  { %255 = vrot.lane.b32.xlu0 %v254_v45, %s518_s27  ;;  %v332_v59 = vld [vmem:[#allocation0 + $0x82] ss:$8 sm:$0xf]   ;;  %v319_v61 = vsel %vm14_vm0, %v317_v58, %v315_v57  ;;  %v364_v1 = vld [vmem:[#allocation0 + $0x41] ss:$8 sm:$0xf]   ;;  %v352_v3 = vsel %vm14_vm0, %v350_v0, %v348_v63 }
  0x2e   :  { %v337_v62 = vsel %vm44_vm1, %v335_v60, %v332_v59  ;;  %v366_v2 = vld [vmem:[#allocation0 + $0x41] ss:$8 sm:$0xf0]   ;;  %vm159_vm5 = vcmask 786048   ;;  %vm208_vm6 = vcmask 654848   ;;  %vm257_vm7 = vcmask 523648  }
  0x2f   :  { %271 = vrot.lane.b32.xlu1 %v270_v49, %s518_s27  ;;  %v368_v4 = vsel %vm14_vm0, %v366_v2, %v364_v1  ;;  %v381_v5 = vld [vmem:[#allocation0 + $0x81] ss:$8 sm:$0xf]   ;;  %vm306_vm8 = vcmask 392448   ;;  %vm355_vm9 = vcmask 261248  }
  0x30   :  { %v386_v7 = vsel %vm44_vm1, %v384_v6, %v381_v5 }
  0x31   :  { %289 = vrot.lane.b32.xlu0 %v288_v55, %s518_s27 }
  0x33   :  { %304 = vrot.lane.b32.xlu1 %v303_v56, %s519_s29 }
  0x35   :  { %320 = vrot.lane.b32.xlu0 %v319_v61, %s519_s29 }
  0x37   :  { %338 = vrot.lane.b32.xlu1 %v337_v62, %s519_s29 }
  0x39   :  { %353 = vrot.lane.b32.xlu0 %v352_v3, %s520_s2 }
  0x3b   :  { %369 = vrot.lane.b32.xlu1 %v368_v4, %s520_s2 }
  0x3d   :  { %387 = vrot.lane.b32.xlu0 %v386_v7, %s520_s2 }
  0x87   :  { %v60_v8 = vpop.permute.xlu0 %59  }
  0x88   :  { %62 = vst.msk [vmem:[#allocation2] sm:$0x3] %vm61_vm3, %v60_v8   ;;  %64 = vst.msk [vmem:[#allocation2 + $0x6] sm:$0xc] %vm61_vm3, %v60_v8  }
  0x89   :  { %66 = vst.msk [vmem:[#allocation2 + $0xc] sm:$0x30] %vm61_vm3, %v60_v8   ;;  %68 = vst.msk [vmem:[#allocation2 + $0x12] sm:$0xc0] %vm61_vm3, %v60_v8   ;;  %v94_v9 = vpop.permute.xlu1 %93  }
  0x8a   :  { %97 = vst.msk [vmem:[#allocation2 + $0x40] sm:$0x3] %vm61_vm3, %v94_v9   ;;  %99 = vst.msk [vmem:[#allocation2 + $0x46] sm:$0xc] %vm61_vm3, %v94_v9  }
  0x8b   :  { %101 = vst.msk [vmem:[#allocation2 + $0x4c] sm:$0x30] %vm61_vm3, %v94_v9   ;;  %v76_v10 = vpop.permute.xlu0 %75  }
  0x8c   :  { %79 = vst.msk [vmem:[#allocation2 + $0x20] sm:$0x3] %vm61_vm3, %v76_v10   ;;  %81 = vst.msk [vmem:[#allocation2 + $0x26] sm:$0xc] %vm61_vm3, %v76_v10  }
  0x8d   :  { %83 = vst.msk [vmem:[#allocation2 + $0x2c] sm:$0x30] %vm61_vm3, %v76_v10   ;;  %85 = vst.msk [vmem:[#allocation2 + $0x32] sm:$0xc0] %vm61_vm3, %v76_v10   ;;  %v109_v11 = vpop.permute.xlu1 %108  }
  0x8e   :  { %111 = vst.msk [vmem:[#allocation2] sm:$0x3] %vm110_vm4, %v109_v11   ;;  %113 = vst.msk [vmem:[#allocation2 + $0x6] sm:$0xc] %vm110_vm4, %v109_v11  }
  0x8f   :  { %115 = vst.msk [vmem:[#allocation2 + $0xc] sm:$0x30] %vm110_vm4, %v109_v11   ;;  %117 = vst.msk [vmem:[#allocation2 + $0x12] sm:$0xc0] %vm110_vm4, %v109_v11   ;;  %v125_v12 = vpop.permute.xlu0 %124  }
  0x90   :  { %128 = vst.msk [vmem:[#allocation2 + $0x20] sm:$0x3] %vm110_vm4, %v125_v12   ;;  %130 = vst.msk [vmem:[#allocation2 + $0x26] sm:$0xc] %vm110_vm4, %v125_v12  }
  0x91   :  { %132 = vst.msk [vmem:[#allocation2 + $0x2c] sm:$0x30] %vm110_vm4, %v125_v12   ;;  %134 = vst.msk [vmem:[#allocation2 + $0x32] sm:$0xc0] %vm110_vm4, %v125_v12   ;;  %v143_v13 = vpop.permute.xlu1 %142  }
  0x92   :  { %146 = vst.msk [vmem:[#allocation2 + $0x40] sm:$0x3] %vm110_vm4, %v143_v13   ;;  %148 = vst.msk [vmem:[#allocation2 + $0x46] sm:$0xc] %vm110_vm4, %v143_v13  }
  0x93   :  { %150 = vst.msk [vmem:[#allocation2 + $0x4c] sm:$0x30] %vm110_vm4, %v143_v13   ;;  %v158_v14 = vpop.permute.xlu0 %157  }
  0x94   :  { %160 = vst.msk [vmem:[#allocation2] sm:$0x3] %vm159_vm5, %v158_v14   ;;  %162 = vst.msk [vmem:[#allocation2 + $0x6] sm:$0xc] %vm159_vm5, %v158_v14  }
  0x95   :  { %164 = vst.msk [vmem:[#allocation2 + $0xc] sm:$0x30] %vm159_vm5, %v158_v14   ;;  %166 = vst.msk [vmem:[#allocation2 + $0x12] sm:$0xc0] %vm159_vm5, %v158_v14   ;;  %v174_v15 = vpop.permute.xlu1 %173  }
  0x96   :  { %177 = vst.msk [vmem:[#allocation2 + $0x20] sm:$0x3] %vm159_vm5, %v174_v15   ;;  %179 = vst.msk [vmem:[#allocation2 + $0x26] sm:$0xc] %vm159_vm5, %v174_v15  }
  0x97   :  { %181 = vst.msk [vmem:[#allocation2 + $0x2c] sm:$0x30] %vm159_vm5, %v174_v15   ;;  %183 = vst.msk [vmem:[#allocation2 + $0x32] sm:$0xc0] %vm159_vm5, %v174_v15   ;;  %v192_v16 = vpop.permute.xlu0 %191  }
  0x98   :  { %195 = vst.msk [vmem:[#allocation2 + $0x40] sm:$0x3] %vm159_vm5, %v192_v16   ;;  %197 = vst.msk [vmem:[#allocation2 + $0x46] sm:$0xc] %vm159_vm5, %v192_v16  }
  0x99   :  { %199 = vst.msk [vmem:[#allocation2 + $0x4c] sm:$0x30] %vm159_vm5, %v192_v16   ;;  %v207_v17 = vpop.permute.xlu1 %206  }
  0x9a   :  { %209 = vst.msk [vmem:[#allocation2] sm:$0x3] %vm208_vm6, %v207_v17   ;;  %211 = vst.msk [vmem:[#allocation2 + $0x6] sm:$0xc] %vm208_vm6, %v207_v17  }
  0x9b   :  { %213 = vst.msk [vmem:[#allocation2 + $0xc] sm:$0x30] %vm208_vm6, %v207_v17   ;;  %215 = vst.msk [vmem:[#allocation2 + $0x12] sm:$0xc0] %vm208_vm6, %v207_v17   ;;  %v223_v18 = vpop.permute.xlu0 %222  }
  0x9c   :  { %226 = vst.msk [vmem:[#allocation2 + $0x20] sm:$0x3] %vm208_vm6, %v223_v18   ;;  %228 = vst.msk [vmem:[#allocation2 + $0x26] sm:$0xc] %vm208_vm6, %v223_v18  }
  0x9d   :  { %230 = vst.msk [vmem:[#allocation2 + $0x2c] sm:$0x30] %vm208_vm6, %v223_v18   ;;  %232 = vst.msk [vmem:[#allocation2 + $0x32] sm:$0xc0] %vm208_vm6, %v223_v18   ;;  %v241_v19 = vpop.permute.xlu1 %240  }
  0x9e   :  { %244 = vst.msk [vmem:[#allocation2 + $0x40] sm:$0x3] %vm208_vm6, %v241_v19   ;;  %246 = vst.msk [vmem:[#allocation2 + $0x46] sm:$0xc] %vm208_vm6, %v241_v19  }
  0x9f   :  { %248 = vst.msk [vmem:[#allocation2 + $0x4c] sm:$0x30] %vm208_vm6, %v241_v19   ;;  %v256_v20 = vpop.permute.xlu0 %255  }
  0xa0   :  { %258 = vst.msk [vmem:[#allocation2] sm:$0x3] %vm257_vm7, %v256_v20   ;;  %260 = vst.msk [vmem:[#allocation2 + $0x6] sm:$0xc] %vm257_vm7, %v256_v20  }
  0xa1   :  { %262 = vst.msk [vmem:[#allocation2 + $0xc] sm:$0x30] %vm257_vm7, %v256_v20   ;;  %264 = vst.msk [vmem:[#allocation2 + $0x12] sm:$0xc0] %vm257_vm7, %v256_v20   ;;  %v272_v21 = vpop.permute.xlu1 %271  }
  0xa2   :  { %275 = vst.msk [vmem:[#allocation2 + $0x20] sm:$0x3] %vm257_vm7, %v272_v21   ;;  %277 = vst.msk [vmem:[#allocation2 + $0x26] sm:$0xc] %vm257_vm7, %v272_v21  }
  0xa3   :  { %279 = vst.msk [vmem:[#allocation2 + $0x2c] sm:$0x30] %vm257_vm7, %v272_v21   ;;  %281 = vst.msk [vmem:[#allocation2 + $0x32] sm:$0xc0] %vm257_vm7, %v272_v21   ;;  %v290_v22 = vpop.permute.xlu0 %289  }
  0xa4   :  { %293 = vst.msk [vmem:[#allocation2 + $0x40] sm:$0x3] %vm257_vm7, %v290_v22   ;;  %295 = vst.msk [vmem:[#allocation2 + $0x46] sm:$0xc] %vm257_vm7, %v290_v22  }
  0xa5   :  { %297 = vst.msk [vmem:[#allocation2 + $0x4c] sm:$0x30] %vm257_vm7, %v290_v22   ;;  %v305_v23 = vpop.permute.xlu1 %304  }
  0xa6   :  { %307 = vst.msk [vmem:[#allocation2] sm:$0x3] %vm306_vm8, %v305_v23   ;;  %309 = vst.msk [vmem:[#allocation2 + $0x6] sm:$0xc] %vm306_vm8, %v305_v23  }
  0xa7   :  { %311 = vst.msk [vmem:[#allocation2 + $0xc] sm:$0x30] %vm306_vm8, %v305_v23   ;;  %313 = vst.msk [vmem:[#allocation2 + $0x12] sm:$0xc0] %vm306_vm8, %v305_v23   ;;  %v321_v24 = vpop.permute.xlu0 %320  }
  0xa8   :  { %324 = vst.msk [vmem:[#allocation2 + $0x20] sm:$0x3] %vm306_vm8, %v321_v24   ;;  %326 = vst.msk [vmem:[#allocation2 + $0x26] sm:$0xc] %vm306_vm8, %v321_v24  }
  0xa9   :  { %328 = vst.msk [vmem:[#allocation2 + $0x2c] sm:$0x30] %vm306_vm8, %v321_v24   ;;  %330 = vst.msk [vmem:[#allocation2 + $0x32] sm:$0xc0] %vm306_vm8, %v321_v24   ;;  %v339_v25 = vpop.permute.xlu1 %338  }
  0xaa   :  { %342 = vst.msk [vmem:[#allocation2 + $0x40] sm:$0x3] %vm306_vm8, %v339_v25   ;;  %344 = vst.msk [vmem:[#allocation2 + $0x46] sm:$0xc] %vm306_vm8, %v339_v25  }
  0xab   :  { %346 = vst.msk [vmem:[#allocation2 + $0x4c] sm:$0x30] %vm306_vm8, %v339_v25   ;;  %v354_v26 = vpop.permute.xlu0 %353  }
  0xac   :  { %356 = vst.msk [vmem:[#allocation2] sm:$0x3] %vm355_vm9, %v354_v26   ;;  %358 = vst.msk [vmem:[#allocation2 + $0x6] sm:$0xc] %vm355_vm9, %v354_v26  }
  0xad   :  { %360 = vst.msk [vmem:[#allocation2 + $0xc] sm:$0x30] %vm355_vm9, %v354_v26   ;;  %362 = vst.msk [vmem:[#allocation2 + $0x12] sm:$0xc0] %vm355_vm9, %v354_v26   ;;  %v370_v27 = vpop.permute.xlu1 %369  }
  0xae   :  { %373 = vst.msk [vmem:[#allocation2 + $0x20] sm:$0x3] %vm355_vm9, %v370_v27   ;;  %375 = vst.msk [vmem:[#allocation2 + $0x26] sm:$0xc] %vm355_vm9, %v370_v27  }
  0xaf   :  { %377 = vst.msk [vmem:[#allocation2 + $0x2c] sm:$0x30] %vm355_vm9, %v370_v27   ;;  %379 = vst.msk [vmem:[#allocation2 + $0x32] sm:$0xc0] %vm355_vm9, %v370_v27   ;;  %v388_v28 = vpop.permute.xlu0 %387  }
  0xb0   :  { %391 = vst.msk [vmem:[#allocation2 + $0x40] sm:$0x3] %vm355_vm9, %v388_v28   ;;  %393 = vst.msk [vmem:[#allocation2 + $0x46] sm:$0xc] %vm355_vm9, %v388_v28  }
  0xb1   :  { %395 = vst.msk [vmem:[#allocation2 + $0x4c] sm:$0x30] %vm355_vm9, %v388_v28  }
  0xb3   :  { %v399_v29 = vld [vmem:[#allocation2] sm:$0x3]  ;;  %v403_v30 = vld [vmem:[#allocation2 + $0x8] sm:$0x3] }
  0xb4   :  { %v408_v31 = vld [vmem:[#allocation2 + $0x10] sm:$0x3]  ;;  %401 = vst [vmem:[%s645_s1] sm:$0x3] %v399_v29  ;;  %471 = vst [vmem:[%s645_s1 + $0x2] sm:$0x3] %v403_v30 }
  0xb5   :  { %472 = vst [vmem:[%s645_s1 + $0x4] sm:$0x3] %v408_v31  ;;  %v414_v32 = vld [vmem:[#allocation2 + $0x18] sm:$0x3]  ;;  %v420_v33 = vld [vmem:[#allocation2 + $0x20] sm:$0x3] }
  0xb6   :  { %v426_v34 = vld [vmem:[#allocation2 + $0x28] sm:$0x3]  ;;  %473 = vst [vmem:[%s645_s1 + $0x6] sm:$0x3] %v414_v32  ;;  %474 = vst [vmem:[%s645_s1 + $0x8] sm:$0x3] %v420_v33 }
  0xb7   :  { %475 = vst [vmem:[%s645_s1 + $0xa] sm:$0x3] %v426_v34  ;;  %v432_v35 = vld [vmem:[#allocation2 + $0x30] sm:$0x3]  ;;  %v438_v36 = vld [vmem:[#allocation2 + $0x38] sm:$0x3] }
  0xb8   :  { %476 = vst [vmem:[%s645_s1 + $0xc] sm:$0x3] %v432_v35  ;;  %477 = vst [vmem:[%s645_s1 + $0xe] sm:$0x3] %v438_v36  ;;  %v444_v37 = vld [vmem:[#allocation2 + $0x40] sm:$0x3] }
  0xb9   :  { %v450_v38 = vld [vmem:[#allocation2 + $0x48] sm:$0x3]  ;;  %v456_v39 = vld [vmem:[#allocation2 + $0x50] sm:$0x3]  ;;  %478 = vst [vmem:[%s645_s1 + $0x10] sm:$0x3] %v444_v37 }
  0xba   :  { %479 = vst [vmem:[%s645_s1 + $0x12] sm:$0x3] %v450_v38  ;;  %480 = vst [vmem:[%s645_s1 + $0x14] sm:$0x3] %v456_v39 }
  0xbb   :  { %461 = vsyncpa [#allocation1], 1 }

// kernel: soft_argmax_2d.1
= control target key start
LH: loop header
LB: loop body
LE: loop exit
PB: predicated region body
PF: predicated region fallthrough
CT: control target
= control target key end

     0   :  { %vm23_vm0 = vcmask 1041408   ;;  %v8_v12 = vlaneseq  ;;  %vm59_vm1 = vcmask 1043456   ;;  %vm61_vm2 = vcmask 1045504   ;;  %s1714_s0 = inlined_call_operand.vmem [shape: f32[11,2,128], index: 0, kind: input, shape index: {}]   ;;  %s1715_s1 = inlined_call_operand.vmem [shape: f32[11,2], index: 1, kind: output, shape index: {}]  }
   0x1   :  { %v1141_v0 = vld [vmem:[%s1714_s0 + $0x12] sm:$0x3]  ;;  %v1142_v1 = vld [vmem:[%s1714_s0 + $0x14] sm:$0x3]  ;;  %vm65_vm3 = vcmask 1024   ;;  %vm107_vm4 = vcmask 7168  }
   0x2   :  { %v21_v2 = vmul.f32 100.0, %v1141_v0  ;;  %v22_v3 = vmul.f32 100.0, %v1142_v1  ;;  %v9_v17 = vshrl.u32 %v8_v12, 7  ;;  %v12_v23 = vand.u32 127, %v8_v12 }
   0x3   :  { %vm109_vm5 = vcmask 8192  }
   0x4   :  { %v24_v4 = vsel %vm23_vm0, %v21_v2, -inf  ;;  %v27_v5 = vsel %vm23_vm0, %v22_v3, -inf  ;;  %v10_v22 = vmul.u32 128, %v9_v17 }
   0x5   :  { %25 = vmax.xlane.f32.xlu0 %v24_v4 }
   0x6   :  { %v13_v28 = vadd.s32 %v12_v23, %v10_v22 }
   0x8   :  { %v14_v31 = vshra.s32 %v13_v28, 4  ;;  %v15_v32 = vand.u32 15, %v13_v28 }
   0x9   :  { %28 = vmax.xlane.f32.xlu0 %v27_v5 }
   0xa   :  { %v1337_v33 = vcvt.s32.f32 %v14_v31  ;;  %v1339_v34 = vcvt.s32.f32 %v15_v32 }
  0x92   :  { %v26_v6 = vpop.xlane.xlu0 %25 }
  0x93   :  { %v30_v7 = vsel %vm23_vm0, %v26_v6, -inf }
  0x94   :  { %v31_v8 = vrot.slane %v30_v7, 4 }
  0x96   :  { %v32_v9 = vmax.f32 %v30_v7, %v31_v8  ;;  %v29_v10 = vpop.xlane.xlu0 %28 }
  0x97   :  { %v37_v11 = vsel %vm23_vm0, %v29_v10, -inf }
  0x98   :  { %v33_v13 = vrot.slane %v32_v9, 2  ;;  %v38_v14 = vrot.slane %v37_v11, 4 }
  0x9a   :  { %v34_v15 = vmax.f32 %v32_v9, %v33_v13  ;;  %v39_v16 = vmax.f32 %v37_v11, %v38_v14 }
  0x9c   :  { %v35_v18 = vrot.slane %v34_v15, 1  ;;  %v40_v19 = vrot.slane %v39_v16, 2 }
  0x9e   :  { %v36_v20 = vmax.f32 %v34_v15, %v35_v18  ;;  %v41_v21 = vmax.f32 %v39_v16, %v40_v19 }
  0xa0   :  { %v44_v24 = vsub.f32 %v21_v2, %v36_v20  ;;  %v42_v25 = vrot.slane %v41_v21, 1 }
  0xa2   :  { %v46_v26 = vmul.f32 1.442695, %v44_v24  ;;  %v43_v27 = vmax.f32 %v41_v21, %v42_v25 }
  0xa4   :  { %1254 = vpow2.f32 %v46_v26  ;;  %v45_v29 = vsub.f32 %v22_v3, %v43_v27 }
  0xa6   :  { %v48_v30 = vmul.f32 1.442695, %v45_v29 }
  0xa8   :  { %1256 = vpow2.f32 %v48_v30 }
  0xae   :  { %v1255_v35 = vpop.eup %1254 }
  0xaf   :  { %v50_v36 = vmul.f32 %v1255_v35, %v1339_v34  ;;  %v51_v37 = vmul.f32 %v1255_v35, %v1337_v33 }
  0xb1   :  { %v53_v38 = vrot.slane %v50_v36, 6  ;;  %v56_v39 = vrot.slane %v51_v37, 4 }
  0xb2   :  { %v1257_v40 = vpop.eup %1256 }
  0xb3   :  { %v58_v41 = vsel %vm23_vm0, %v1255_v35, %v53_v38  ;;  %v111_v42 = vmul.f32 %v1257_v40, %v1339_v34  ;;  %v112_v43 = vmul.f32 %v1257_v40, %v1337_v33 }
  0xb4   :  { %v60_v44 = vsel %vm59_vm1, %v58_v41, %v56_v39 }
  0xb5   :  { %v62_v45 = vsel %vm61_vm2, %v60_v44, 0.0  ;;  %v114_v46 = vrot.slane %v111_v42, 6  ;;  %v117_v47 = vrot.slane %v112_v43, 4 }
  0xb6   :  { %63 = vadd.xlane.f32.xlu1 %v62_v45 }
  0xb7   :  { %v119_v48 = vsel %vm23_vm0, %v1257_v40, %v114_v46 }
  0xb8   :  { %v120_v49 = vsel %vm59_vm1, %v119_v48, %v117_v47 }
  0xb9   :  { %v121_v50 = vsel %vm61_vm2, %v120_v49, 0.0 }
  0xba   :  { %122 = vadd.xlane.f32.xlu1 %v121_v50 }
 0x143   :  { %v64_v51 = vpop.xlane.xlu1 %63 }
 0x144   :  { %v66_v52 = vsel %vm65_vm3, %v64_v51, 0.0  ;;  %v78_v53 = vrot.slane %v64_v51, 2  ;;  %v91_v54 = vrot.slane %v64_v51, 4 }
 0x145   :  { %67 = vadd.xlane.f32.xlu0 %v66_v52 }
 0x146   :  { %v80_v55 = vsel %vm65_vm3, %v78_v53, 0.0  ;;  %v93_v57 = vsel %vm65_vm3, %v91_v54, 0.0 }
 0x147   :  { %81 = vadd.xlane.f32.xlu1 %v80_v55  ;;  %v123_v56 = vpop.xlane.xlu1 %122 }
 0x148   :  { %v136_v58 = vrot.slane %v123_v56, 2  ;;  %v124_v59 = vsel %vm65_vm3, %v123_v56, 0.0  ;;  %v149_v60 = vrot.slane %v123_v56, 4 }
 0x149   :  { %94 = vadd.xlane.f32.xlu0 %v93_v57 }
 0x14a   :  { %v138_v61 = vsel %vm65_vm3, %v136_v58, 0.0  ;;  %v151_v62 = vsel %vm65_vm3, %v149_v60, 0.0 }
 0x14b   :  { %125 = vadd.xlane.f32.xlu1 %v124_v59 }
 0x14d   :  { %139 = vadd.xlane.f32.xlu0 %v138_v61 }
 0x14f   :  { %152 = vadd.xlane.f32.xlu1 %v151_v62  ;;  %v1316_v62 = vmov 0.0  }
 0x1d2   :  { %v68_v63 = vpop.xlane.xlu0 %67 }
 0x1d3   :  { %v69_v0 = vrot.slane %v68_v63, 4 }
 0x1d4   :  { %v82_v1 = vpop.xlane.xlu1 %81 }
 0x1d5   :  { %v70_v2 = vadd.f32 %v69_v0, %v68_v63  ;;  %v83_v3 = vrot.slane %v82_v1, 4 }
 0x1d6   :  { %v95_v4 = vpop.xlane.xlu0 %94 }
 0x1d7   :  { %v71_v5 = vrot.slane %v70_v2, 2  ;;  %v84_v6 = vadd.f32 %v83_v3, %v82_v1  ;;  %v96_v7 = vrot.slane %v95_v4, 4 }
 0x1d8   :  { %v126_v8 = vpop.xlane.xlu1 %125 }
 0x1d9   :  { %v85_v9 = vrot.slane %v84_v6, 2  ;;  %v97_v10 = vadd.f32 %v96_v7, %v95_v4  ;;  %v127_v11 = vrot.slane %v126_v8, 4  ;;  %v72_v12 = vadd.f32 %v71_v5, %v70_v2 }
 0x1da   :  { %v140_v13 = vpop.xlane.xlu0 %139 }
 0x1db   :  { %v98_v14 = vrot.slane %v97_v10, 2  ;;  %v128_v15 = vadd.f32 %v127_v11, %v126_v8  ;;  %v141_v16 = vrot.slane %v140_v13, 4  ;;  %v73_v17 = vrot.slane %v72_v12, 1 }
 0x1dc   :  { %v153_v18 = vpop.xlane.xlu1 %152  ;;  %v86_v19 = vadd.f32 %v85_v9, %v84_v6 }
 0x1dd   :  { %v129_v20 = vrot.slane %v128_v15, 2  ;;  %v142_v21 = vadd.f32 %v141_v16, %v140_v13  ;;  %v154_v22 = vrot.slane %v153_v18, 4  ;;  %v74_v23 = vadd.f32 %v73_v17, %v72_v12  ;;  %v1143_v17 = vld [vmem:[%s1714_s0 + $0x10] sm:$0x3] }
 0x1de   :  { %v87_v24 = vrot.slane %v86_v19, 1  ;;  %v99_v25 = vadd.f32 %v98_v14, %v97_v10 }
 0x1df   :  { %v143_v26 = vrot.slane %v142_v21, 2  ;;  %v155_v27 = vadd.f32 %v154_v22, %v153_v18  ;;  %1151 = vpush %v74_v23  ;;  %v130_v28 = vadd.f32 %v129_v20, %v128_v15 }
 0x1e0   :  { %v88_v29 = vadd.f32 %v87_v24, %v86_v19  ;;  %v100_v30 = vrot.slane %v99_v25, 1 }
 0x1e1   :  { %v156_v31 = vrot.slane %v155_v27, 2  ;;  %v131_v32 = vrot.slane %v130_v28, 1  ;;  %v144_v35 = vadd.f32 %v143_v26, %v142_v21  ;;  %v199_v21 = vmul.f32 100.0, %v1143_v17 }
 0x1e2   :  { %1153 = vpush %v88_v29  ;;  %v101_v36 = vadd.f32 %v100_v30, %v99_v25 }
 0x1e3   :  { %v132_v37 = vadd.f32 %v131_v32, %v130_v28  ;;  %v145_v38 = vrot.slane %v144_v35, 1  ;;  %v157_v39 = vadd.f32 %v156_v31, %v155_v27 }
 0x1e4   :  { %1155 = vpush %v101_v36 }
 0x1e5   :  { %1157 = vpush %v132_v37  ;;  %v146_v40 = vadd.f32 %v145_v38, %v144_v35  ;;  %v158_v41 = vrot.slane %v157_v39, 1 }
 0x1e7   :  { %1159 = vpush %v146_v40  ;;  %v159_v42 = vadd.f32 %v158_v41, %v157_v39 }
 0x1e9   :  { %1161 = vpush %v159_v42 }
 0x210   :  { %s1152_s10 = spop %1151 }
 0x211   :  { %v76_v43 = vstv %s1152_s10 }
 0x212   :  { %1258 = vrcp.f32 %v76_v43 }
 0x213   :  { %s1154_s11 = spop %1153 }
 0x214   :  { %v90_v46 = vstv %s1154_s11 }
 0x215   :  { %s1156_s12 = spop %1155 }
 0x216   :  { %s1158_s13 = spop %1157  ;;  %v103_v47 = vstv %s1156_s12 }
 0x217   :  { %v134_v44 = vstv %s1158_s13 }
 0x218   :  { %1260 = vrcp.f32 %v134_v44  ;;  %s1160_s14 = spop %1159 }
 0x219   :  { %v148_v52 = vstv %s1160_s14 }
 0x21a   :  { %s1162_s15 = spop %1161 }
 0x21b   :  { %v161_v53 = vstv %s1162_s15 }
 0x21c   :  { %v1259_v45 = vpop.eup %1258 }
 0x21d   :  { %v105_v48 = vmul.f32 %v1259_v45, %v90_v46  ;;  %v1357_v49 = vmul.f32 %v1259_v45, %v103_v47 }
 0x21f   :  { %v108_v50 = vsel %vm107_vm4, %v105_v48, %v1357_v49  ;;  %v168_v5 = vfloor.f32 %v1357_v49 }
 0x220   :  { %110 = vst.msk [vmem:[%s1715_s1 + $0x9] sm:$0x1] %vm109_vm5, %v108_v50 }
 0x222   :  { %v1261_v51 = vpop.eup %1260 }
 0x223   :  { %v163_v54 = vmul.f32 %v1261_v51, %v148_v52  ;;  %v164_v55 = vmul.f32 %v1261_v51, %v161_v53 }
 0x225   :  { %v165_v56 = vsel %vm107_vm4, %v163_v54, %v164_v55  ;;  %v167_v57 = vsub.f32 %v164_v55, %v1357_v49 }
 0x226   :  { %166 = vst.msk [vmem:[%s1715_s1 + $0xa] sm:$0x1] %vm109_vm5, %v165_v56 }
 0x227   :  { %v169_v58 = vceil.f32 %v167_v57  ;;  %v172_v61 = vmul.f32 0.35, %v167_v57 }
 0x229   :  { %v170_v59 = vsub.f32 %v169_v58, %v167_v57 }
 0x22b   :  { %v171_v60 = vand.u32 2147483647, %v170_v59 }
 0x22d   :  { %vm173_vm6 = vcmp.gt.f32.partialorder %v171_v60, %v172_v61 }
 0x22e   :  { %v1371_v63 = vsel %vm173_vm6, 1.0, %v1316_v62  ;;  %v1374_v2 = vsel %vm173_vm6, %v169_v58, 0.0 }
 0x22f   :  { %v177_v0 = vmax.f32 %v1371_v63, 1.0 }
 0x231   :  { %1262 = vrcp.f32 %v177_v0 }
 0x23b   :  { %v1263_v1 = vpop.eup %1262 }
 0x23c   :  { %v179_v3 = vmul.f32 %v1263_v1, %v1374_v2 }
 0x23e   :  { %v1377_v4 = vsel %vm173_vm6, %v179_v3, %v167_v57 }
 0x23f   :  { %v181_v6 = vmul.f32 1.8, %v1377_v4 }
 0x241   :  { %v182_v7 = vsub.f32 %v168_v5, %v181_v6 }
 0x243   :  { %v183_v8 = vadd.f32 %v182_v7, %v181_v6  ;;  %v1164_v9 = vround.rtne.f32 %v182_v7 }
 0x245   :  { %v1163_v10 = vround.rtne.f32 %v183_v8  ;;  %vm186_vm7 = vcmp.lt.f32.partialorder %v1164_v9, 0.0  ;;  %v187_v11 = vadd.f32 16.0, %v1164_v9 }
 0x247   :  { %v188_v12 = vsel %vm186_vm7, %v187_v11, %v1164_v9  ;;  %v191_v13 = vadd.f32 1.0, %v1163_v10 }
 0x248   :  { %v189_v14 = vmax.f32 %v188_v12, 0.0 }
 0x249   :  { %vm192_vm8 = vcmp.lt.f32.partialorder %v191_v13, 0.0  ;;  %v193_v15 = vadd.f32 16.0, %v191_v13 }
 0x24a   :  { %v190_v18 = vmin.f32 %v189_v14, 16.0 }
 0x24b   :  { %v194_v16 = vsel %vm192_vm8, %v193_v15, %v191_v13 }
 0x24c   :  { %v195_v19 = vmax.f32 %v194_v16, 0.0  ;;  %vm200_vm9 = vcmp.ge.f32.partialorder %v1337_v33, %v190_v18 }
 0x24e   :  { %v196_v20 = vmin.f32 %v195_v19, 16.0 }
 0x250   :  { %vm201_vm10 = vcmp.lt.f32.partialorder %v1337_v33, %v196_v20 }
 0x251   :  { %vm202_vm11 = vmand %vm200_vm9, %vm201_vm10 }
 0x252   :  { %v203_v22 = vsel %vm202_vm11, %v199_v21, 0.0  ;;  %v279_v21 = vmul.f32 0.35, %v1377_v4 }
 0x253   :  { %v204_v23 = vsel %vm23_vm0, %v203_v22, -inf }
 0x254   :  { %205 = vmax.xlane.f32.xlu0 %v204_v23  ;;  %v283_v23 = vadd.f32 1.0, %v1371_v63 }
 0x2e1   :  { %v206_v24 = vpop.xlane.xlu0 %205 }
 0x2e2   :  { %v207_v25 = vrot.slane %v206_v24, 4 }
 0x2e4   :  { %v208_v26 = vmax.f32 %v206_v24, %v207_v25 }
 0x2e6   :  { %v209_v27 = vrot.slane %v208_v26, 2 }
 0x2e8   :  { %v210_v28 = vmax.f32 %v208_v26, %v209_v27 }
 0x2ea   :  { %v211_v29 = vrot.slane %v210_v28, 1 }
 0x2ec   :  { %v212_v30 = vmax.f32 %v210_v28, %v211_v29 }
 0x2ee   :  { %1165 = vpush %v212_v30 }
 0x31f   :  { %s1166_s22 = spop %1165 }
 0x320   :  { %v214_v31 = vstv %s1166_s22 }
 0x321   :  { %v215_v32 = vsub.f32 %v203_v22, %v214_v31 }
 0x323   :  { %v216_v35 = vmul.f32 1.442695, %v215_v32 }
 0x325   :  { %1264 = vpow2.f32 %v216_v35 }
 0x32f   :  { %v1265_v36 = vpop.eup %1264 }
 0x330   :  { %v218_v37 = vmul.f32 %v1265_v36, %v1339_v34  ;;  %v219_v38 = vmul.f32 %v1265_v36, %v1337_v33 }
 0x332   :  { %v221_v39 = vrot.slane %v218_v37, 6  ;;  %v224_v40 = vrot.slane %v219_v38, 4 }
 0x334   :  { %v226_v41 = vsel %vm23_vm0, %v1265_v36, %v221_v39 }
 0x335   :  { %v227_v42 = vsel %vm59_vm1, %v226_v41, %v224_v40 }
 0x336   :  { %v228_v43 = vsel %vm61_vm2, %v227_v42, 0.0 }
 0x337   :  { %229 = vadd.xlane.f32.xlu1 %v228_v43 }
 0x3c4   :  { %v230_v44 = vpop.xlane.xlu1 %229 }
 0x3c5   :  { %v231_v45 = vsel %vm65_vm3, %v230_v44, 0.0  ;;  %v243_v46 = vrot.slane %v230_v44, 2  ;;  %v256_v47 = vrot.slane %v230_v44, 4 }
 0x3c6   :  { %232 = vadd.xlane.f32.xlu0 %v231_v45 }
 0x3c7   :  { %v245_v48 = vsel %vm65_vm3, %v243_v46, 0.0  ;;  %v258_v50 = vsel %vm65_vm3, %v256_v47, 0.0 }
 0x3c8   :  { %246 = vadd.xlane.f32.xlu1 %v245_v48 }
 0x3ca   :  { %259 = vadd.xlane.f32.xlu0 %v258_v50 }
 0x453   :  { %v233_v51 = vpop.xlane.xlu0 %232 }
 0x454   :  { %v234_v52 = vrot.slane %v233_v51, 4 }
 0x455   :  { %v247_v53 = vpop.xlane.xlu1 %246 }
 0x456   :  { %v235_v54 = vadd.f32 %v234_v52, %v233_v51  ;;  %v248_v55 = vrot.slane %v247_v53, 4 }
 0x457   :  { %v260_v56 = vpop.xlane.xlu0 %259 }
 0x458   :  { %v236_v57 = vrot.slane %v235_v54, 2  ;;  %v249_v58 = vadd.f32 %v248_v55, %v247_v53  ;;  %v261_v59 = vrot.slane %v260_v56, 4 }
 0x45a   :  { %v250_v60 = vrot.slane %v249_v58, 2  ;;  %v262_v61 = vadd.f32 %v261_v59, %v260_v56  ;;  %v237_v62 = vadd.f32 %v236_v57, %v235_v54 }
 0x45c   :  { %v263_v0 = vrot.slane %v262_v61, 2  ;;  %v238_v1 = vrot.slane %v237_v62, 1  ;;  %v251_v3 = vadd.f32 %v250_v60, %v249_v58 }
 0x45e   :  { %v239_v5 = vadd.f32 %v238_v1, %v237_v62  ;;  %v252_v6 = vrot.slane %v251_v3, 1  ;;  %v264_v7 = vadd.f32 %v263_v0, %v262_v61 }
 0x460   :  { %1167 = vpush %v239_v5  ;;  %v253_v8 = vadd.f32 %v252_v6, %v251_v3  ;;  %v265_v9 = vrot.slane %v264_v7, 1 }
 0x462   :  { %1169 = vpush %v253_v8  ;;  %v266_v10 = vadd.f32 %v265_v9, %v264_v7 }
 0x464   :  { %1171 = vpush %v266_v10 }
 0x491   :  { %s1168_s23 = spop %1167 }
 0x492   :  { %v241_v11 = vstv %s1168_s23 }
 0x493   :  { %1266 = vrcp.f32 %v241_v11  ;;  %s1170_s24 = spop %1169 }
 0x494   :  { %v255_v13 = vstv %s1170_s24 }
 0x495   :  { %s1172_s25 = spop %1171 }
 0x496   :  { %v268_v14 = vstv %s1172_s25 }
 0x49d   :  { %v1267_v12 = vpop.eup %1266 }
 0x49e   :  { %v270_v15 = vmul.f32 %v1267_v12, %v255_v13  ;;  %v1395_v16 = vmul.f32 %v1267_v12, %v268_v14 }
 0x4a0   :  { %v272_v17 = vsel %vm107_vm4, %v270_v15, %v1395_v16  ;;  %v275_v18 = vsub.f32 %v1357_v49, %v1395_v16  ;;  %v274_v30 = vfloor.f32 %v1395_v16 }
 0x4a1   :  { %273 = vst.msk [vmem:[%s1715_s1 + $0x8] sm:$0x1] %vm109_vm5, %v272_v17 }
 0x4a2   :  { %v276_v19 = vceil.f32 %v275_v18 }
 0x4a4   :  { %v277_v20 = vsub.f32 %v276_v19, %v1377_v4  ;;  %v281_v49 = vadd.f32 %v276_v19, %v1374_v2 }
 0x4a6   :  { %v278_v22 = vand.u32 2147483647, %v277_v20 }
 0x4a8   :  { %vm280_vm12 = vcmp.gt.f32.partialorder %v278_v22, %v279_v21 }
 0x4a9   :  { %v1409_v24 = vsel %vm280_vm12, %v283_v23, %v1371_v63  ;;  %v1414_v27 = vsel %vm280_vm12, %v281_v49, %v1374_v2 }
 0x4aa   :  { %v285_v25 = vmax.f32 %v1409_v24, 1.0 }
 0x4ac   :  { %1268 = vrcp.f32 %v285_v25 }
 0x4b6   :  { %v1269_v26 = vpop.eup %1268 }
 0x4b7   :  { %v287_v28 = vmul.f32 %v1269_v26, %v1414_v27 }
 0x4b9   :  { %v1418_v29 = vsel %vm280_vm12, %v287_v28, %v1377_v4  ;;  %v1144_v4 = vld [vmem:[%s1714_s0 + $0xe] sm:$0x3] }
 0x4ba   :  { %v289_v31 = vmul.f32 1.8, %v1418_v29  ;;  %v307_v45 = vmul.f32 100.0, %v1144_v4 }
 0x4bc   :  { %v290_v63 = vsub.f32 %v274_v30, %v289_v31 }
 0x4be   :  { %v291_v32 = vadd.f32 %v290_v63, %v289_v31  ;;  %v1174_v35 = vround.rtne.f32 %v290_v63 }
 0x4c0   :  { %v1173_v36 = vround.rtne.f32 %v291_v32  ;;  %vm294_vm13 = vcmp.lt.f32.partialorder %v1174_v35, 0.0  ;;  %v295_v37 = vadd.f32 16.0, %v1174_v35 }
 0x4c2   :  { %v296_v38 = vsel %vm294_vm13, %v295_v37, %v1174_v35  ;;  %v299_v39 = vadd.f32 1.0, %v1173_v36 }
 0x4c3   :  { %v297_v40 = vmax.f32 %v296_v38, 0.0 }
 0x4c4   :  { %vm300_vm14 = vcmp.lt.f32.partialorder %v299_v39, 0.0  ;;  %v301_v2 = vadd.f32 16.0, %v299_v39 }
 0x4c5   :  { %v298_v42 = vmin.f32 %v297_v40, 16.0 }
 0x4c6   :  { %v302_v41 = vsel %vm300_vm14, %v301_v2, %v299_v39 }
 0x4c7   :  { %v303_v43 = vmax.f32 %v302_v41, 0.0  ;;  %vm308_vm15 = vcmp.ge.f32.partialorder %v1337_v33, %v298_v42 }
 0x4c9   :  { %v304_v44 = vmin.f32 %v303_v43, 16.0 }
 0x4cb   :  { %vm309_vm6 = vcmp.lt.f32.partialorder %v1337_v33, %v304_v44 }
 0x4cc   :  { %vm310_vm7 = vmand %vm308_vm15, %vm309_vm6 }
 0x4cd   :  { %v311_v46 = vsel %vm310_vm7, %v307_v45, 0.0 }
 0x4ce   :  { %v312_v47 = vsel %vm23_vm0, %v311_v46, -inf }
 0x4cf   :  { %313 = vmax.xlane.f32.xlu1 %v312_v47  ;;  %v391_v47 = vadd.f32 1.0, %v1409_v24 }
 0x55c   :  { %v314_v48 = vpop.xlane.xlu1 %313 }
 0x55d   :  { %v315_v50 = vrot.slane %v314_v48, 4 }
 0x55f   :  { %v316_v51 = vmax.f32 %v314_v48, %v315_v50 }
 0x561   :  { %v317_v52 = vrot.slane %v316_v51, 2 }
 0x563   :  { %v318_v53 = vmax.f32 %v316_v51, %v317_v52 }
 0x565   :  { %v319_v54 = vrot.slane %v318_v53, 1 }
 0x567   :  { %v320_v55 = vmax.f32 %v318_v53, %v319_v54 }
 0x569   :  { %1175 = vpush %v320_v55 }
 0x59a   :  { %s1176_s30 = spop %1175 }
 0x59b   :  { %v322_v56 = vstv %s1176_s30 }
 0x59c   :  { %v323_v57 = vsub.f32 %v311_v46, %v322_v56  ;;  %v387_v46 = vmul.f32 0.35, %v1418_v29 }
 0x59e   :  { %v324_v58 = vmul.f32 1.442695, %v323_v57 }
 0x5a0   :  { %1270 = vpow2.f32 %v324_v58 }
 0x5aa   :  { %v1271_v59 = vpop.eup %1270 }
 0x5ab   :  { %v326_v60 = vmul.f32 %v1271_v59, %v1339_v34  ;;  %v327_v61 = vmul.f32 %v1271_v59, %v1337_v33 }
 0x5ad   :  { %v329_v62 = vrot.slane %v326_v60, 6  ;;  %v332_v0 = vrot.slane %v327_v61, 4 }
 0x5af   :  { %v334_v1 = vsel %vm23_vm0, %v1271_v59, %v329_v62 }
 0x5b0   :  { %v335_v3 = vsel %vm59_vm1, %v334_v1, %v332_v0 }
 0x5b1   :  { %v336_v5 = vsel %vm61_vm2, %v335_v3, 0.0 }
 0x5b2   :  { %337 = vadd.xlane.f32.xlu0 %v336_v5 }
 0x63f   :  { %v338_v6 = vpop.xlane.xlu0 %337 }
 0x640   :  { %v339_v7 = vsel %vm65_vm3, %v338_v6, 0.0  ;;  %v351_v8 = vrot.slane %v338_v6, 2  ;;  %v364_v9 = vrot.slane %v338_v6, 4 }
 0x641   :  { %340 = vadd.xlane.f32.xlu1 %v339_v7 }
 0x642   :  { %v353_v10 = vsel %vm65_vm3, %v351_v8, 0.0  ;;  %v366_v11 = vsel %vm65_vm3, %v364_v9, 0.0 }
 0x643   :  { %354 = vadd.xlane.f32.xlu0 %v353_v10 }
 0x645   :  { %367 = vadd.xlane.f32.xlu1 %v366_v11 }
 0x6ce   :  { %v341_v12 = vpop.xlane.xlu1 %340 }
 0x6cf   :  { %v342_v13 = vrot.slane %v341_v12, 4 }
 0x6d0   :  { %v355_v14 = vpop.xlane.xlu0 %354 }
 0x6d1   :  { %v343_v15 = vadd.f32 %v342_v13, %v341_v12  ;;  %v356_v17 = vrot.slane %v355_v14, 4 }
 0x6d2   :  { %v368_v18 = vpop.xlane.xlu1 %367 }
 0x6d3   :  { %v344_v19 = vrot.slane %v343_v15, 2  ;;  %v357_v20 = vadd.f32 %v356_v17, %v355_v14  ;;  %v369_v21 = vrot.slane %v368_v18, 4 }
 0x6d5   :  { %v358_v22 = vrot.slane %v357_v20, 2  ;;  %v370_v23 = vadd.f32 %v369_v21, %v368_v18  ;;  %v345_v25 = vadd.f32 %v344_v19, %v343_v15 }
 0x6d7   :  { %v371_v49 = vrot.slane %v370_v23, 2  ;;  %v346_v26 = vrot.slane %v345_v25, 1  ;;  %v359_v28 = vadd.f32 %v358_v22, %v357_v20 }
 0x6d9   :  { %v347_v30 = vadd.f32 %v346_v26, %v345_v25  ;;  %v360_v31 = vrot.slane %v359_v28, 1  ;;  %v372_v63 = vadd.f32 %v371_v49, %v370_v23 }
 0x6db   :  { %1177 = vpush %v347_v30  ;;  %v361_v32 = vadd.f32 %v360_v31, %v359_v28  ;;  %v373_v35 = vrot.slane %v372_v63, 1 }
 0x6dd   :  { %1179 = vpush %v361_v32  ;;  %v374_v36 = vadd.f32 %v373_v35, %v372_v63 }
 0x6df   :  { %1181 = vpush %v374_v36 }
 0x70c   :  { %s1178_s2 = spop %1177 }
 0x70d   :  { %v349_v37 = vstv %s1178_s2 }
 0x70e   :  { %1272 = vrcp.f32 %v349_v37  ;;  %s1180_s3 = spop %1179 }
 0x70f   :  { %v363_v39 = vstv %s1180_s3 }
 0x710   :  { %s1182_s4 = spop %1181 }
 0x711   :  { %v376_v40 = vstv %s1182_s4 }
 0x718   :  { %v1273_v38 = vpop.eup %1272 }
 0x719   :  { %v378_v2 = vmul.f32 %v1273_v38, %v363_v39  ;;  %v1436_v41 = vmul.f32 %v1273_v38, %v376_v40 }
 0x71b   :  { %v380_v4 = vsel %vm107_vm4, %v378_v2, %v1436_v41  ;;  %v383_v42 = vsub.f32 %v1395_v16, %v1436_v41  ;;  %v382_v55 = vfloor.f32 %v1436_v41 }
 0x71c   :  { %381 = vst.msk [vmem:[%s1715_s1 + $0x7] sm:$0x1] %vm109_vm5, %v380_v4 }
 0x71d   :  { %v384_v43 = vceil.f32 %v383_v42 }
 0x71f   :  { %v385_v44 = vsub.f32 %v384_v43, %v1418_v29  ;;  %v389_v16 = vadd.f32 %v384_v43, %v1414_v27 }
 0x721   :  { %v386_v45 = vand.u32 2147483647, %v385_v44 }
 0x723   :  { %vm388_vm8 = vcmp.gt.f32.partialorder %v386_v45, %v387_v46 }
 0x724   :  { %v1450_v48 = vsel %vm388_vm8, %v391_v47, %v1409_v24  ;;  %v1455_v52 = vsel %vm388_vm8, %v389_v16, %v1414_v27 }
 0x725   :  { %v393_v50 = vmax.f32 %v1450_v48, 1.0 }
 0x727   :  { %1274 = vrcp.f32 %v393_v50 }
 0x731   :  { %v1275_v51 = vpop.eup %1274 }
 0x732   :  { %v395_v53 = vmul.f32 %v1275_v51, %v1455_v52 }
 0x734   :  { %v1459_v54 = vsel %vm388_vm8, %v395_v53, %v1418_v29  ;;  %v1145_v29 = vld [vmem:[%s1714_s0 + $0xc] sm:$0x3] }
 0x735   :  { %v397_v56 = vmul.f32 1.8, %v1459_v54  ;;  %v415_v7 = vmul.f32 100.0, %v1145_v29 }
 0x737   :  { %v398_v24 = vsub.f32 %v382_v55, %v397_v56 }
 0x739   :  { %v399_v57 = vadd.f32 %v398_v24, %v397_v56  ;;  %v1184_v58 = vround.rtne.f32 %v398_v24 }
 0x73b   :  { %v1183_v59 = vround.rtne.f32 %v399_v57  ;;  %vm402_vm9 = vcmp.lt.f32.partialorder %v1184_v58, 0.0  ;;  %v403_v60 = vadd.f32 16.0, %v1184_v58 }
 0x73d   :  { %v404_v61 = vsel %vm402_vm9, %v403_v60, %v1184_v58  ;;  %v407_v62 = vadd.f32 1.0, %v1183_v59 }
 0x73e   :  { %v405_v0 = vmax.f32 %v404_v61, 0.0 }
 0x73f   :  { %vm408_vm10 = vcmp.lt.f32.partialorder %v407_v62, 0.0  ;;  %v409_v27 = vadd.f32 16.0, %v407_v62 }
 0x740   :  { %v406_v3 = vmin.f32 %v405_v0, 16.0 }
 0x741   :  { %v410_v1 = vsel %vm408_vm10, %v409_v27, %v407_v62 }
 0x742   :  { %v411_v5 = vmax.f32 %v410_v1, 0.0  ;;  %vm416_vm11 = vcmp.ge.f32.partialorder %v1337_v33, %v406_v3 }
 0x744   :  { %v412_v6 = vmin.f32 %v411_v5, 16.0 }
 0x746   :  { %vm417_vm12 = vcmp.lt.f32.partialorder %v1337_v33, %v412_v6 }
 0x747   :  { %vm418_vm13 = vmand %vm416_vm11, %vm417_vm12 }
 0x748   :  { %v419_v8 = vsel %vm418_vm13, %v415_v7, 0.0 }
 0x749   :  { %v420_v9 = vsel %vm23_vm0, %v419_v8, -inf }
 0x74a   :  { %421 = vmax.xlane.f32.xlu0 %v420_v9  ;;  %v499_v9 = vadd.f32 1.0, %v1450_v48 }
 0x7d7   :  { %v422_v10 = vpop.xlane.xlu0 %421 }
 0x7d8   :  { %v423_v11 = vrot.slane %v422_v10, 4 }
 0x7da   :  { %v424_v12 = vmax.f32 %v422_v10, %v423_v11 }
 0x7dc   :  { %v425_v13 = vrot.slane %v424_v12, 2 }
 0x7de   :  { %v426_v14 = vmax.f32 %v424_v12, %v425_v13 }
 0x7e0   :  { %v427_v15 = vrot.slane %v426_v14, 1 }
 0x7e2   :  { %v428_v17 = vmax.f32 %v426_v14, %v427_v15 }
 0x7e4   :  { %1185 = vpush %v428_v17 }
 0x815   :  { %s1186_s9 = spop %1185 }
 0x816   :  { %v430_v18 = vstv %s1186_s9 }
 0x817   :  { %v431_v19 = vsub.f32 %v419_v8, %v430_v18  ;;  %v495_v8 = vmul.f32 0.35, %v1459_v54 }
 0x819   :  { %v432_v20 = vmul.f32 1.442695, %v431_v19 }
 0x81b   :  { %1276 = vpow2.f32 %v432_v20 }
 0x825   :  { %v1277_v21 = vpop.eup %1276 }
 0x826   :  { %v434_v22 = vmul.f32 %v1277_v21, %v1339_v34  ;;  %v435_v23 = vmul.f32 %v1277_v21, %v1337_v33 }
 0x828   :  { %v437_v25 = vrot.slane %v434_v22, 6  ;;  %v440_v49 = vrot.slane %v435_v23, 4 }
 0x82a   :  { %v442_v26 = vsel %vm23_vm0, %v1277_v21, %v437_v25 }
 0x82b   :  { %v443_v28 = vsel %vm59_vm1, %v442_v26, %v440_v49 }
 0x82c   :  { %v444_v30 = vsel %vm61_vm2, %v443_v28, 0.0 }
 0x82d   :  { %445 = vadd.xlane.f32.xlu1 %v444_v30 }
 0x8ba   :  { %v446_v31 = vpop.xlane.xlu1 %445 }
 0x8bb   :  { %v447_v63 = vsel %vm65_vm3, %v446_v31, 0.0  ;;  %v459_v32 = vrot.slane %v446_v31, 2  ;;  %v472_v35 = vrot.slane %v446_v31, 4 }
 0x8bc   :  { %448 = vadd.xlane.f32.xlu0 %v447_v63 }
 0x8bd   :  { %v461_v36 = vsel %vm65_vm3, %v459_v32, 0.0  ;;  %v474_v37 = vsel %vm65_vm3, %v472_v35, 0.0 }
 0x8be   :  { %462 = vadd.xlane.f32.xlu1 %v461_v36 }
 0x8c0   :  { %475 = vadd.xlane.f32.xlu0 %v474_v37 }
 0x949   :  { %v449_v38 = vpop.xlane.xlu0 %448 }
 0x94a   :  { %v450_v39 = vrot.slane %v449_v38, 4 }
 0x94b   :  { %v463_v40 = vpop.xlane.xlu1 %462 }
 0x94c   :  { %v451_v2 = vadd.f32 %v450_v39, %v449_v38  ;;  %v464_v4 = vrot.slane %v463_v40, 4 }
 0x94d   :  { %v476_v42 = vpop.xlane.xlu0 %475 }
 0x94e   :  { %v452_v43 = vrot.slane %v451_v2, 2  ;;  %v465_v44 = vadd.f32 %v464_v4, %v463_v40  ;;  %v477_v45 = vrot.slane %v476_v42, 4 }
 0x950   :  { %v466_v46 = vrot.slane %v465_v44, 2  ;;  %v478_v47 = vadd.f32 %v477_v45, %v476_v42  ;;  %v453_v50 = vadd.f32 %v452_v43, %v451_v2 }
 0x952   :  { %v479_v16 = vrot.slane %v478_v47, 2  ;;  %v454_v51 = vrot.slane %v453_v50, 1  ;;  %v467_v53 = vadd.f32 %v466_v46, %v465_v44 }
 0x954   :  { %v455_v55 = vadd.f32 %v454_v51, %v453_v50  ;;  %v468_v56 = vrot.slane %v467_v53, 1  ;;  %v480_v24 = vadd.f32 %v479_v16, %v478_v47 }
 0x956   :  { %1187 = vpush %v455_v55  ;;  %v469_v57 = vadd.f32 %v468_v56, %v467_v53  ;;  %v481_v58 = vrot.slane %v480_v24, 1 }
 0x958   :  { %1189 = vpush %v469_v57  ;;  %v482_v59 = vadd.f32 %v481_v58, %v480_v24 }
 0x95a   :  { %1191 = vpush %v482_v59 }
 0x987   :  { %s1188_s10 = spop %1187 }
 0x988   :  { %v457_v60 = vstv %s1188_s10 }
 0x989   :  { %1278 = vrcp.f32 %v457_v60  ;;  %s1190_s11 = spop %1189 }
 0x98a   :  { %v471_v62 = vstv %s1190_s11 }
 0x98b   :  { %s1192_s12 = spop %1191 }
 0x98c   :  { %v484_v0 = vstv %s1192_s12 }
 0x993   :  { %v1279_v61 = vpop.eup %1278 }
 0x994   :  { %v486_v27 = vmul.f32 %v1279_v61, %v471_v62  ;;  %v1477_v1 = vmul.f32 %v1279_v61, %v484_v0 }
 0x996   :  { %v488_v29 = vsel %vm107_vm4, %v486_v27, %v1477_v1  ;;  %v491_v3 = vsub.f32 %v1436_v41, %v1477_v1  ;;  %v490_v17 = vfloor.f32 %v1477_v1 }
 0x997   :  { %489 = vst.msk [vmem:[%s1715_s1 + $0x6] sm:$0x1] %vm109_vm5, %v488_v29 }
 0x998   :  { %v492_v5 = vceil.f32 %v491_v3 }
 0x99a   :  { %v493_v6 = vsub.f32 %v492_v5, %v1459_v54  ;;  %v497_v41 = vadd.f32 %v492_v5, %v1455_v52 }
 0x99c   :  { %v494_v7 = vand.u32 2147483647, %v493_v6 }
 0x99e   :  { %vm496_vm14 = vcmp.gt.f32.partialorder %v494_v7, %v495_v8 }
 0x99f   :  { %v1491_v10 = vsel %vm496_vm14, %v499_v9, %v1450_v48  ;;  %v1496_v13 = vsel %vm496_vm14, %v497_v41, %v1455_v52 }
 0x9a0   :  { %v501_v11 = vmax.f32 %v1491_v10, 1.0 }
 0x9a2   :  { %1280 = vrcp.f32 %v501_v11 }
 0x9ac   :  { %v1281_v12 = vpop.eup %1280 }
 0x9ad   :  { %v503_v14 = vmul.f32 %v1281_v12, %v1496_v13 }
 0x9af   :  { %v1500_v15 = vsel %vm496_vm14, %v503_v14, %v1459_v54  ;;  %v1146_v54 = vld [vmem:[%s1714_s0 + $0xa] sm:$0x3] }
 0x9b0   :  { %v505_v18 = vmul.f32 1.8, %v1500_v15  ;;  %v523_v63 = vmul.f32 100.0, %v1146_v54 }
 0x9b2   :  { %v506_v48 = vsub.f32 %v490_v17, %v505_v18 }
 0x9b4   :  { %v507_v19 = vadd.f32 %v506_v48, %v505_v18  ;;  %v1194_v20 = vround.rtne.f32 %v506_v48 }
 0x9b6   :  { %v1193_v21 = vround.rtne.f32 %v507_v19  ;;  %vm510_vm15 = vcmp.lt.f32.partialorder %v1194_v20, 0.0  ;;  %v511_v22 = vadd.f32 16.0, %v1194_v20 }
 0x9b8   :  { %v512_v23 = vsel %vm510_vm15, %v511_v22, %v1194_v20  ;;  %v515_v25 = vadd.f32 1.0, %v1193_v21 }
 0x9b9   :  { %v513_v49 = vmax.f32 %v512_v23, 0.0 }
 0x9ba   :  { %vm516_vm6 = vcmp.lt.f32.partialorder %v515_v25, 0.0  ;;  %v517_v52 = vadd.f32 16.0, %v515_v25 }
 0x9bb   :  { %v514_v28 = vmin.f32 %v513_v49, 16.0 }
 0x9bc   :  { %v518_v26 = vsel %vm516_vm6, %v517_v52, %v515_v25 }
 0x9bd   :  { %v519_v30 = vmax.f32 %v518_v26, 0.0  ;;  %vm524_vm7 = vcmp.ge.f32.partialorder %v1337_v33, %v514_v28 }
 0x9bf   :  { %v520_v31 = vmin.f32 %v519_v30, 16.0 }
 0x9c1   :  { %vm525_vm8 = vcmp.lt.f32.partialorder %v1337_v33, %v520_v31 }
 0x9c2   :  { %vm526_vm9 = vmand %vm524_vm7, %vm525_vm8 }
 0x9c3   :  { %v527_v32 = vsel %vm526_vm9, %v523_v63, 0.0 }
 0x9c4   :  { %v528_v35 = vsel %vm23_vm0, %v527_v32, -inf }
 0x9c5   :  { %529 = vmax.xlane.f32.xlu1 %v528_v35  ;;  %v607_v35 = vadd.f32 1.0, %v1491_v10 }
 0xa52   :  { %v530_v36 = vpop.xlane.xlu1 %529 }
 0xa53   :  { %v531_v37 = vrot.slane %v530_v36, 4 }
 0xa55   :  { %v532_v38 = vmax.f32 %v530_v36, %v531_v37 }
 0xa57   :  { %v533_v39 = vrot.slane %v532_v38, 2 }
 0xa59   :  { %v534_v40 = vmax.f32 %v532_v38, %v533_v39 }
 0xa5b   :  { %v535_v2 = vrot.slane %v534_v40, 1 }
 0xa5d   :  { %v536_v4 = vmax.f32 %v534_v40, %v535_v2 }
 0xa5f   :  { %1195 = vpush %v536_v4 }
 0xa90   :  { %s1196_s17 = spop %1195 }
 0xa91   :  { %v538_v42 = vstv %s1196_s17 }
 0xa92   :  { %v539_v43 = vsub.f32 %v527_v32, %v538_v42  ;;  %v603_v32 = vmul.f32 0.35, %v1500_v15 }
 0xa94   :  { %v540_v44 = vmul.f32 1.442695, %v539_v43 }
 0xa96   :  { %1282 = vpow2.f32 %v540_v44 }
 0xaa0   :  { %v1283_v45 = vpop.eup %1282 }
 0xaa1   :  { %v542_v46 = vmul.f32 %v1283_v45, %v1339_v34  ;;  %v543_v47 = vmul.f32 %v1283_v45, %v1337_v33 }
 0xaa3   :  { %v545_v50 = vrot.slane %v542_v46, 6  ;;  %v548_v16 = vrot.slane %v543_v47, 4 }
 0xaa5   :  { %v550_v51 = vsel %vm23_vm0, %v1283_v45, %v545_v50 }
 0xaa6   :  { %v551_v53 = vsel %vm59_vm1, %v550_v51, %v548_v16 }
 0xaa7   :  { %v552_v55 = vsel %vm61_vm2, %v551_v53, 0.0 }
 0xaa8   :  { %553 = vadd.xlane.f32.xlu0 %v552_v55 }
 0xb35   :  { %v554_v56 = vpop.xlane.xlu0 %553 }
 0xb36   :  { %v555_v24 = vsel %vm65_vm3, %v554_v56, 0.0  ;;  %v567_v57 = vrot.slane %v554_v56, 2  ;;  %v580_v58 = vrot.slane %v554_v56, 4 }
 0xb37   :  { %556 = vadd.xlane.f32.xlu1 %v555_v24 }
 0xb38   :  { %v569_v59 = vsel %vm65_vm3, %v567_v57, 0.0  ;;  %v582_v60 = vsel %vm65_vm3, %v580_v58, 0.0 }
 0xb39   :  { %570 = vadd.xlane.f32.xlu0 %v569_v59 }
 0xb3b   :  { %583 = vadd.xlane.f32.xlu1 %v582_v60 }
 0xbc4   :  { %v557_v61 = vpop.xlane.xlu1 %556 }
 0xbc5   :  { %v558_v62 = vrot.slane %v557_v61, 4 }
 0xbc6   :  { %v571_v0 = vpop.xlane.xlu0 %570 }
 0xbc7   :  { %v559_v27 = vadd.f32 %v558_v62, %v557_v61  ;;  %v572_v29 = vrot.slane %v571_v0, 4 }
 0xbc8   :  { %v584_v3 = vpop.xlane.xlu1 %583 }
 0xbc9   :  { %v560_v5 = vrot.slane %v559_v27, 2  ;;  %v573_v6 = vadd.f32 %v572_v29, %v571_v0  ;;  %v585_v7 = vrot.slane %v584_v3, 4 }
 0xbcb   :  { %v574_v8 = vrot.slane %v573_v6, 2  ;;  %v586_v9 = vadd.f32 %v585_v7, %v584_v3  ;;  %v561_v11 = vadd.f32 %v560_v5, %v559_v27 }
 0xbcd   :  { %v587_v41 = vrot.slane %v586_v9, 2  ;;  %v562_v12 = vrot.slane %v561_v11, 1  ;;  %v575_v14 = vadd.f32 %v574_v8, %v573_v6 }
 0xbcf   :  { %v563_v17 = vadd.f32 %v562_v12, %v561_v11  ;;  %v576_v18 = vrot.slane %v575_v14, 1  ;;  %v588_v48 = vadd.f32 %v587_v41, %v586_v9 }
 0xbd1   :  { %1197 = vpush %v563_v17  ;;  %v577_v19 = vadd.f32 %v576_v18, %v575_v14  ;;  %v589_v20 = vrot.slane %v588_v48, 1 }
 0xbd3   :  { %1199 = vpush %v577_v19  ;;  %v590_v21 = vadd.f32 %v589_v20, %v588_v48 }
 0xbd5   :  { %1201 = vpush %v590_v21 }
 0xc02   :  { %s1198_s18 = spop %1197 }
 0xc03   :  { %v565_v22 = vstv %s1198_s18 }
 0xc04   :  { %1284 = vrcp.f32 %v565_v22  ;;  %s1200_s19 = spop %1199 }
 0xc05   :  { %v579_v25 = vstv %s1200_s19 }
 0xc06   :  { %s1202_s20 = spop %1201 }
 0xc07   :  { %v592_v49 = vstv %s1202_s20 }
 0xc0e   :  { %v1285_v23 = vpop.eup %1284 }
 0xc0f   :  { %v594_v52 = vmul.f32 %v1285_v23, %v579_v25  ;;  %v1518_v26 = vmul.f32 %v1285_v23, %v592_v49 }
 0xc11   :  { %v596_v54 = vsel %vm107_vm4, %v594_v52, %v1518_v26  ;;  %v599_v28 = vsub.f32 %v1477_v1, %v1518_v26  ;;  %v598_v4 = vfloor.f32 %v1518_v26 }
 0xc12   :  { %597 = vst.msk [vmem:[%s1715_s1 + $0x5] sm:$0x1] %vm109_vm5, %v596_v54 }
 0xc13   :  { %v600_v30 = vceil.f32 %v599_v28 }
 0xc15   :  { %v601_v31 = vsub.f32 %v600_v30, %v1500_v15  ;;  %v605_v1 = vadd.f32 %v600_v30, %v1496_v13 }
 0xc17   :  { %v602_v63 = vand.u32 2147483647, %v601_v31 }
 0xc19   :  { %vm604_vm10 = vcmp.gt.f32.partialorder %v602_v63, %v603_v32 }
 0xc1a   :  { %v1532_v36 = vsel %vm604_vm10, %v607_v35, %v1491_v10  ;;  %v1537_v39 = vsel %vm604_vm10, %v605_v1, %v1496_v13 }
 0xc1b   :  { %v609_v37 = vmax.f32 %v1532_v36, 1.0 }
 0xc1d   :  { %1286 = vrcp.f32 %v609_v37 }
 0xc27   :  { %v1287_v38 = vpop.eup %1286 }
 0xc28   :  { %v611_v40 = vmul.f32 %v1287_v38, %v1537_v39 }
 0xc2a   :  { %v1541_v2 = vsel %vm604_vm10, %v611_v40, %v1500_v15  ;;  %v1147_v15 = vld [vmem:[%s1714_s0 + $0x8] sm:$0x3] }
 0xc2b   :  { %v613_v42 = vmul.f32 1.8, %v1541_v2  ;;  %v631_v24 = vmul.f32 100.0, %v1147_v15 }
 0xc2d   :  { %v614_v10 = vsub.f32 %v598_v4, %v613_v42 }
 0xc2f   :  { %v615_v43 = vadd.f32 %v614_v10, %v613_v42  ;;  %v1204_v44 = vround.rtne.f32 %v614_v10 }
 0xc31   :  { %v1203_v45 = vround.rtne.f32 %v615_v43  ;;  %vm618_vm11 = vcmp.lt.f32.partialorder %v1204_v44, 0.0  ;;  %v619_v46 = vadd.f32 16.0, %v1204_v44 }
 0xc33   :  { %v620_v47 = vsel %vm618_vm11, %v619_v46, %v1204_v44  ;;  %v623_v50 = vadd.f32 1.0, %v1203_v45 }
 0xc34   :  { %v621_v16 = vmax.f32 %v620_v47, 0.0 }
 0xc35   :  { %vm624_vm12 = vcmp.lt.f32.partialorder %v623_v50, 0.0  ;;  %v625_v13 = vadd.f32 16.0, %v623_v50 }
 0xc36   :  { %v622_v53 = vmin.f32 %v621_v16, 16.0 }
 0xc37   :  { %v626_v51 = vsel %vm624_vm12, %v625_v13, %v623_v50 }
 0xc38   :  { %v627_v55 = vmax.f32 %v626_v51, 0.0  ;;  %vm632_vm13 = vcmp.ge.f32.partialorder %v1337_v33, %v622_v53 }
 0xc3a   :  { %v628_v56 = vmin.f32 %v627_v55, 16.0 }
 0xc3c   :  { %vm633_vm14 = vcmp.lt.f32.partialorder %v1337_v33, %v628_v56 }
 0xc3d   :  { %vm634_vm15 = vmand %vm632_vm13, %vm633_vm14 }
 0xc3e   :  { %v635_v57 = vsel %vm634_vm15, %v631_v24, 0.0 }
 0xc3f   :  { %v636_v58 = vsel %vm23_vm0, %v635_v57, -inf }
 0xc40   :  { %637 = vmax.xlane.f32.xlu0 %v636_v58  ;;  %v715_v58 = vadd.f32 1.0, %v1532_v36 }
 0xccd   :  { %v638_v59 = vpop.xlane.xlu0 %637 }
 0xcce   :  { %v639_v60 = vrot.slane %v638_v59, 4 }
 0xcd0   :  { %v640_v61 = vmax.f32 %v638_v59, %v639_v60 }
 0xcd2   :  { %v641_v62 = vrot.slane %v640_v61, 2 }
 0xcd4   :  { %v642_v0 = vmax.f32 %v640_v61, %v641_v62 }
 0xcd6   :  { %v643_v27 = vrot.slane %v642_v0, 1 }
 0xcd8   :  { %v644_v29 = vmax.f32 %v642_v0, %v643_v27 }
 0xcda   :  { %1205 = vpush %v644_v29 }
 0xd0b   :  { %s1206_s25 = spop %1205 }
 0xd0c   :  { %v646_v3 = vstv %s1206_s25 }
 0xd0d   :  { %v647_v5 = vsub.f32 %v635_v57, %v646_v3  ;;  %v711_v57 = vmul.f32 0.35, %v1541_v2 }
 0xd0f   :  { %v648_v6 = vmul.f32 1.442695, %v647_v5 }
 0xd11   :  { %1288 = vpow2.f32 %v648_v6 }
 0xd1b   :  { %v1289_v7 = vpop.eup %1288 }
 0xd1c   :  { %v650_v8 = vmul.f32 %v1289_v7, %v1339_v34  ;;  %v651_v9 = vmul.f32 %v1289_v7, %v1337_v33 }
 0xd1e   :  { %v653_v11 = vrot.slane %v650_v8, 6  ;;  %v656_v41 = vrot.slane %v651_v9, 4 }
 0xd20   :  { %v658_v12 = vsel %vm23_vm0, %v1289_v7, %v653_v11 }
 0xd21   :  { %v659_v14 = vsel %vm59_vm1, %v658_v12, %v656_v41 }
 0xd22   :  { %v660_v17 = vsel %vm61_vm2, %v659_v14, 0.0 }
 0xd23   :  { %661 = vadd.xlane.f32.xlu1 %v660_v17 }
 0xdb0   :  { %v662_v18 = vpop.xlane.xlu1 %661 }
 0xdb1   :  { %v663_v48 = vsel %vm65_vm3, %v662_v18, 0.0  ;;  %v675_v19 = vrot.slane %v662_v18, 2  ;;  %v688_v20 = vrot.slane %v662_v18, 4 }
 0xdb2   :  { %664 = vadd.xlane.f32.xlu0 %v663_v48 }
 0xdb3   :  { %v677_v21 = vsel %vm65_vm3, %v675_v19, 0.0  ;;  %v690_v22 = vsel %vm65_vm3, %v688_v20, 0.0 }
 0xdb4   :  { %678 = vadd.xlane.f32.xlu1 %v677_v21 }
 0xdb6   :  { %691 = vadd.xlane.f32.xlu0 %v690_v22 }
 0xe3f   :  { %v665_v23 = vpop.xlane.xlu0 %664 }
 0xe40   :  { %v666_v25 = vrot.slane %v665_v23, 4 }
 0xe41   :  { %v679_v49 = vpop.xlane.xlu1 %678 }
 0xe42   :  { %v667_v52 = vadd.f32 %v666_v25, %v665_v23  ;;  %v680_v54 = vrot.slane %v679_v49, 4 }
 0xe43   :  { %v692_v28 = vpop.xlane.xlu0 %691 }
 0xe44   :  { %v668_v30 = vrot.slane %v667_v52, 2  ;;  %v681_v31 = vadd.f32 %v680_v54, %v679_v49  ;;  %v693_v63 = vrot.slane %v692_v28, 4 }
 0xe46   :  { %v682_v32 = vrot.slane %v681_v31, 2  ;;  %v694_v35 = vadd.f32 %v693_v63, %v692_v28  ;;  %v669_v37 = vadd.f32 %v668_v30, %v667_v52 }
 0xe48   :  { %v695_v1 = vrot.slane %v694_v35, 2  ;;  %v670_v38 = vrot.slane %v669_v37, 1  ;;  %v683_v40 = vadd.f32 %v682_v32, %v681_v31 }
 0xe4a   :  { %v671_v4 = vadd.f32 %v670_v38, %v669_v37  ;;  %v684_v42 = vrot.slane %v683_v40, 1  ;;  %v696_v10 = vadd.f32 %v695_v1, %v694_v35 }
 0xe4c   :  { %1207 = vpush %v671_v4  ;;  %v685_v43 = vadd.f32 %v684_v42, %v683_v40  ;;  %v697_v44 = vrot.slane %v696_v10, 1 }
 0xe4e   :  { %1209 = vpush %v685_v43  ;;  %v698_v45 = vadd.f32 %v697_v44, %v696_v10 }
 0xe50   :  { %1211 = vpush %v698_v45 }
 0xe7d   :  { %s1208_s26 = spop %1207 }
 0xe7e   :  { %v673_v46 = vstv %s1208_s26 }
 0xe7f   :  { %1290 = vrcp.f32 %v673_v46  ;;  %s1210_s27 = spop %1209 }
 0xe80   :  { %v687_v50 = vstv %s1210_s27 }
 0xe81   :  { %s1212_s28 = spop %1211 }
 0xe82   :  { %v700_v16 = vstv %s1212_s28 }
 0xe89   :  { %v1291_v47 = vpop.eup %1290 }
 0xe8a   :  { %v702_v13 = vmul.f32 %v1291_v47, %v687_v50  ;;  %v1559_v51 = vmul.f32 %v1291_v47, %v700_v16 }
 0xe8c   :  { %v704_v15 = vsel %vm107_vm4, %v702_v13, %v1559_v51  ;;  %v707_v53 = vsub.f32 %v1518_v26, %v1559_v51  ;;  %v706_v29 = vfloor.f32 %v1559_v51 }
 0xe8d   :  { %705 = vst.msk [vmem:[%s1715_s1 + $0x4] sm:$0x1] %vm109_vm5, %v704_v15 }
 0xe8e   :  { %v708_v55 = vceil.f32 %v707_v53 }
 0xe90   :  { %v709_v56 = vsub.f32 %v708_v55, %v1541_v2  ;;  %v713_v26 = vadd.f32 %v708_v55, %v1537_v39 }
 0xe92   :  { %v710_v24 = vand.u32 2147483647, %v709_v56 }
 0xe94   :  { %vm712_vm6 = vcmp.gt.f32.partialorder %v710_v24, %v711_v57 }
 0xe95   :  { %v1573_v59 = vsel %vm712_vm6, %v715_v58, %v1532_v36  ;;  %v1578_v62 = vsel %vm712_vm6, %v713_v26, %v1537_v39 }
 0xe96   :  { %v717_v60 = vmax.f32 %v1573_v59, 1.0 }
 0xe98   :  { %1292 = vrcp.f32 %v717_v60 }
 0xea2   :  { %v1293_v61 = vpop.eup %1292 }
 0xea3   :  { %v719_v0 = vmul.f32 %v1293_v61, %v1578_v62 }
 0xea5   :  { %v1582_v27 = vsel %vm712_vm6, %v719_v0, %v1541_v2  ;;  %v1148_v2 = vld [vmem:[%s1714_s0 + $0x6] sm:$0x3] }
 0xea6   :  { %v721_v3 = vmul.f32 1.8, %v1582_v27  ;;  %v739_v48 = vmul.f32 100.0, %v1148_v2 }
 0xea8   :  { %v722_v36 = vsub.f32 %v706_v29, %v721_v3 }
 0xeaa   :  { %v723_v5 = vadd.f32 %v722_v36, %v721_v3  ;;  %v1214_v6 = vround.rtne.f32 %v722_v36 }
 0xeac   :  { %v1213_v7 = vround.rtne.f32 %v723_v5  ;;  %vm726_vm7 = vcmp.lt.f32.partialorder %v1214_v6, 0.0  ;;  %v727_v8 = vadd.f32 16.0, %v1214_v6 }
 0xeae   :  { %v728_v9 = vsel %vm726_vm7, %v727_v8, %v1214_v6  ;;  %v731_v11 = vadd.f32 1.0, %v1213_v7 }
 0xeaf   :  { %v729_v41 = vmax.f32 %v728_v9, 0.0 }
 0xeb0   :  { %vm732_vm8 = vcmp.lt.f32.partialorder %v731_v11, 0.0  ;;  %v733_v39 = vadd.f32 16.0, %v731_v11 }
 0xeb1   :  { %v730_v14 = vmin.f32 %v729_v41, 16.0 }
 0xeb2   :  { %v734_v12 = vsel %vm732_vm8, %v733_v39, %v731_v11 }
 0xeb3   :  { %v735_v17 = vmax.f32 %v734_v12, 0.0  ;;  %vm740_vm9 = vcmp.ge.f32.partialorder %v1337_v33, %v730_v14 }
 0xeb5   :  { %v736_v18 = vmin.f32 %v735_v17, 16.0 }
 0xeb7   :  { %vm741_vm10 = vcmp.lt.f32.partialorder %v1337_v33, %v736_v18 }
 0xeb8   :  { %vm742_vm11 = vmand %vm740_vm9, %vm741_vm10 }
 0xeb9   :  { %v743_v19 = vsel %vm742_vm11, %v739_v48, 0.0 }
 0xeba   :  { %v744_v20 = vsel %vm23_vm0, %v743_v19, -inf }
 0xebb   :  { %745 = vmax.xlane.f32.xlu1 %v744_v20  ;;  %v823_v20 = vadd.f32 1.0, %v1573_v59 }
 0xf48   :  { %v746_v21 = vpop.xlane.xlu1 %745 }
 0xf49   :  { %v747_v22 = vrot.slane %v746_v21, 4 }
 0xf4b   :  { %v748_v23 = vmax.f32 %v746_v21, %v747_v22 }
 0xf4d   :  { %v749_v25 = vrot.slane %v748_v23, 2 }
 0xf4f   :  { %v750_v49 = vmax.f32 %v748_v23, %v749_v25 }
 0xf51   :  { %v751_v52 = vrot.slane %v750_v49, 1 }
 0xf53   :  { %v752_v54 = vmax.f32 %v750_v49, %v751_v52 }
 0xf55   :  { %1215 = vpush %v752_v54 }
 0xf86   :  { %s1216_s4 = spop %1215 }
 0xf87   :  { %v754_v28 = vstv %s1216_s4 }
 0xf88   :  { %v755_v30 = vsub.f32 %v743_v19, %v754_v28  ;;  %v819_v19 = vmul.f32 0.35, %v1582_v27 }
 0xf8a   :  { %v756_v31 = vmul.f32 1.442695, %v755_v30 }
 0xf8c   :  { %1294 = vpow2.f32 %v756_v31 }
 0xf96   :  { %v1295_v63 = vpop.eup %1294 }
 0xf97   :  { %v758_v32 = vmul.f32 %v1295_v63, %v1339_v34  ;;  %v759_v35 = vmul.f32 %v1295_v63, %v1337_v33 }
 0xf99   :  { %v761_v37 = vrot.slane %v758_v32, 6  ;;  %v764_v1 = vrot.slane %v759_v35, 4 }
 0xf9b   :  { %v766_v38 = vsel %vm23_vm0, %v1295_v63, %v761_v37 }
 0xf9c   :  { %v767_v40 = vsel %vm59_vm1, %v766_v38, %v764_v1 }
 0xf9d   :  { %v768_v4 = vsel %vm61_vm2, %v767_v40, 0.0 }
 0xf9e   :  { %769 = vadd.xlane.f32.xlu0 %v768_v4 }
0x102b   :  { %v770_v42 = vpop.xlane.xlu0 %769 }
0x102c   :  { %v771_v10 = vsel %vm65_vm3, %v770_v42, 0.0  ;;  %v783_v43 = vrot.slane %v770_v42, 2  ;;  %v796_v44 = vrot.slane %v770_v42, 4 }
0x102d   :  { %772 = vadd.xlane.f32.xlu1 %v771_v10 }
0x102e   :  { %v785_v45 = vsel %vm65_vm3, %v783_v43, 0.0  ;;  %v798_v46 = vsel %vm65_vm3, %v796_v44, 0.0 }
0x102f   :  { %786 = vadd.xlane.f32.xlu0 %v785_v45 }
0x1031   :  { %799 = vadd.xlane.f32.xlu1 %v798_v46 }
0x10ba   :  { %v773_v47 = vpop.xlane.xlu1 %772 }
0x10bb   :  { %v774_v50 = vrot.slane %v773_v47, 4 }
0x10bc   :  { %v787_v16 = vpop.xlane.xlu0 %786 }
0x10bd   :  { %v775_v13 = vadd.f32 %v774_v50, %v773_v47  ;;  %v788_v15 = vrot.slane %v787_v16, 4 }
0x10be   :  { %v800_v53 = vpop.xlane.xlu1 %799 }
0x10bf   :  { %v776_v55 = vrot.slane %v775_v13, 2  ;;  %v789_v56 = vadd.f32 %v788_v15, %v787_v16  ;;  %v801_v24 = vrot.slane %v800_v53, 4 }
0x10c1   :  { %v790_v57 = vrot.slane %v789_v56, 2  ;;  %v802_v58 = vadd.f32 %v801_v24, %v800_v53  ;;  %v777_v60 = vadd.f32 %v776_v55, %v775_v13 }
0x10c3   :  { %v803_v26 = vrot.slane %v802_v58, 2  ;;  %v778_v61 = vrot.slane %v777_v60, 1  ;;  %v791_v0 = vadd.f32 %v790_v57, %v789_v56 }
0x10c5   :  { %v779_v29 = vadd.f32 %v778_v61, %v777_v60  ;;  %v792_v3 = vrot.slane %v791_v0, 1  ;;  %v804_v36 = vadd.f32 %v803_v26, %v802_v58 }
0x10c7   :  { %1217 = vpush %v779_v29  ;;  %v793_v5 = vadd.f32 %v792_v3, %v791_v0  ;;  %v805_v6 = vrot.slane %v804_v36, 1 }
0x10c9   :  { %1219 = vpush %v793_v5  ;;  %v806_v7 = vadd.f32 %v805_v6, %v804_v36 }
0x10cb   :  { %1221 = vpush %v806_v7 }
0x10f8   :  { %s1218_s5 = spop %1217 }
0x10f9   :  { %v781_v8 = vstv %s1218_s5 }
0x10fa   :  { %1296 = vrcp.f32 %v781_v8  ;;  %s1220_s6 = spop %1219 }
0x10fb   :  { %v795_v11 = vstv %s1220_s6 }
0x10fc   :  { %s1222_s7 = spop %1221 }
0x10fd   :  { %v808_v41 = vstv %s1222_s7 }
0x1104   :  { %v1297_v9 = vpop.eup %1296 }
0x1105   :  { %v810_v39 = vmul.f32 %v1297_v9, %v795_v11  ;;  %v1600_v12 = vmul.f32 %v1297_v9, %v808_v41 }
0x1107   :  { %v812_v2 = vsel %vm107_vm4, %v810_v39, %v1600_v12  ;;  %v815_v14 = vsub.f32 %v1559_v51, %v1600_v12  ;;  %v814_v54 = vfloor.f32 %v1600_v12 }
0x1108   :  { %813 = vst.msk [vmem:[%s1715_s1 + $0x3] sm:$0x1] %vm109_vm5, %v812_v2 }
0x1109   :  { %v816_v17 = vceil.f32 %v815_v14 }
0x110b   :  { %v817_v18 = vsub.f32 %v816_v17, %v1582_v27  ;;  %v821_v51 = vadd.f32 %v816_v17, %v1578_v62 }
0x110d   :  { %v818_v48 = vand.u32 2147483647, %v817_v18 }
0x110f   :  { %vm820_vm12 = vcmp.gt.f32.partialorder %v818_v48, %v819_v19 }
0x1110   :  { %v1614_v21 = vsel %vm820_vm12, %v823_v20, %v1573_v59  ;;  %v1619_v25 = vsel %vm820_vm12, %v821_v51, %v1578_v62 }
0x1111   :  { %v825_v22 = vmax.f32 %v1614_v21, 1.0 }
0x1113   :  { %1298 = vrcp.f32 %v825_v22 }
0x111d   :  { %v1299_v23 = vpop.eup %1298 }
0x111e   :  { %v827_v49 = vmul.f32 %v1299_v23, %v1619_v25 }
0x1120   :  { %v1623_v52 = vsel %vm820_vm12, %v827_v49, %v1582_v27  ;;  %v1149_v27 = vld [vmem:[%s1714_s0 + $0x4] sm:$0x3] }
0x1121   :  { %v829_v28 = vmul.f32 1.8, %v1623_v52  ;;  %v847_v10 = vmul.f32 100.0, %v1149_v27 }
0x1123   :  { %v830_v59 = vsub.f32 %v814_v54, %v829_v28 }
0x1125   :  { %v831_v30 = vadd.f32 %v830_v59, %v829_v28  ;;  %v1224_v31 = vround.rtne.f32 %v830_v59 }
0x1127   :  { %v1223_v63 = vround.rtne.f32 %v831_v30  ;;  %vm834_vm13 = vcmp.lt.f32.partialorder %v1224_v31, 0.0  ;;  %v835_v32 = vadd.f32 16.0, %v1224_v31 }
0x1129   :  { %v836_v35 = vsel %vm834_vm13, %v835_v32, %v1224_v31  ;;  %v839_v37 = vadd.f32 1.0, %v1223_v63 }
0x112a   :  { %v837_v1 = vmax.f32 %v836_v35, 0.0 }
0x112b   :  { %vm840_vm14 = vcmp.lt.f32.partialorder %v839_v37, 0.0  ;;  %v841_v62 = vadd.f32 16.0, %v839_v37 }
0x112c   :  { %v838_v40 = vmin.f32 %v837_v1, 16.0 }
0x112d   :  { %v842_v38 = vsel %vm840_vm14, %v841_v62, %v839_v37 }
0x112e   :  { %v843_v4 = vmax.f32 %v842_v38, 0.0  ;;  %vm848_vm15 = vcmp.ge.f32.partialorder %v1337_v33, %v838_v40 }
0x1130   :  { %v844_v42 = vmin.f32 %v843_v4, 16.0 }
0x1132   :  { %vm849_vm6 = vcmp.lt.f32.partialorder %v1337_v33, %v844_v42 }
0x1133   :  { %vm850_vm7 = vmand %vm848_vm15, %vm849_vm6 }
0x1134   :  { %v851_v43 = vsel %vm850_vm7, %v847_v10, 0.0 }
0x1135   :  { %v852_v44 = vsel %vm23_vm0, %v851_v43, -inf }
0x1136   :  { %853 = vmax.xlane.f32.xlu0 %v852_v44  ;;  %v931_v44 = vadd.f32 1.0, %v1614_v21 }
0x11c3   :  { %v854_v45 = vpop.xlane.xlu0 %853 }
0x11c4   :  { %v855_v46 = vrot.slane %v854_v45, 4 }
0x11c6   :  { %v856_v47 = vmax.f32 %v854_v45, %v855_v46 }
0x11c8   :  { %v857_v50 = vrot.slane %v856_v47, 2 }
0x11ca   :  { %v858_v16 = vmax.f32 %v856_v47, %v857_v50 }
0x11cc   :  { %v859_v13 = vrot.slane %v858_v16, 1 }
0x11ce   :  { %v860_v15 = vmax.f32 %v858_v16, %v859_v13 }
0x11d0   :  { %1225 = vpush %v860_v15 }
0x1201   :  { %s1226_s12 = spop %1225 }
0x1202   :  { %v862_v53 = vstv %s1226_s12 }
0x1203   :  { %v863_v55 = vsub.f32 %v851_v43, %v862_v53  ;;  %v927_v43 = vmul.f32 0.35, %v1623_v52 }
0x1205   :  { %v864_v56 = vmul.f32 1.442695, %v863_v55 }
0x1207   :  { %1300 = vpow2.f32 %v864_v56 }
0x1211   :  { %v1301_v24 = vpop.eup %1300 }
0x1212   :  { %v866_v57 = vmul.f32 %v1301_v24, %v1339_v34  ;;  %v867_v58 = vmul.f32 %v1301_v24, %v1337_v33 }
0x1214   :  { %v869_v60 = vrot.slane %v866_v57, 6  ;;  %v872_v26 = vrot.slane %v867_v58, 4 }
0x1216   :  { %v874_v61 = vsel %vm23_vm0, %v1301_v24, %v869_v60 }
0x1217   :  { %v875_v0 = vsel %vm59_vm1, %v874_v61, %v872_v26 }
0x1218   :  { %v876_v29 = vsel %vm61_vm2, %v875_v0, 0.0 }
0x1219   :  { %877 = vadd.xlane.f32.xlu1 %v876_v29 }
0x12a6   :  { %v878_v3 = vpop.xlane.xlu1 %877 }
0x12a7   :  { %v879_v36 = vsel %vm65_vm3, %v878_v3, 0.0  ;;  %v891_v5 = vrot.slane %v878_v3, 2  ;;  %v904_v6 = vrot.slane %v878_v3, 4 }
0x12a8   :  { %880 = vadd.xlane.f32.xlu0 %v879_v36 }
0x12a9   :  { %v893_v7 = vsel %vm65_vm3, %v891_v5, 0.0  ;;  %v906_v8 = vsel %vm65_vm3, %v904_v6, 0.0 }
0x12aa   :  { %894 = vadd.xlane.f32.xlu1 %v893_v7 }
0x12ac   :  { %907 = vadd.xlane.f32.xlu0 %v906_v8 }
0x1335   :  { %v881_v9 = vpop.xlane.xlu0 %880 }
0x1336   :  { %v882_v11 = vrot.slane %v881_v9, 4 }
0x1337   :  { %v895_v41 = vpop.xlane.xlu1 %894 }
0x1338   :  { %v883_v39 = vadd.f32 %v882_v11, %v881_v9  ;;  %v896_v2 = vrot.slane %v895_v41, 4 }
0x1339   :  { %v908_v14 = vpop.xlane.xlu0 %907 }
0x133a   :  { %v884_v17 = vrot.slane %v883_v39, 2  ;;  %v897_v18 = vadd.f32 %v896_v2, %v895_v41  ;;  %v909_v48 = vrot.slane %v908_v14, 4 }
0x133c   :  { %v898_v19 = vrot.slane %v897_v18, 2  ;;  %v910_v20 = vadd.f32 %v909_v48, %v908_v14  ;;  %v885_v22 = vadd.f32 %v884_v17, %v883_v39 }
0x133e   :  { %v911_v51 = vrot.slane %v910_v20, 2  ;;  %v886_v23 = vrot.slane %v885_v22, 1  ;;  %v899_v49 = vadd.f32 %v898_v19, %v897_v18 }
0x1340   :  { %v887_v54 = vadd.f32 %v886_v23, %v885_v22  ;;  %v900_v28 = vrot.slane %v899_v49, 1  ;;  %v912_v59 = vadd.f32 %v911_v51, %v910_v20 }
0x1342   :  { %1227 = vpush %v887_v54  ;;  %v901_v30 = vadd.f32 %v900_v28, %v899_v49  ;;  %v913_v31 = vrot.slane %v912_v59, 1 }
0x1344   :  { %1229 = vpush %v901_v30  ;;  %v914_v63 = vadd.f32 %v913_v31, %v912_v59 }
0x1346   :  { %1231 = vpush %v914_v63 }
0x1373   :  { %s1228_s13 = spop %1227 }
0x1374   :  { %v889_v32 = vstv %s1228_s13 }
0x1375   :  { %1302 = vrcp.f32 %v889_v32  ;;  %s1230_s14 = spop %1229 }
0x1376   :  { %v903_v37 = vstv %s1230_s14 }
0x1377   :  { %s1232_s15 = spop %1231 }
0x1378   :  { %v916_v1 = vstv %s1232_s15 }
0x137f   :  { %v1303_v35 = vpop.eup %1302 }
0x1380   :  { %v918_v62 = vmul.f32 %v1303_v35, %v903_v37  ;;  %v1641_v38 = vmul.f32 %v1303_v35, %v916_v1 }
0x1382   :  { %v920_v27 = vsel %vm107_vm4, %v918_v62, %v1641_v38  ;;  %v923_v40 = vsub.f32 %v1600_v12, %v1641_v38  ;;  %v922_v15 = vfloor.f32 %v1641_v38 }
0x1383   :  { %921 = vst.msk [vmem:[%s1715_s1 + $0x2] sm:$0x1] %vm109_vm5, %v920_v27 }
0x1384   :  { %v924_v4 = vceil.f32 %v923_v40 }
0x1386   :  { %v925_v42 = vsub.f32 %v924_v4, %v1623_v52  ;;  %v929_v12 = vadd.f32 %v924_v4, %v1619_v25 }
0x1388   :  { %v926_v10 = vand.u32 2147483647, %v925_v42 }
0x138a   :  { %vm928_vm8 = vcmp.gt.f32.partialorder %v926_v10, %v927_v43 }
0x138b   :  { %v1655_v45 = vsel %vm928_vm8, %v931_v44, %v1614_v21  ;;  %v1660_v50 = vsel %vm928_vm8, %v929_v12, %v1619_v25 }
0x138c   :  { %v933_v46 = vmax.f32 %v1655_v45, 1.0 }
0x138e   :  { %1304 = vrcp.f32 %v933_v46 }
0x1398   :  { %v1305_v47 = vpop.eup %1304 }
0x1399   :  { %v935_v16 = vmul.f32 %v1305_v47, %v1660_v50 }
0x139b   :  { %v1664_v13 = vsel %vm928_vm8, %v935_v16, %v1623_v52  ;;  %v1150_v52 = vld [vmem:[%s1714_s0 + $0x2] sm:$0x3] }
0x139c   :  { %v937_v53 = vmul.f32 1.8, %v1664_v13  ;;  %v955_v36 = vmul.f32 100.0, %v1150_v52 }
0x139e   :  { %v938_v21 = vsub.f32 %v922_v15, %v937_v53 }
0x13a0   :  { %v939_v55 = vadd.f32 %v938_v21, %v937_v53  ;;  %v1234_v56 = vround.rtne.f32 %v938_v21 }
0x13a2   :  { %v1233_v24 = vround.rtne.f32 %v939_v55  ;;  %vm942_vm9 = vcmp.lt.f32.partialorder %v1234_v56, 0.0  ;;  %v943_v57 = vadd.f32 16.0, %v1234_v56 }
0x13a4   :  { %v944_v58 = vsel %vm942_vm9, %v943_v57, %v1234_v56  ;;  %v947_v60 = vadd.f32 1.0, %v1233_v24 }
0x13a5   :  { %v945_v26 = vmax.f32 %v944_v58, 0.0 }
0x13a6   :  { %vm948_vm10 = vcmp.lt.f32.partialorder %v947_v60, 0.0  ;;  %v949_v25 = vadd.f32 16.0, %v947_v60 }
0x13a7   :  { %v946_v0 = vmin.f32 %v945_v26, 16.0 }
0x13a8   :  { %v950_v61 = vsel %vm948_vm10, %v949_v25, %v947_v60 }
0x13a9   :  { %v951_v29 = vmax.f32 %v950_v61, 0.0  ;;  %vm956_vm11 = vcmp.ge.f32.partialorder %v1337_v33, %v946_v0 }
0x13ab   :  { %v952_v3 = vmin.f32 %v951_v29, 16.0 }
0x13ad   :  { %vm957_vm12 = vcmp.lt.f32.partialorder %v1337_v33, %v952_v3 }
0x13ae   :  { %vm958_vm13 = vmand %vm956_vm11, %vm957_vm12 }
0x13af   :  { %v959_v5 = vsel %vm958_vm13, %v955_v36, 0.0 }
0x13b0   :  { %v960_v6 = vsel %vm23_vm0, %v959_v5, -inf }
0x13b1   :  { %961 = vmax.xlane.f32.xlu1 %v960_v6  ;;  %v1039_v6 = vadd.f32 1.0, %v1655_v45 }
0x143e   :  { %v962_v7 = vpop.xlane.xlu1 %961 }
0x143f   :  { %v963_v8 = vrot.slane %v962_v7, 4 }
0x1441   :  { %v964_v9 = vmax.f32 %v962_v7, %v963_v8 }
0x1443   :  { %v965_v11 = vrot.slane %v964_v9, 2 }
0x1445   :  { %v966_v41 = vmax.f32 %v964_v9, %v965_v11 }
0x1447   :  { %v967_v39 = vrot.slane %v966_v41, 1 }
0x1449   :  { %v968_v2 = vmax.f32 %v966_v41, %v967_v39 }
0x144b   :  { %1235 = vpush %v968_v2 }
0x147c   :  { %s1236_s20 = spop %1235 }
0x147d   :  { %v970_v14 = vstv %s1236_s20 }
0x147e   :  { %v971_v17 = vsub.f32 %v959_v5, %v970_v14  ;;  %v1035_v5 = vmul.f32 0.35, %v1664_v13 }
0x1480   :  { %v972_v18 = vmul.f32 1.442695, %v971_v17 }
0x1482   :  { %1306 = vpow2.f32 %v972_v18 }
0x148c   :  { %v1307_v48 = vpop.eup %1306 }
0x148d   :  { %v974_v19 = vmul.f32 %v1307_v48, %v1339_v34  ;;  %v975_v20 = vmul.f32 %v1307_v48, %v1337_v33 }
0x148f   :  { %v977_v22 = vrot.slane %v974_v19, 6  ;;  %v980_v51 = vrot.slane %v975_v20, 4 }
0x1491   :  { %v982_v23 = vsel %vm23_vm0, %v1307_v48, %v977_v22 }
0x1492   :  { %v983_v49 = vsel %vm59_vm1, %v982_v23, %v980_v51 }
0x1493   :  { %v984_v54 = vsel %vm61_vm2, %v983_v49, 0.0 }
0x1494   :  { %985 = vadd.xlane.f32.xlu0 %v984_v54 }
0x1521   :  { %v986_v28 = vpop.xlane.xlu0 %985 }
0x1522   :  { %v987_v59 = vsel %vm65_vm3, %v986_v28, 0.0  ;;  %v999_v30 = vrot.slane %v986_v28, 2  ;;  %v1012_v31 = vrot.slane %v986_v28, 4 }
0x1523   :  { %988 = vadd.xlane.f32.xlu1 %v987_v59 }
0x1524   :  { %v1001_v63 = vsel %vm65_vm3, %v999_v30, 0.0  ;;  %v1014_v32 = vsel %vm65_vm3, %v1012_v31, 0.0 }
0x1525   :  { %1002 = vadd.xlane.f32.xlu0 %v1001_v63 }
0x1527   :  { %1015 = vadd.xlane.f32.xlu1 %v1014_v32 }
0x15b0   :  { %v989_v35 = vpop.xlane.xlu1 %988 }
0x15b1   :  { %v990_v37 = vrot.slane %v989_v35, 4 }
0x15b2   :  { %v1003_v1 = vpop.xlane.xlu0 %1002 }
0x15b3   :  { %v991_v62 = vadd.f32 %v990_v37, %v989_v35  ;;  %v1004_v27 = vrot.slane %v1003_v1, 4 }
0x15b4   :  { %v1016_v40 = vpop.xlane.xlu1 %1015 }
0x15b5   :  { %v992_v4 = vrot.slane %v991_v62, 2  ;;  %v1005_v42 = vadd.f32 %v1004_v27, %v1003_v1  ;;  %v1017_v10 = vrot.slane %v1016_v40, 4 }
0x15b7   :  { %v1006_v43 = vrot.slane %v1005_v42, 2  ;;  %v1018_v44 = vadd.f32 %v1017_v10, %v1016_v40  ;;  %v993_v46 = vadd.f32 %v992_v4, %v991_v62 }
0x15b9   :  { %v1019_v12 = vrot.slane %v1018_v44, 2  ;;  %v994_v47 = vrot.slane %v993_v46, 1  ;;  %v1007_v16 = vadd.f32 %v1006_v43, %v1005_v42 }
0x15bb   :  { %v995_v15 = vadd.f32 %v994_v47, %v993_v46  ;;  %v1008_v53 = vrot.slane %v1007_v16, 1  ;;  %v1020_v21 = vadd.f32 %v1019_v12, %v1018_v44 }
0x15bd   :  { %1237 = vpush %v995_v15  ;;  %v1009_v55 = vadd.f32 %v1008_v53, %v1007_v16  ;;  %v1021_v56 = vrot.slane %v1020_v21, 1 }
0x15bf   :  { %1239 = vpush %v1009_v55  ;;  %v1022_v24 = vadd.f32 %v1021_v56, %v1020_v21 }
0x15c1   :  { %1241 = vpush %v1022_v24 }
0x15ee   :  { %s1238_s21 = spop %1237 }
0x15ef   :  { %v997_v57 = vstv %s1238_s21 }
0x15f0   :  { %1308 = vrcp.f32 %v997_v57  ;;  %s1240_s22 = spop %1239 }
0x15f1   :  { %v1011_v60 = vstv %s1240_s22 }
0x15f2   :  { %s1242_s23 = spop %1241 }
0x15f3   :  { %v1024_v26 = vstv %s1242_s23 }
0x15fa   :  { %v1309_v58 = vpop.eup %1308 }
0x15fb   :  { %v1026_v25 = vmul.f32 %v1309_v58, %v1011_v60  ;;  %v1027_v61 = vmul.f32 %v1309_v58, %v1024_v26 }
0x15fd   :  { %v1028_v52 = vsel %vm107_vm4, %v1026_v25, %v1027_v61  ;;  %v1031_v0 = vsub.f32 %v1641_v38, %v1027_v61  ;;  %v1030_v2 = vfloor.f32 %v1027_v61 }
0x15fe   :  { %1029 = vst.msk [vmem:[%s1715_s1 + $0x1] sm:$0x1] %vm109_vm5, %v1028_v52 }
0x15ff   :  { %v1032_v29 = vceil.f32 %v1031_v0 }
0x1601   :  { %v1033_v3 = vsub.f32 %v1032_v29, %v1664_v13  ;;  %v1037_v38 = vadd.f32 %v1032_v29, %v1660_v50 }
0x1603   :  { %v1034_v36 = vand.u32 2147483647, %v1033_v3 }
0x1605   :  { %vm1036_vm14 = vcmp.gt.f32.partialorder %v1034_v36, %v1035_v5 }
0x1606   :  { %v1040_v7 = vsel %vm1036_vm14, %v1039_v6, %v1655_v45  ;;  %v1038_v11 = vsel %vm1036_vm14, %v1037_v38, %v1660_v50  ;;  %v1061_v50 = vld [vmem:[%s1714_s0] sm:$0x3] }
0x1607   :  { %v1041_v8 = vmax.f32 %v1040_v7, 1.0  ;;  %v1062_v59 = vmul.f32 100.0, %v1061_v50 }
0x1609   :  { %1310 = vrcp.f32 %v1041_v8 }
0x1613   :  { %v1311_v9 = vpop.eup %1310 }
0x1614   :  { %v1043_v41 = vmul.f32 %v1311_v9, %v1038_v11 }
0x1616   :  { %v1044_v39 = vsel %vm1036_vm14, %v1043_v41, %v1664_v13 }
0x1617   :  { %v1045_v14 = vmul.f32 1.8, %v1044_v39 }
0x1619   :  { %v1046_v17 = vsub.f32 %v1030_v2, %v1045_v14 }
0x161b   :  { %v1047_v18 = vadd.f32 %v1046_v17, %v1045_v14  ;;  %v1244_v48 = vround.rtne.f32 %v1046_v17 }
0x161d   :  { %v1243_v19 = vround.rtne.f32 %v1047_v18  ;;  %vm1050_vm15 = vcmp.lt.f32.partialorder %v1244_v48, 0.0  ;;  %v1051_v20 = vadd.f32 16.0, %v1244_v48 }
0x161f   :  { %v1052_v22 = vsel %vm1050_vm15, %v1051_v20, %v1244_v48  ;;  %v1055_v45 = vadd.f32 1.0, %v1243_v19 }
0x1620   :  { %v1053_v51 = vmax.f32 %v1052_v22, 0.0 }
0x1621   :  { %vm1056_vm6 = vcmp.lt.f32.partialorder %v1055_v45, 0.0  ;;  %v1057_v23 = vadd.f32 16.0, %v1055_v45 }
0x1622   :  { %v1054_v54 = vmin.f32 %v1053_v51, 16.0 }
0x1623   :  { %v1058_v49 = vsel %vm1056_vm6, %v1057_v23, %v1055_v45 }
0x1624   :  { %v1059_v13 = vmax.f32 %v1058_v49, 0.0  ;;  %vm1063_vm7 = vcmp.ge.f32.partialorder %v1337_v33, %v1054_v54 }
0x1626   :  { %v1060_v28 = vmin.f32 %v1059_v13, 16.0 }
0x1628   :  { %vm1064_vm8 = vcmp.lt.f32.partialorder %v1337_v33, %v1060_v28 }
0x1629   :  { %vm1065_vm9 = vmand %vm1063_vm7, %vm1064_vm8 }
0x162a   :  { %v1066_v30 = vsel %vm1065_vm9, %v1062_v59, 0.0 }
0x162b   :  { %v1067_v31 = vsel %vm23_vm0, %v1066_v30, -inf }
0x162c   :  { %1068 = vmax.xlane.f32.xlu0 %v1067_v31 }
0x16b9   :  { %v1069_v63 = vpop.xlane.xlu0 %1068 }
0x16ba   :  { %v1070_v32 = vrot.slane %v1069_v63, 4 }
0x16bc   :  { %v1071_v35 = vmax.f32 %v1069_v63, %v1070_v32 }
0x16be   :  { %v1072_v37 = vrot.slane %v1071_v35, 2 }
0x16c0   :  { %v1073_v1 = vmax.f32 %v1071_v35, %v1072_v37 }
0x16c2   :  { %v1074_v62 = vrot.slane %v1073_v1, 1 }
0x16c4   :  { %v1075_v27 = vmax.f32 %v1073_v1, %v1074_v62 }
0x16c6   :  { %1245 = vpush %v1075_v27 }
0x16f7   :  { %s1246_s0 = spop %1245 }
0x16f8   :  { %v1077_v40 = vstv %s1246_s0 }
0x16f9   :  { %v1078_v4 = vsub.f32 %v1066_v30, %v1077_v40 }
0x16fb   :  { %v1079_v42 = vmul.f32 1.442695, %v1078_v4 }
0x16fd   :  { %1312 = vpow2.f32 %v1079_v42 }
0x1707   :  { %v1313_v10 = vpop.eup %1312 }
0x1708   :  { %v1081_v43 = vmul.f32 %v1313_v10, %v1339_v34  ;;  %v1082_v44 = vmul.f32 %v1313_v10, %v1337_v33 }
0x170a   :  { %v1084_v46 = vrot.slane %v1081_v43, 6  ;;  %v1087_v12 = vrot.slane %v1082_v44, 4 }
0x170c   :  { %v1089_v47 = vsel %vm23_vm0, %v1313_v10, %v1084_v46 }
0x170d   :  { %v1090_v16 = vsel %vm59_vm1, %v1089_v47, %v1087_v12 }
0x170e   :  { %v1091_v15 = vsel %vm61_vm2, %v1090_v16, 0.0 }
0x170f   :  { %1092 = vadd.xlane.f32.xlu1 %v1091_v15 }
0x179c   :  { %v1093_v53 = vpop.xlane.xlu1 %1092 }
0x179d   :  { %v1094_v21 = vsel %vm65_vm3, %v1093_v53, 0.0  ;;  %v1106_v55 = vrot.slane %v1093_v53, 2  ;;  %v1119_v56 = vrot.slane %v1093_v53, 4 }
0x179e   :  { %1095 = vadd.xlane.f32.xlu0 %v1094_v21 }
0x179f   :  { %v1108_v24 = vsel %vm65_vm3, %v1106_v55, 0.0  ;;  %v1121_v33 = vsel %vm65_vm3, %v1119_v56, 0.0 }
0x17a0   :  { %1109 = vadd.xlane.f32.xlu1 %v1108_v24 }
0x17a2   :  { %1122 = vadd.xlane.f32.xlu0 %v1121_v33 }
0x182b   :  { %v1096_v34 = vpop.xlane.xlu0 %1095 }
0x182c   :  { %v1097_v57 = vrot.slane %v1096_v34, 4 }
0x182d   :  { %v1110_v58 = vpop.xlane.xlu1 %1109 }
0x182e   :  { %v1098_v60 = vadd.f32 %v1097_v57, %v1096_v34  ;;  %v1111_v26 = vrot.slane %v1110_v58, 4 }
0x182f   :  { %v1123_v25 = vpop.xlane.xlu0 %1122 }
0x1830   :  { %v1099_v61 = vrot.slane %v1098_v60, 2  ;;  %v1112_v52 = vadd.f32 %v1111_v26, %v1110_v58  ;;  %v1124_v0 = vrot.slane %v1123_v25, 4 }
0x1832   :  { %v1113_v29 = vrot.slane %v1112_v52, 2  ;;  %v1125_v3 = vadd.f32 %v1124_v0, %v1123_v25  ;;  %v1100_v36 = vadd.f32 %v1099_v61, %v1098_v60 }
0x1834   :  { %v1114_v5 = vadd.f32 %v1113_v29, %v1112_v52  ;;  %v1126_v6 = vrot.slane %v1125_v3, 2  ;;  %v1101_v7 = vrot.slane %v1100_v36, 1 }
0x1836   :  { %v1127_v8 = vadd.f32 %v1126_v6, %v1125_v3  ;;  %v1102_v38 = vadd.f32 %v1101_v7, %v1100_v36  ;;  %v1115_v9 = vrot.slane %v1114_v5, 1 }
0x1838   :  { %1247 = vpush %v1102_v38  ;;  %v1116_v11 = vadd.f32 %v1115_v9, %v1114_v5  ;;  %v1128_v41 = vrot.slane %v1127_v8, 1 }
0x183a   :  { %1249 = vpush %v1116_v11  ;;  %v1129_v39 = vadd.f32 %v1128_v41, %v1127_v8 }
0x183c   :  { %1251 = vpush %v1129_v39 }
0x1869   :  { %s1248_s28 = spop %1247 }
0x186a   :  { %v1104_v2 = vstv %s1248_s28 }
0x186b   :  { %1314 = vrcp.f32 %v1104_v2  ;;  %s1250_s29 = spop %1249 }
0x186c   :  { %v1118_v17 = vstv %s1250_s29 }
0x186d   :  { %s1252_s30 = spop %1251 }
0x186e   :  { %v1131_v18 = vstv %s1252_s30 }
0x1875   :  { %v1315_v14 = vpop.eup %1314 }
0x1876   :  { %v1133_v48 = vmul.f32 %v1315_v14, %v1118_v17  ;;  %v1134_v19 = vmul.f32 %v1315_v14, %v1131_v18 }
0x1878   :  { %v1135_v20 = vsel %vm107_vm4, %v1133_v48, %v1134_v19 }
0x1879   :  { %1136 = vst.msk [vmem:[%s1715_s1] sm:$0x1] %vm109_vm5, %v1135_v20 }

</bundles_post_ra>
